<compile_context>
chip_gen: v6e
topology: v6e:2x2x1
jax: 0.10.0
libtpu: 0.0.40
codegen_flags: <defaults>
</compile_context>

<pallas_src>
import math

import jax
import jax.numpy as jnp
from jax.experimental import pallas as pl
from jax.experimental.pallas import tpu as pltpu


# ---------------------------------------------------------------------------
# In-kernel math helpers (f32; tanh goes to the EUP slot)
# ---------------------------------------------------------------------------

_GELU_C = math.sqrt(2.0 / math.pi)


def _gelu_tanh(x):
    # tanh-form GELU (PyTorch nn.GELU(approximate='tanh')).  Chosen per perf review:
    # ~7 VALU ops + 1 EUP tanh per element vs ~24 VALU ops for the erf polynomial.
    # TODO(synk): if bit-level parity with exact-erf nn.GELU() is required, swap back
    # to an erf-based epilogue (error here is <~3e-3 abs, below bf16 matmul noise).
    return 0.5 * x * (1.0 + jnp.tanh(_GELU_C * (x + 0.044715 * (x * x * x))))


# ---------------------------------------------------------------------------
# Kernels
# ---------------------------------------------------------------------------

def _mlp_single_kernel(x_ref, w1_ref, b1_ref, w2_ref, b2_ref, o_ref):
    """Weights-resident path.  Grid: (M // tm,).  Full fused fc1 -> GELU -> fc2."""
    x = x_ref[...].astype(w1_ref.dtype)                       # cast to bf16 in-kernel
    h = jnp.dot(x, w1_ref[...], preferred_element_type=jnp.float32)
    h = _gelu_tanh(h + b1_ref[...])
    y = jnp.dot(h.astype(w2_ref.dtype), w2_ref[...],
                preferred_element_type=jnp.float32)
    o_ref[...] = (y + b2_ref[...]).astype(o_ref.dtype)


def _mlp_reduce_kernel(x_ref, w1_ref, b1_ref, w2_ref, b2_ref, o_ref, acc_ref):
    """Hidden-reduction path.  Grid: (M // tm, H // th); axis 1 is the reduction axis.

      y = sum_j  GELU(x @ W1[:, j] + b1[j]) @ W2[j, :]   + b2
    """
    j = pl.program_id(1)
    nj = pl.num_programs(1)

    @pl.when(j == 0)
    def _init():
        acc_ref[...] = jnp.zeros_like(acc_ref)

    x = x_ref[...].astype(w1_ref.dtype)                       # cast to bf16 in-kernel
    h = jnp.dot(x, w1_ref[...], preferred_element_type=jnp.float32)
    h = _gelu_tanh(h + b1_ref[...])
    part = jnp.dot(h.astype(w2_ref.dtype), w2_ref[...],
                   preferred_element_type=jnp.float32)

    @pl.when(j < nj - 1)
    def _accumulate():
        acc_ref[...] += part

    @pl.when(j == nj - 1)
    def _finalize():
        # Fold the last reduction step into the finalize: avoids one full (tm, Cout)
        # f32 accumulator store + reload per row tile.
        o_ref[...] = (acc_ref[...] + part + b2_ref[...]).astype(o_ref.dtype)


# ---------------------------------------------------------------------------
# Wrapper
# ---------------------------------------------------------------------------

def _round_up(a, b):
    return (a + b - 1) // b * b


def _pick_tile(dim, preferred, align):
    """Largest multiple of `align` that divides `dim` and is <= preferred.
    Returns `dim` itself when dim <= preferred (full-extent blocks are always legal),
    or None when no aligned divisor exists (caller pads)."""
    if dim <= preferred:
        return dim
    t = (min(preferred, dim) // align) * align
    while t >= align:
        if dim % t == 0:
            return t
        t -= align
    return None


def pallas_mlp(x, w1, b1, w2, b2, *, tm=512, th=1024,
               compute_dtype=jnp.bfloat16, mode="auto",
               vmem_limit_bytes=48 * 1024 * 1024):
    """Fused fc1 -> GELU -> fc2.  x: (..., C); w1: (C, H); b1: (H,); w2: (H, Cout); b2: (Cout,).

    mode: "auto" (pick based on VMEM fit), "single" (weights-resident), "reduce"
          (tiled hidden reduction).
    """
    orig_shape = x.shape
    C = orig_shape[-1]
    M = math.prod(orig_shape[:-1])
    H = w1.shape[1]
    Cout = w2.shape[1]

    # ---- row tile: align to 128 for packed bf16 sublanes / unmasked stores; pad M ----
    if M <= tm:
        tm_eff = M                                   # full-extent block: always legal
        m_pad = M
    else:
        align = 128 if tm >= 128 else 8
        tm_eff = max(align, (tm // align) * align)
        m_pad = _round_up(M, tm_eff)

    x2 = x.reshape(M, C)                             # dtype cast happens inside kernel
    if m_pad != M:
        x2 = jnp.pad(x2, ((0, m_pad - M), (0, 0)))

    w1c = w1.astype(compute_dtype)                   # no-op if weights persisted in bf16
    w2c = w2.astype(compute_dtype)
    b1f = b1.reshape(1, H).astype(jnp.float32)
    b2f = b2.reshape(1, Cout).astype(jnp.float32)

    xb = jnp.dtype(x.dtype).itemsize
    wb = jnp.dtype(compute_dtype).itemsize

    # VMEM estimate for the weights-resident path (pipeline double-buffers included).
    single_bytes = (2 * (C * H + H * Cout) * wb            # W1 + W2 buffers
                    + 2 * tm_eff * (C * xb + Cout * xb)    # x / out tiles
                    + tm_eff * H * 4                       # (tm, H) f32 hidden interm.
                    + 2 * (H + Cout) * 4)                  # biases
    use_single = (mode == "single") or (
        mode == "auto" and single_bytes <= int(0.75 * vmem_limit_bytes))

    cost = pl.CostEstimate(
        flops=int(2 * m_pad * H * (C + Cout)),
        transcendentals=int(m_pad * H),
        bytes_accessed=int(m_pad * C * xb + (C * H + H * Cout) * wb
                           + (H + Cout) * 4 + m_pad * Cout * xb))

    if use_single:
        out = pl.pallas_call(
            _mlp_single_kernel,
            out_shape=jax.ShapeDtypeStruct((m_pad, Cout), x.dtype),
            grid=(m_pad // tm_eff,),
            in_specs=[
                pl.BlockSpec((tm_eff, C), lambda i: (i, 0)),   # x rows
                pl.BlockSpec((C, H), lambda i: (0, 0)),        # W1 (resident)
                pl.BlockSpec((1, H), lambda i: (0, 0)),        # b1
                pl.BlockSpec((H, Cout), lambda i: (0, 0)),     # W2 (resident)
                pl.BlockSpec((1, Cout), lambda i: (0, 0)),     # b2
            ],
            out_specs=pl.BlockSpec((tm_eff, Cout), lambda i: (i, 0)),
            compiler_params=pltpu.CompilerParams(
                dimension_semantics=("parallel",),
                vmem_limit_bytes=vmem_limit_bytes),
            cost_estimate=cost,
        )(x2, w1c, b1f, w2c, b2f)
    else:
        # ---- hidden tile: prefer 256-aligned (v6e/v7x MXU width), else 128, else pad ----
        th_eff = _pick_tile(H, th, 256)
        if th_eff is None:
            th_eff = _pick_tile(H, th, 128)
        if th_eff is None:
            th_eff = max(128, (min(th, H) // 128) * 128)
            h_pad = _round_up(H, th_eff)
            # Zero-padded hidden units contribute exactly 0: gelu(0 + 0) = 0, 0 @ W2 = 0.
            w1c = jnp.pad(w1c, ((0, 0), (0, h_pad - H)))
            b1f = jnp.pad(b1f, ((0, 0), (0, h_pad - H)))
            w2c = jnp.pad(w2c, ((0, h_pad - H), (0, 0)))
            H = h_pad

        out = pl.pallas_call(
            _mlp_reduce_kernel,
            out_shape=jax.ShapeDtypeStruct((m_pad, Cout), x.dtype),
            grid=(m_pad // tm_eff, H // th_eff),
            in_specs=[
                pl.BlockSpec((tm_eff, C), lambda i, j: (i, 0)),   # x rows (full C)
                pl.BlockSpec((C, th_eff), lambda i, j: (0, j)),   # W1 hidden-column tile
                pl.BlockSpec((1, th_eff), lambda i, j: (0, j)),   # b1 tile
                pl.BlockSpec((th_eff, Cout), lambda i, j: (j, 0)),  # W2 hidden-row tile
                pl.BlockSpec((1, Cout), lambda i, j: (0, 0)),     # b2
            ],
            out_specs=pl.BlockSpec((tm_eff, Cout), lambda i, j: (i, 0)),
            scratch_shapes=[pltpu.VMEM((tm_eff, Cout), jnp.float32)],
            compiler_params=pltpu.CompilerParams(
                dimension_semantics=("parallel", "arbitrary"),
                vmem_limit_bytes=vmem_limit_bytes),
            cost_estimate=cost,
        )(x2, w1c, b1f, w2c, b2f)

    if m_pad != M:
        out = out[:M]
    return out.reshape(*orig_shape[:-1], Cout)


# Pure-JAX f32 reference (nn.Dropout(drop=0.0) is identity and is omitted).
def mlp_reference(x, w1, b1, w2, b2):
    h = x @ w1 + b1
    h = jax.nn.gelu(h, approximate=False)   # exact erf GELU (nn.GELU default)
    return h @ w2 + b2


# ---------------------------------------------------------------------------
# Main
# ---------------------------------------------------------------------------

if __name__ == "__main__":
    # Small shapes consistent with the module's forward.
    B, N = 2, 128
    in_features, hidden_features, out_features = 128, 512, 128

    key = jax.random.PRNGKey(0)
    kx, k1, k2, k3, k4 = jax.random.split(key, 5)
    x = jax.random.normal(kx, (B, N, in_features), jnp.float32)
    w1 = jax.random.normal(k1, (in_features, hidden_features), jnp.float32) * 0.02
    b1 = jax.random.normal(k2, (hidden_features,), jnp.float32) * 0.02
    w2 = jax.random.normal(k3, (hidden_features, out_features), jnp.float32) * 0.02
    b2 = jax.random.normal(k4, (out_features,), jnp.float32) * 0.02

    # Persist weights in bf16 once (removes per-call wrapper-side HBM cast passes).
    w1_bf = w1.astype(jnp.bfloat16)
    w2_bf = w2.astype(jnp.bfloat16)

    ref = mlp_reference(x, w1, b1, w2, b2)

    # Path 1: auto -> weights fit VMEM -> single fused pass (weights resident).
    out1 = pallas_mlp(x, w1_bf, b1, w2_bf, b2)
    jax.block_until_ready(out1)
    assert out1.shape == (B, N, out_features), out1.shape
    err1 = float(jnp.max(jnp.abs(out1 - ref)))
    assert err1 < 2e-2, f"single-pass path: max abs err vs f32 reference: {err1}"

    # Path 2: forced hidden-reduction path (exercises the tiled f32 accumulator, 2x2 grid).
    out2 = pallas_mlp(x, w1_bf, b1, w2_bf, b2, tm=128, th=256, mode="reduce")
    jax.block_until_ready(out2)
    assert out2.shape == (B, N, out_features), out2.shape
    err2 = float(jnp.max(jnp.abs(out2 - ref)))
    assert err2 < 2e-2, f"reduction path: max abs err vs f32 reference: {err2}"

    print("KERNEL_OK")
</pallas_src>

<mosaic_0001>
module attributes {stable_mosaic.version = 11 : i64} {
  func.func @_mlp_single_kernel(%arg0: i32, %arg1: memref<256x128xf32, #tpu.memory_space<vmem>>, %arg2: memref<128x512xbf16, #tpu.memory_space<vmem>>, %arg3: memref<1x512xf32, #tpu.memory_space<vmem>>, %arg4: memref<512x128xbf16, #tpu.memory_space<vmem>>, %arg5: memref<1x128xf32, #tpu.memory_space<vmem>>, %arg6: memref<256x128xf32, #tpu.memory_space<vmem>>) attributes {dimension_semantics = [#tpu.dimension_semantics<parallel>], iteration_bounds = array<i64: 1>, scalar_prefetch = 0 : i64, scratch_operands = 0 : i64, tpu.core_type = #tpu.core_type<tc>, window_params = [{transform_indices = @transform_0, window_bounds = array<i64: 256, 128>}, {pipeline_mode = #tpu.pipeline_mode<synchronous>, transform_indices = @transform_1, window_bounds = array<i64: 128, 512>}, {pipeline_mode = #tpu.pipeline_mode<synchronous>, transform_indices = @transform_2, window_bounds = array<i64: 1, 512>}, {pipeline_mode = #tpu.pipeline_mode<synchronous>, transform_indices = @transform_3, window_bounds = array<i64: 512, 128>}, {pipeline_mode = #tpu.pipeline_mode<synchronous>, transform_indices = @transform_4, window_bounds = array<i64: 1, 128>}, {transform_indices = @transform_5, window_bounds = array<i64: 256, 128>}]} {
    %c0 = arith.constant 0 : index
    %c0_0 = arith.constant 0 : index
    %0 = vector.load %arg1[%c0, %c0_0] : memref<256x128xf32, #tpu.memory_space<vmem>>, vector<256x128xf32>
    %1 = arith.truncf %0 : vector<256x128xf32> to vector<256x128xbf16>
    %c0_1 = arith.constant 0 : index
    %c0_2 = arith.constant 0 : index
    %2 = vector.load %arg2[%c0_1, %c0_2] : memref<128x512xbf16, #tpu.memory_space<vmem>>, vector<128x512xbf16>
    %cst = arith.constant dense<0.000000e+00> : vector<256x512xf32>
    %3 = tpu.matmul %1, %2, %cst {dimension_numbers = #tpu.dot_dimension_numbers<[1], [0], [0], [1], [0, 0, 1, 1], [], []>} : vector<256x128xbf16>, vector<128x512xbf16>, vector<256x512xf32> -> vector<256x512xf32>
    %c0_3 = arith.constant 0 : index
    %c0_4 = arith.constant 0 : index
    %4 = vector.load %arg3[%c0_3, %c0_4] : memref<1x512xf32, #tpu.memory_space<vmem>>, vector<1x512xf32>
    %5 = vector.broadcast %4 : vector<1x512xf32> to vector<256x512xf32>
    %6 = arith.addf %3, %5 : vector<256x512xf32>
    %cst_5 = arith.constant 5.000000e-01 : f32
    %7 = vector.broadcast %cst_5 : f32 to vector<256x512xf32>
    %8 = arith.mulf %7, %6 : vector<256x512xf32>
    %9 = arith.mulf %6, %6 : vector<256x512xf32>
    %10 = arith.mulf %9, %6 : vector<256x512xf32>
    %cst_6 = arith.constant 4.471500e-02 : f32
    %11 = vector.broadcast %cst_6 : f32 to vector<256x512xf32>
    %12 = arith.mulf %11, %10 : vector<256x512xf32>
    %13 = arith.addf %6, %12 : vector<256x512xf32>
    %cst_7 = arith.constant 0.797884583 : f32
    %14 = vector.broadcast %cst_7 : f32 to vector<256x512xf32>
    %15 = arith.mulf %14, %13 : vector<256x512xf32>
    %16 = math.tanh %15 : vector<256x512xf32>
    %cst_8 = arith.constant 1.000000e+00 : f32
    %17 = vector.broadcast %cst_8 : f32 to vector<256x512xf32>
    %18 = arith.addf %17, %16 : vector<256x512xf32>
    %19 = arith.mulf %8, %18 : vector<256x512xf32>
    %20 = arith.truncf %19 : vector<256x512xf32> to vector<256x512xbf16>
    %c0_9 = arith.constant 0 : index
    %c0_10 = arith.constant 0 : index
    %21 = vector.load %arg4[%c0_9, %c0_10] : memref<512x128xbf16, #tpu.memory_space<vmem>>, vector<512x128xbf16>
    %cst_11 = arith.constant dense<0.000000e+00> : vector<256x128xf32>
    %22 = tpu.matmul %20, %21, %cst_11 {dimension_numbers = #tpu.dot_dimension_numbers<[1], [0], [0], [1], [0, 0, 1, 1], [], []>} : vector<256x512xbf16>, vector<512x128xbf16>, vector<256x128xf32> -> vector<256x128xf32>
    %c0_12 = arith.constant 0 : index
    %c0_13 = arith.constant 0 : index
    %23 = vector.load %arg5[%c0_12, %c0_13] : memref<1x128xf32, #tpu.memory_space<vmem>>, vector<1x128xf32>
    %24 = vector.broadcast %23 : vector<1x128xf32> to vector<256x128xf32>
    %25 = arith.addf %22, %24 : vector<256x128xf32>
    %c0_14 = arith.constant 0 : index
    %c0_15 = arith.constant 0 : index
    %26 = vector.load %arg6[%c0_14, %c0_15] : memref<256x128xf32, #tpu.memory_space<vmem>>, vector<256x128xf32>
    tpu.vector_store %arg6[%c0_14, %c0_15], %25 {strides = array<i32>} : memref<256x128xf32, #tpu.memory_space<vmem>>, vector<256x128xf32>,
    return
  }
  func.func @transform_0(%arg0: i32) -> (i32, i32) {
    %c0_i32 = arith.constant 0 : i32
    %c0_i32_0 = arith.constant 0 : i32
    return %arg0, %c0_i32 : i32, i32
  }
  func.func @transform_1(%arg0: i32) -> (i32, i32) {
    %c0_i32 = arith.constant 0 : i32
    %c0_i32_0 = arith.constant 0 : i32
    %c0_i32_1 = arith.constant 0 : i32
    return %c0_i32, %c0_i32_0 : i32, i32
  }
  func.func @transform_2(%arg0: i32) -> (i32, i32) {
    %c0_i32 = arith.constant 0 : i32
    %c0_i32_0 = arith.constant 0 : i32
    %c0_i32_1 = arith.constant 0 : i32
    return %c0_i32, %c0_i32_0 : i32, i32
  }
  func.func @transform_3(%arg0: i32) -> (i32, i32) {
    %c0_i32 = arith.constant 0 : i32
    %c0_i32_0 = arith.constant 0 : i32
    %c0_i32_1 = arith.constant 0 : i32
    return %c0_i32, %c0_i32_0 : i32, i32
  }
  func.func @transform_4(%arg0: i32) -> (i32, i32) {
    %c0_i32 = arith.constant 0 : i32
    %c0_i32_0 = arith.constant 0 : i32
    %c0_i32_1 = arith.constant 0 : i32
    return %c0_i32, %c0_i32_0 : i32, i32
  }
  func.func @transform_5(%arg0: i32) -> (i32, i32) {
    %c0_i32 = arith.constant 0 : i32
    %c0_i32_0 = arith.constant 0 : i32
    return %arg0, %c0_i32 : i32, i32
  }
}

</mosaic_0001>

<bundles_post_ra>
// kernel: tpu_custom_call.1
= control target key start
LH: loop header
LB: loop body
LE: loop exit
PB: predicated region body
PF: predicated region fallthrough
CT: control target
= control target key end

     0   :  { %10 = vsyncpa [#allocation3], 0  ;;  %s4905_s0 = inlined_call_operand.hbm [shape: f32[256,128], index: 0, kind: input, shape index: {}]   ;;  %s4906_s1 = inlined_call_operand.hbm [shape: bf16[128,512], index: 1, kind: input, shape index: {}]   ;;  %s4907_s2 = inlined_call_operand.hbm [shape: f32[1,512], index: 2, kind: input, shape index: {}]   ;;  %s4908_s3 = inlined_call_operand.hbm [shape: bf16[512,128], index: 3, kind: input, shape index: {}]   ;;  %s4909_s4 = inlined_call_operand.vmem [shape: f32[1,128], index: 4, kind: input, shape index: {}]   ;;  %s4910_s5 = inlined_call_operand.hbm [shape: f32[256,128], index: 5, kind: output, shape index: {}]  }
   0x1   :  { %11 = vsyncpa [#allocation6], 0 }
   0x2   :  { %12 = vsyncpa [#allocation9], 0 }
   0x3   :  { %13 = vsyncpa [#allocation4], 0  ;;  %s3320_s18 = smov [#allocation5]  }
   0x4   :  { %s31_s19 = sshll.u32 %s3320_s18, 4  ;;  %s32_s19 = int_to_ptr.vmem [resolvable:$true] %s31_s19 }
   0x5   :  { %s3220_s20 = scalar_lea.vmem %s32_s19, 4096  ;;  %p3225_p1 = scmp.lt.s32.totalorder %s32_s19, %s32_s19 }
   0x6   :  { %p3221_p0 = scmp.ne.s32.totalorder %s32_s19, %s3220_s20  ;;  %p3226_p2 = scmp.lt.s32.totalorder %s3220_s20, %s3220_s20 }
   0x8   :  { %p3227_p3 = por %p3226_p2, %p3225_p1 }
   0xa   :  { %p3228_p4 = pnand %p3227_p3, %p3221_p0 }
   0xc   :  { %3231 = shalt.err (!%p3228_p4)
}
   0xd   :  { %s3321_s21 = smov 256   ;;  %s3322_s22 = smov 16  }
   0xe   :  { %37 = dma.hbm_to_vmem [thread:$0]  %s4906_s1, 4096, %s32_s19, [#allocation6], %s3321_s21, %s3321_s21, %s3322_s22  }
   0xf   :  { %s3323_s25 = smov [#allocation2]  }
  0x10   :  { %s19_s26 = sshll.u32 %s3323_s25, 4  ;;  %s20_s26 = int_to_ptr.vmem [resolvable:$true] %s19_s26 }
  0x11   :  { %s3240_s27 = scalar_lea.vmem %s20_s26, 4096  ;;  %p3245_p6 = scmp.lt.s32.totalorder %s20_s26, %s20_s26 }
  0x12   :  { %p3241_p5 = scmp.ne.s32.totalorder %s20_s26, %s3240_s27  ;;  %p3246_p7 = scmp.lt.s32.totalorder %s3240_s27, %s3240_s27 }
  0x14   :  { %p3247_p8 = por %p3246_p7, %p3245_p6 }
  0x16   :  { %p3248_p9 = pnand %p3247_p8, %p3241_p5 }
  0x18   :  { %3251 = shalt.err (!%p3248_p9)
}
  0x19   :  { %s3324_s28 = smov 128   ;;  %s3325_s29 = smov 8  }
  0x1a   :  { %25 = dma.hbm_to_vmem [thread:$0]  %s4905_s0, 4096, %s20_s26, [#allocation3], %s3324_s28, %s3324_s28, %s3325_s29  }
  0x1b   :  { %s3326_s1 = smov [#allocation7]   ;;  %s3327_s8 = smov [#allocation8]  }
  0x1c   :  { %s44_s7 = sshll.u32 %s3326_s1, 4  ;;  %s53_s9 = sshll.u32 %s3327_s8, 4  ;;  %s45_s7 = int_to_ptr.vmem [resolvable:$true] %s44_s7  ;;  %s54_s9 = int_to_ptr.vmem [resolvable:$true] %s53_s9 }
  0x1d   :  { %s3260_s10 = scalar_lea.vmem %s45_s7, 64  ;;  %p3265_p11 = scmp.lt.s32.totalorder %s45_s7, %s45_s7 }
  0x1e   :  { %p3261_p10 = scmp.ne.s32.totalorder %s45_s7, %s3260_s10  ;;  %p3266_p12 = scmp.lt.s32.totalorder %s3260_s10, %s3260_s10 }
  0x20   :  { %p3267_p13 = por %p3266_p12, %p3265_p11 }
  0x22   :  { %p3268_p0 = pnand %p3267_p13, %p3261_p10 }
  0x24   :  { %3271 = shalt.err (!%p3268_p0)
}
  0x25   :  { %47 = dma.hbm_to_vmem [thread:$0]  %s4907_s2, 64, %s45_s7, [#allocation6]  }
  0x26   :  { %s3280_s13 = scalar_lea.vmem %s54_s9, 4096  ;;  %p3285_p2 = scmp.lt.s32.totalorder %s54_s9, %s54_s9 }
  0x27   :  { %p3281_p1 = scmp.ne.s32.totalorder %s54_s9, %s3280_s13  ;;  %p3286_p3 = scmp.lt.s32.totalorder %s3280_s13, %s3280_s13 }
  0x29   :  { %p3287_p4 = por %p3286_p3, %p3285_p2 }
  0x2b   :  { %p3288_p5 = pnand %p3287_p4, %p3281_p1 }
  0x2d   :  { %3291 = shalt.err (!%p3288_p5)
}
  0x2e   :  { %s3328_s0 = smov 64   ;;  %s3329_s14 = smov 4  }
  0x2f   :  { %59 = dma.hbm_to_vmem [thread:$0]  %s4908_s3, 4096, %s54_s9, [#allocation9], %s3328_s0, %s3328_s0, %s3329_s14  }
  0x30   :  { %3312 = dma.done.wait [#allocation3], 4096  }
  0x31   :  { %3313 = vsyncadd [#allocation3], 4294963200 }
  0x32   :  { %3314 = dma.done.wait [#allocation6], 4160  }
  0x33   :  { %3315 = vsyncadd [#allocation6], 4294963136 }
  0x34   :  { %3316 = dma.done.wait [#allocation9], 4096  }
  0x35   :  { %3317 = vsyncadd [#allocation9], 4294963200  ;;  %v3330_v0 = vmov 0   ;;  %v2876_v1 = vld [vmem:[#allocation5 + $0xe4] ss:$16 sps:$4 sm:$0xff]   ;;  %v76_v34 = vld [vmem:[#allocation2 + $0x8] sm:$0xff] }
  0x36   :  { %369 = vmatprep.mubr.bf16.mxu0 %v3330_v0  ;;  %562 = vmatprep.mubr.bf16.mxu1 %v3330_v0  ;;  %v2878_v2 = vld [vmem:[#allocation5 + $0xec] ss:$16 sps:$4 sm:$0xff]   ;;  %v2880_v3 = vld [vmem:[#allocation5 + $0xe0] ss:$16 sps:$4 sm:$0xff]   ;;  %v2881_v4 = vld [vmem:[#allocation5 + $0xe8] ss:$16 sps:$4 sm:$0xff]  }
  0x37   :  { %337 = vmatprep.subr.bf16.mxu0 %v2876_v1  ;;  %530 = vmatprep.subr.bf16.mxu1 %v2878_v2  ;;  %v2882_v5 = vld [vmem:[#allocation5 + $0xc4] ss:$16 sps:$4 sm:$0xff]   ;;  %v2884_v6 = vld [vmem:[#allocation5 + $0xcc] ss:$16 sps:$4 sm:$0xff]   ;;  %v2886_v7 = vld [vmem:[#allocation5 + $0xc0] ss:$16 sps:$4 sm:$0xff]  }
  0x38   :  { %338 = vmatpush1.bf16.msra.mxu0 %v2880_v3  ;;  %531 = vmatpush1.bf16.msra.mxu1 %v2881_v4  ;;  %v2887_v8 = vld [vmem:[#allocation5 + $0xc8] ss:$16 sps:$4 sm:$0xff]   ;;  %v2888_v9 = vld [vmem:[#allocation5 + $0xa4] ss:$16 sps:$4 sm:$0xff]   ;;  %v2890_v10 = vld [vmem:[#allocation5 + $0xac] ss:$16 sps:$4 sm:$0xff]  }
  0x39   :  { %339 = vmatprep.subr.bf16.mxu0 %v2882_v5  ;;  %532 = vmatprep.subr.bf16.mxu1 %v2884_v6  ;;  %v2892_v11 = vld [vmem:[#allocation5 + $0xa0] ss:$16 sps:$4 sm:$0xff]   ;;  %v2893_v12 = vld [vmem:[#allocation5 + $0xa8] ss:$16 sps:$4 sm:$0xff]   ;;  %v2894_v13 = vld [vmem:[#allocation5 + $0x84] ss:$16 sps:$4 sm:$0xff]  }
  0x3a   :  { %v2896_v14 = vld [vmem:[#allocation5 + $0x8c] ss:$16 sps:$4 sm:$0xff]   ;;  %v2898_v15 = vld [vmem:[#allocation5 + $0x80] ss:$16 sps:$4 sm:$0xff]   ;;  %v2899_v16 = vld [vmem:[#allocation5 + $0x88] ss:$16 sps:$4 sm:$0xff]  }
  0x3b   :  { %v2900_v17 = vld [vmem:[#allocation5 + $0x64] ss:$16 sps:$4 sm:$0xff]   ;;  %v2902_v18 = vld [vmem:[#allocation5 + $0x6c] ss:$16 sps:$4 sm:$0xff]   ;;  %v2904_v19 = vld [vmem:[#allocation5 + $0x60] ss:$16 sps:$4 sm:$0xff]  }
  0x3c   :  { %340 = vmatpush1.bf16.msra.mxu0 %v2886_v7  ;;  %533 = vmatpush1.bf16.msra.mxu1 %v2887_v8  ;;  %v2905_v20 = vld [vmem:[#allocation5 + $0x68] ss:$16 sps:$4 sm:$0xff]   ;;  %v2906_v21 = vld [vmem:[#allocation5 + $0x44] ss:$16 sps:$4 sm:$0xff]   ;;  %v2908_v22 = vld [vmem:[#allocation5 + $0x4c] ss:$16 sps:$4 sm:$0xff]  }
  0x3d   :  { %341 = vmatprep.subr.bf16.mxu0 %v2888_v9  ;;  %534 = vmatprep.subr.bf16.mxu1 %v2890_v10  ;;  %v2910_v23 = vld [vmem:[#allocation5 + $0x40] ss:$16 sps:$4 sm:$0xff]   ;;  %v2911_v24 = vld [vmem:[#allocation5 + $0x48] ss:$16 sps:$4 sm:$0xff]   ;;  %v2912_v25 = vld [vmem:[#allocation5 + $0x24] ss:$16 sps:$4 sm:$0xff]  }
  0x3e   :  { %v2914_v26 = vld [vmem:[#allocation5 + $0x2c] ss:$16 sps:$4 sm:$0xff]   ;;  %v2916_v27 = vld [vmem:[#allocation5 + $0x20] ss:$16 sps:$4 sm:$0xff]   ;;  %v2917_v28 = vld [vmem:[#allocation5 + $0x28] ss:$16 sps:$4 sm:$0xff]  }
  0x3f   :  { %v2918_v29 = vld [vmem:[#allocation5 + $0x4] ss:$16 sps:$4 sm:$0xff]   ;;  %v2920_v30 = vld [vmem:[#allocation5 + $0xc] ss:$16 sps:$4 sm:$0xff]   ;;  %v2922_v31 = vld [vmem:[#allocation5] ss:$16 sps:$4 sm:$0xff]  }
  0x40   :  { %342 = vmatpush1.bf16.msra.mxu0 %v2892_v11  ;;  %535 = vmatpush1.bf16.msra.mxu1 %v2893_v12  ;;  %v2923_v32 = vld [vmem:[#allocation5 + $0x8] ss:$16 sps:$4 sm:$0xff]   ;;  %v75_v33 = vld [vmem:[#allocation2] sm:$0xff]  ;;  %v77_v40 = vld [vmem:[#allocation2 + $0x10] sm:$0xff] }
  0x41   :  { %343 = vmatprep.subr.bf16.mxu0 %v2894_v13  ;;  %536 = vmatprep.subr.bf16.mxu1 %v2896_v14  ;;  %v2924_v35 = vld [vmem:[#allocation8 + $0x78] sm:$0xff]   ;;  %v107_v36 = vpack.c.bf16 %v76_v34, %v75_v33  ;;  %v2928_v42 = vld [vmem:[#allocation8 + $0x70] sm:$0xff]   ;;  %v2932_v47 = vld [vmem:[#allocation8 + $0x68] sm:$0xff]  }
  0x42   :  { %v2925_v37 = vld [vmem:[#allocation8 + $0x38] sm:$0xff]   ;;  %v2929_v43 = vld [vmem:[#allocation8 + $0x30] sm:$0xff]   ;;  %v2933_v48 = vld [vmem:[#allocation8 + $0x28] sm:$0xff]  }
  0x43   :  { %v2926_v38 = vld [vmem:[#allocation8 + $0xf8] sm:$0xff]   ;;  %v2930_v44 = vld [vmem:[#allocation8 + $0xf0] sm:$0xff]   ;;  %v80_v50 = vld [vmem:[#allocation2 + $0x28] sm:$0xff] }
  0x44   :  { %344 = vmatpush1.bf16.msra.mxu0 %v2898_v15  ;;  %537 = vmatpush1.bf16.msra.mxu1 %v2899_v16  ;;  %v2927_v39 = vld [vmem:[#allocation8 + $0xb8] sm:$0xff]   ;;  %v2931_v46 = vld [vmem:[#allocation8 + $0xb0] sm:$0xff]   ;;  %v2934_v51 = vld [vmem:[#allocation8 + $0xe8] sm:$0xff]  }
  0x45   :  { %345 = vmatprep.subr.bf16.mxu0 %v2900_v17  ;;  %538 = vmatprep.subr.bf16.mxu1 %v2902_v18  ;;  %v78_v41 = vld [vmem:[#allocation2 + $0x18] sm:$0xff]  ;;  %v79_v49 = vld [vmem:[#allocation2 + $0x20] sm:$0xff]  ;;  %v2935_v52 = vld [vmem:[#allocation8 + $0xa8] sm:$0xff]  }
  0x46   :  { %v108_v45 = vpack.c.bf16 %v78_v41, %v77_v40  ;;  %v2936_v53 = vld [vmem:[#allocation8 + $0x60] sm:$0xff]   ;;  %v109_v56 = vpack.c.bf16 %v80_v50, %v79_v49  ;;  %v2940_v58 = vld [vmem:[#allocation8 + $0x58] sm:$0xff]   ;;  %v81_v60 = vld [vmem:[#allocation2 + $0x30] sm:$0xff]  ;;  %v157_v50 = vlaneseq }
  0x47   :  { %v2937_v54 = vld [vmem:[#allocation8 + $0x20] sm:$0xff]   ;;  %v2941_v59 = vld [vmem:[#allocation8 + $0x18] sm:$0xff]   ;;  %v2944_v1 = vld [vmem:[#allocation8 + $0x50] sm:$0xff]  }
  0x48   :  { %346 = vmatpush1.bf16.msra.mxu0 %v2904_v19  ;;  %539 = vmatpush1.bf16.msra.mxu1 %v2905_v20  ;;  %v2938_v55 = vld [vmem:[#allocation8 + $0xe0] sm:$0xff]   ;;  %v82_v61 = vld [vmem:[#allocation2 + $0x38] sm:$0xff]  ;;  %v85_v9 = vld [vmem:[#allocation2 + $0x50] sm:$0xff] }
  0x49   :  { %347 = vmatprep.subr.bf16.mxu0 %v2906_v21  ;;  %540 = vmatprep.subr.bf16.mxu1 %v2908_v22  ;;  %v2939_v57 = vld [vmem:[#allocation8 + $0xa0] sm:$0xff]   ;;  %v2942_v62 = vld [vmem:[#allocation8 + $0xd8] sm:$0xff]   ;;  %v2945_v2 = vld [vmem:[#allocation8 + $0x10] sm:$0xff]   ;;  %v110_v4 = vpack.c.bf16 %v82_v61, %v81_v60 }
  0x4a   :  { %v2943_v63 = vld [vmem:[#allocation8 + $0x98] sm:$0xff]   ;;  %v2946_v3 = vld [vmem:[#allocation8 + $0xd0] sm:$0xff]   ;;  %v84_v7 = vld [vmem:[#allocation2 + $0x48] sm:$0xff] }
  0x4b   :  { %v2947_v5 = vld [vmem:[#allocation8 + $0x90] sm:$0xff]   ;;  %v83_v6 = vld [vmem:[#allocation2 + $0x40] sm:$0xff]  ;;  %v88_v13 = vld [vmem:[#allocation2 + $0x68] sm:$0xff] }
  0x4c   :  { %348 = vmatpush1.bf16.msra.mxu0 %v2910_v23  ;;  %541 = vmatpush1.bf16.msra.mxu1 %v2911_v24  ;;  %v111_v8 = vpack.c.bf16 %v84_v7, %v83_v6  ;;  %v86_v10 = vld [vmem:[#allocation2 + $0x58] sm:$0xff]  ;;  %v87_v12 = vld [vmem:[#allocation2 + $0x60] sm:$0xff]  ;;  %v89_v15 = vld [vmem:[#allocation2 + $0x70] sm:$0xff] }
  0x4d   :  { %349 = vmatprep.subr.bf16.mxu0 %v2912_v25  ;;  %542 = vmatprep.subr.bf16.mxu1 %v2914_v26  ;;  %v112_v11 = vpack.c.bf16 %v86_v10, %v85_v9  ;;  %v113_v14 = vpack.c.bf16 %v88_v13, %v87_v12  ;;  %v90_v16 = vld [vmem:[#allocation2 + $0x78] sm:$0xff]  ;;  %v91_v18 = vld [vmem:[#allocation2 + $0x80] sm:$0xff]  ;;  %v92_v19 = vld [vmem:[#allocation2 + $0x88] sm:$0xff] }
  0x4e   :  { %v114_v17 = vpack.c.bf16 %v90_v16, %v89_v15  ;;  %v115_v20 = vpack.c.bf16 %v92_v19, %v91_v18  ;;  %v93_v21 = vld [vmem:[#allocation2 + $0x90] sm:$0xff]  ;;  %v94_v22 = vld [vmem:[#allocation2 + $0x98] sm:$0xff]  ;;  %v95_v24 = vld [vmem:[#allocation2 + $0xa0] sm:$0xff] }
  0x4f   :  { %v116_v23 = vpack.c.bf16 %v94_v22, %v93_v21  ;;  %v96_v25 = vld [vmem:[#allocation2 + $0xa8] sm:$0xff]  ;;  %v101_v33 = vld [vmem:[#allocation2 + $0xd0] sm:$0xff]  ;;  %v102_v34 = vld [vmem:[#allocation2 + $0xd8] sm:$0xff] }
  0x50   :  { %350 = vmatpush1.bf16.msra.mxu0 %v2916_v27  ;;  %543 = vmatpush1.bf16.msra.mxu1 %v2917_v28  ;;  %v117_v26 = vpack.c.bf16 %v96_v25, %v95_v24  ;;  %v97_v27 = vld [vmem:[#allocation2 + $0xb0] sm:$0xff]  ;;  %v98_v28 = vld [vmem:[#allocation2 + $0xb8] sm:$0xff]  ;;  %v103_v40 = vld [vmem:[#allocation2 + $0xe0] sm:$0xff] }
  0x51   :  { %351 = vmatprep.subr.bf16.mxu0 %v2918_v29  ;;  %544 = vmatprep.subr.bf16.mxu1 %v2920_v30  ;;  %v118_v29 = vpack.c.bf16 %v98_v28, %v97_v27  ;;  %v99_v30 = vld [vmem:[#allocation2 + $0xc0] sm:$0xff]  ;;  %v104_v41 = vld [vmem:[#allocation2 + $0xe8] sm:$0xff] }
  0x52   :  { %v2955_v49 = vld [vmem:[#allocation8 + $0x80] sm:$0xff]  }
  0x54   :  { %352 = vmatpush1.bf16.msra.mxu0 %v2922_v31  ;;  %545 = vmatpush1.bf16.msra.mxu1 %v2923_v32  ;;  %v100_v31 = vld [vmem:[#allocation2 + $0xc8] sm:$0xff] }
  0x55   :  { %2640 = vmatprep.subr.bf16.mxu0 %v2924_v35  ;;  %2752 = vmatprep.subr.bf16.mxu1 %v2926_v38  ;;  %v119_v32 = vpack.c.bf16 %v100_v31, %v99_v30  ;;  %v2948_v35 = vld [vmem:[#allocation8 + $0x48] sm:$0xff]  }
  0x56   :  { %v2951_v38 = vld [vmem:[#allocation8 + $0x88] sm:$0xff]  }
  0x57   :  { %370 = vmatmul.mubr.bf16.vlgmr.msra.gmra.mxu0 %v107_v36  ;;  %563 = vmatmul.mubr.bf16.vlgmr.msra.gmra.mxu1 %v107_v36  ;;  %v2949_v36 = vld [vmem:[#allocation8 + $0x8] sm:$0xff]  }
  0x58   :  { %379 = vmatprep.mubr.bf16.mxu0 %v3330_v0  ;;  %572 = vmatprep.mubr.bf16.mxu1 %v3330_v0 }
  0x59   :  { %2641 = vmatpush3.bf16.msra.mxu0 %v2925_v37  ;;  %2753 = vmatpush3.bf16.msra.mxu1 %v2927_v39  ;;  %v2950_v37 = vld [vmem:[#allocation8 + $0xc8] sm:$0xff]   ;;  %v120_v39 = vpack.c.bf16 %v102_v34, %v101_v33 }
  0x5a   :  { %2642 = vmatprep.subr.bf16.mxu0 %v2928_v42  ;;  %2754 = vmatprep.subr.bf16.mxu1 %v2930_v44  ;;  %v121_v42 = vpack.c.bf16 %v104_v41, %v103_v40  ;;  %v106_v44 = vld [vmem:[#allocation2 + $0xf8] sm:$0xff] }
  0x5d   :  { %2643 = vmatpush3.bf16.msra.mxu0 %v2929_v43  ;;  %2755 = vmatpush3.bf16.msra.mxu1 %v2931_v46  ;;  %v105_v43 = vld [vmem:[#allocation2 + $0xf0] sm:$0xff] }
  0x5e   :  { %2644 = vmatprep.subr.bf16.mxu0 %v2932_v47  ;;  %2756 = vmatprep.subr.bf16.mxu1 %v2934_v51  ;;  %v122_v46 = vpack.c.bf16 %v106_v44, %v105_v43  ;;  %v2954_v47 = vld [vmem:[#allocation8 + $0xc0] sm:$0xff]   ;;  %v158_v51 = vshrl.u32 %v157_v50, 7 }
  0x5f   :  { %380 = vmatmul.mubr.bf16.gmra.mxu0 %v108_v45  ;;  %573 = vmatmul.mubr.bf16.gmra.mxu1 %v108_v45  ;;  %v2952_v45 = vld [vmem:[#allocation8 + $0x40] sm:$0xff]  }
  0x60   :  { %389 = vmatprep.mubr.bf16.mxu0 %v3330_v0  ;;  %582 = vmatprep.mubr.bf16.mxu1 %v3330_v0 }
  0x61   :  { %2645 = vmatpush3.bf16.msra.mxu0 %v2933_v48  ;;  %2757 = vmatpush3.bf16.msra.mxu1 %v2935_v52  ;;  %v2953_v48 = vld [vmem:[#allocation8] sm:$0xff]   ;;  %v159_v52 = vsub.s32 0, %v158_v51 }
  0x62   :  { %2646 = vmatprep.subr.bf16.mxu0 %v2936_v53  ;;  %2758 = vmatprep.subr.bf16.mxu1 %v2938_v55  ;;  %v167_v53 = vsub.s32 2, %v158_v51  ;;  %v163_v55 = vsub.s32 1, %v158_v51 }
  0x65   :  { %2647 = vmatpush3.bf16.msra.mxu0 %v2937_v54  ;;  %2759 = vmatpush3.bf16.msra.mxu1 %v2939_v57  ;;  %v155_v54 = vld [vmem:[#allocation7] sm:$0xf] }
  0x66   :  { %2648 = vmatprep.subr.bf16.mxu0 %v2940_v58  ;;  %2760 = vmatprep.subr.bf16.mxu1 %v2942_v62  ;;  %v3411_v57 = vrot.slane %v155_v54, %v167_v53  ;;  %v3413_v60 = vrot.slane %v155_v54, %v163_v55 }
  0x67   :  { %390 = vmatmul.mubr.bf16.gmra.mxu0 %v109_v56  ;;  %583 = vmatmul.mubr.bf16.gmra.mxu1 %v109_v56  ;;  %v3409_v56 = vrot.slane %v155_v54, %v159_v52 }
  0x68   :  { %399 = vmatprep.mubr.bf16.mxu0 %v3330_v0  ;;  %592 = vmatprep.mubr.bf16.mxu1 %v3330_v0 }
  0x69   :  { %2649 = vmatpush3.bf16.msra.mxu0 %v2941_v59  ;;  %2761 = vmatpush3.bf16.msra.mxu1 %v2943_v63 }
  0x6a   :  { %2650 = vmatprep.subr.bf16.mxu0 %v2944_v1  ;;  %2762 = vmatprep.subr.bf16.mxu1 %v2946_v3 }
  0x6d   :  { %2651 = vmatpush3.bf16.msra.mxu0 %v2945_v2  ;;  %2763 = vmatpush3.bf16.msra.mxu1 %v2947_v5 }
  0x6e   :  { %2652 = vmatprep.subr.bf16.mxu0 %v2948_v35  ;;  %2764 = vmatprep.subr.bf16.mxu1 %v2950_v37 }
  0x6f   :  { %400 = vmatmul.mubr.bf16.gmra.mxu0 %v110_v4  ;;  %593 = vmatmul.mubr.bf16.gmra.mxu1 %v110_v4 }
  0x70   :  { %409 = vmatprep.mubr.bf16.mxu0 %v3330_v0  ;;  %602 = vmatprep.mubr.bf16.mxu1 %v3330_v0 }
  0x71   :  { %2653 = vmatpush3.bf16.msra.mxu0 %v2949_v36  ;;  %2765 = vmatpush3.bf16.msra.mxu1 %v2951_v38 }
  0x72   :  { %2654 = vmatprep.subr.bf16.mxu0 %v2952_v45  ;;  %2766 = vmatprep.subr.bf16.mxu1 %v2954_v47 }
  0x75   :  { %2655 = vmatpush3.bf16.msra.mxu0 %v2953_v48  ;;  %2767 = vmatpush3.bf16.msra.mxu1 %v2955_v49 }
  0x77   :  { %410 = vmatmul.mubr.bf16.gmra.mxu0 %v111_v8  ;;  %603 = vmatmul.mubr.bf16.gmra.mxu1 %v111_v8 }
  0x78   :  { %419 = vmatprep.mubr.bf16.mxu0 %v3330_v0  ;;  %612 = vmatprep.mubr.bf16.mxu1 %v3330_v0 }
  0x7f   :  { %420 = vmatmul.mubr.bf16.gmra.mxu0 %v112_v11  ;;  %613 = vmatmul.mubr.bf16.gmra.mxu1 %v112_v11 }
  0x80   :  { %429 = vmatprep.mubr.bf16.mxu0 %v3330_v0  ;;  %622 = vmatprep.mubr.bf16.mxu1 %v3330_v0 }
  0x87   :  { %430 = vmatmul.mubr.bf16.gmra.mxu0 %v113_v14  ;;  %623 = vmatmul.mubr.bf16.gmra.mxu1 %v113_v14 }
  0x88   :  { %439 = vmatprep.mubr.bf16.mxu0 %v3330_v0  ;;  %632 = vmatprep.mubr.bf16.mxu1 %v3330_v0 }
  0x8f   :  { %440 = vmatmul.mubr.bf16.gmra.mxu0 %v114_v17  ;;  %633 = vmatmul.mubr.bf16.gmra.mxu1 %v114_v17 }
  0x90   :  { %449 = vmatprep.mubr.bf16.mxu0 %v3330_v0  ;;  %642 = vmatprep.mubr.bf16.mxu1 %v3330_v0 }
  0x97   :  { %450 = vmatmul.mubr.bf16.gmra.mxu0 %v115_v20  ;;  %643 = vmatmul.mubr.bf16.gmra.mxu1 %v115_v20 }
  0x98   :  { %459 = vmatprep.mubr.bf16.mxu0 %v3330_v0  ;;  %652 = vmatprep.mubr.bf16.mxu1 %v3330_v0 }
  0x9f   :  { %460 = vmatmul.mubr.bf16.gmra.mxu0 %v116_v23  ;;  %653 = vmatmul.mubr.bf16.gmra.mxu1 %v116_v23 }
  0xa0   :  { %469 = vmatprep.mubr.bf16.mxu0 %v3330_v0  ;;  %662 = vmatprep.mubr.bf16.mxu1 %v3330_v0 }
  0xa7   :  { %470 = vmatmul.mubr.bf16.gmra.mxu0 %v117_v26  ;;  %663 = vmatmul.mubr.bf16.gmra.mxu1 %v117_v26 }
  0xa8   :  { %479 = vmatprep.mubr.bf16.mxu0 %v3330_v0  ;;  %672 = vmatprep.mubr.bf16.mxu1 %v3330_v0 }
  0xaf   :  { %480 = vmatmul.mubr.bf16.gmra.mxu0 %v118_v29  ;;  %673 = vmatmul.mubr.bf16.gmra.mxu1 %v118_v29 }
  0xb0   :  { %489 = vmatprep.mubr.bf16.mxu0 %v3330_v0  ;;  %682 = vmatprep.mubr.bf16.mxu1 %v3330_v0 }
  0xb7   :  { %490 = vmatmul.mubr.bf16.gmra.mxu0 %v119_v32  ;;  %683 = vmatmul.mubr.bf16.gmra.mxu1 %v119_v32 }
  0xb8   :  { %499 = vmatprep.mubr.bf16.mxu0 %v3330_v0  ;;  %692 = vmatprep.mubr.bf16.mxu1 %v3330_v0 }
  0xbf   :  { %500 = vmatmul.mubr.bf16.gmra.mxu0 %v120_v39  ;;  %693 = vmatmul.mubr.bf16.gmra.mxu1 %v120_v39 }
  0xc0   :  { %509 = vmatprep.mubr.bf16.mxu0 %v3330_v0  ;;  %702 = vmatprep.mubr.bf16.mxu1 %v3330_v0 }
  0xc7   :  { %510 = vmatmul.mubr.bf16.gmra.mxu0 %v121_v42  ;;  %703 = vmatmul.mubr.bf16.gmra.mxu1 %v121_v42 }
  0xc8   :  { %519 = vmatprep.mubr.bf16.mxu0 %v3330_v0  ;;  %712 = vmatprep.mubr.bf16.mxu1 %v3330_v0  ;;  %v171_v0 = vsub.s32 3, %v158_v51 }
  0xca   :  { %v3415_v61 = vrot.slane %v155_v54, %v171_v0 }
  0xcf   :  { %520 = vmatmul.mubr.bf16.gmra.mxu0 %v122_v46  ;;  %713 = vmatmul.mubr.bf16.gmra.mxu1 %v122_v46 }
 0x117   :  { %v371_v58 = vpop.f32.mrf.mxu0  ;;  %v564_v59 = vpop.f32.mrf.mxu1 }
 0x118   :  { %v372_v62 = vadd.f32 %v371_v58, %v3409_v56  ;;  %v565_v63 = vadd.f32 %v564_v59, %v3411_v57 }
 0x119   :  { %v373_v1 = vpop.f32.mrf.mxu0  ;;  %v566_v2 = vpop.f32.mrf.mxu1 }
 0x11a   :  { %v851_v3 = vmul.f32 %v372_v62, %v372_v62  ;;  %v853_v4 = vmul.f32 %v565_v63, %v565_v63  ;;  %v3419_v5 = vmul.f32 0.5, %v372_v62  ;;  %v3421_v6 = vmul.f32 0.5, %v565_v63 }
 0x11b   :  { %v374_v7 = vadd.f32 %v373_v1, %v3413_v60  ;;  %v567_v8 = vadd.f32 %v566_v2, %v3415_v61  ;;  %v375_v9 = vpop.f32.mrf.mxu0  ;;  %v568_v10 = vpop.f32.mrf.mxu1 }
 0x11c   :  { %v979_v11 = vmul.f32 %v851_v3, %v372_v62  ;;  %v981_v12 = vmul.f32 %v853_v4, %v565_v63  ;;  %v376_v13 = vadd.f32 %v375_v9, %v3409_v56  ;;  %v569_v14 = vadd.f32 %v568_v10, %v3411_v57 }
 0x11d   :  { %v852_v15 = vmul.f32 %v374_v7, %v374_v7  ;;  %v854_v16 = vmul.f32 %v567_v8, %v567_v8  ;;  %v377_v17 = vpop.f32.mrf.mxu0  ;;  %v570_v18 = vpop.f32.mrf.mxu1  ;;  %v3427_v19 = vmul.f32 0.5, %v374_v7  ;;  %v3429_v20 = vmul.f32 0.5, %v567_v8 }
 0x11e   :  { %v1107_v21 = vmul.f32 0.044715, %v979_v11  ;;  %v1109_v22 = vmul.f32 0.044715, %v981_v12  ;;  %v3431_v23 = vmul.f32 0.5, %v376_v13  ;;  %v855_v24 = vmul.f32 %v376_v13, %v376_v13 }
 0x11f   :  { %v980_v25 = vmul.f32 %v852_v15, %v374_v7  ;;  %v982_v26 = vmul.f32 %v854_v16, %v567_v8  ;;  %v3433_v27 = vmul.f32 0.5, %v569_v14  ;;  %v857_v28 = vmul.f32 %v569_v14, %v569_v14  ;;  %v381_v29 = vpop.f32.mrf.mxu0  ;;  %v574_v30 = vpop.f32.mrf.mxu1 }
 0x120   :  { %v1235_v31 = vadd.f32 %v1107_v21, %v372_v62  ;;  %v1237_v32 = vadd.f32 %v1109_v22, %v565_v63  ;;  %v983_v33 = vmul.f32 %v855_v24, %v376_v13  ;;  %v3436_v34 = vadd.f32 %v377_v17, %v3413_v60 }
 0x121   :  { %v1108_v35 = vmul.f32 0.044715, %v980_v25  ;;  %v1110_v36 = vmul.f32 0.044715, %v982_v26  ;;  %v985_v37 = vmul.f32 %v857_v28, %v569_v14  ;;  %v3439_v38 = vadd.f32 %v570_v18, %v3415_v61  ;;  %v383_v39 = vpop.f32.mrf.mxu0  ;;  %v576_v40 = vpop.f32.mrf.mxu1 }
 0x122   :  { %v1363_v41 = vmul.f32 0.7978846, %v1235_v31  ;;  %v1365_v42 = vmul.f32 0.7978846, %v1237_v32  ;;  %v1111_v43 = vmul.f32 0.044715, %v983_v33  ;;  %v856_v44 = vmul.f32 %v3436_v34, %v3436_v34 }
 0x123   :  { %v1236_v45 = vadd.f32 %v1108_v35, %v374_v7  ;;  %v1238_v46 = vadd.f32 %v1110_v36, %v567_v8  ;;  %v1113_v47 = vmul.f32 0.044715, %v985_v37  ;;  %v858_v48 = vmul.f32 %v3439_v38, %v3439_v38  ;;  %v385_v49 = vpop.f32.mrf.mxu0  ;;  %v578_v50 = vpop.f32.mrf.mxu1 }
 0x124   :  { %2956 = vtanh.f32 %v1363_v41  ;;  %v1239_v51 = vadd.f32 %v1111_v43, %v376_v13  ;;  %v984_v52 = vmul.f32 %v856_v44, %v3436_v34  ;;  %v3447_v53 = vadd.f32 %v381_v29, %v3409_v56 }
 0x125   :  { %2958 = vtanh.f32 %v1365_v42  ;;  %v1364_v54 = vmul.f32 0.7978846, %v1236_v45  ;;  %v1366_v55 = vmul.f32 0.7978846, %v1238_v46  ;;  %v1241_v0 = vadd.f32 %v1113_v47, %v569_v14  ;;  %v387_v1 = vpop.f32.mrf.mxu0  ;;  %v580_v7 = vpop.f32.mrf.mxu1 }
 0x126   :  { %v1367_v58 = vmul.f32 0.7978846, %v1239_v51  ;;  %v1112_v59 = vmul.f32 0.044715, %v984_v52  ;;  %v986_v62 = vmul.f32 %v858_v48, %v3439_v38  ;;  %v859_v63 = vmul.f32 %v3447_v53, %v3447_v53 }
 0x127   :  { %2960 = vtanh.f32 %v1364_v54  ;;  %v1369_v2 = vmul.f32 0.7978846, %v1241_v0  ;;  %v3453_v3 = vadd.f32 %v574_v30, %v3411_v57  ;;  %v3456_v4 = vadd.f32 %v383_v39, %v3413_v60  ;;  %v391_v17 = vpop.f32.mrf.mxu0  ;;  %v584_v25 = vpop.f32.mrf.mxu1 }
 0x128   :  { %2962 = vtanh.f32 %v1366_v55  ;;  %v1240_v8 = vadd.f32 %v1112_v59, %v3436_v34  ;;  %v1114_v9 = vmul.f32 0.044715, %v986_v62  ;;  %v987_v10 = vmul.f32 %v859_v63, %v3447_v53 }
 0x129   :  { %2964 = vtanh.f32 %v1367_v58  ;;  %v861_v11 = vmul.f32 %v3453_v3, %v3453_v3  ;;  %v860_v12 = vmul.f32 %v3456_v4, %v3456_v4  ;;  %v3465_v13 = vadd.f32 %v576_v40, %v3415_v61  ;;  %v393_v39 = vpop.f32.mrf.mxu0  ;;  %v586_v44 = vpop.f32.mrf.mxu1 }
 0x12a   :  { %2966 = vtanh.f32 %v1369_v2  ;;  %v1368_v14 = vmul.f32 0.7978846, %v1240_v8  ;;  %v1242_v15 = vadd.f32 %v1114_v9, %v3439_v38  ;;  %v1115_v16 = vmul.f32 0.044715, %v987_v10 }
 0x12b   :  { %v989_v18 = vmul.f32 %v861_v11, %v3453_v3  ;;  %v988_v21 = vmul.f32 %v860_v12, %v3456_v4  ;;  %v862_v22 = vmul.f32 %v3465_v13, %v3465_v13  ;;  %v3473_v24 = vadd.f32 %v385_v49, %v3409_v56  ;;  %v395_v62 = vpop.f32.mrf.mxu0 }
 0x12c   :  { %2968 = vtanh.f32 %v1368_v14  ;;  %v1370_v26 = vmul.f32 0.7978846, %v1242_v15  ;;  %v1243_v28 = vadd.f32 %v1115_v16, %v3447_v53  ;;  %v3477_v29 = vadd.f32 %v578_v50, %v3411_v57 }
 0x12d   :  { %v1117_v30 = vmul.f32 0.044715, %v989_v18  ;;  %v1116_v31 = vmul.f32 0.044715, %v988_v21  ;;  %v990_v32 = vmul.f32 %v862_v22, %v3465_v13  ;;  %v863_v33 = vmul.f32 %v3473_v24, %v3473_v24 }
 0x12e   :  { %2970 = vtanh.f32 %v1370_v26  ;;  %v1371_v35 = vmul.f32 0.7978846, %v1243_v28  ;;  %v865_v36 = vmul.f32 %v3477_v29, %v3477_v29  ;;  %v3485_v37 = vadd.f32 %v387_v1, %v3413_v60  ;;  %v397_v28 = vpop.f32.mrf.mxu0 }
 0x12f   :  { %v1245_v40 = vadd.f32 %v1117_v30, %v3453_v3  ;;  %v1244_v41 = vadd.f32 %v1116_v31, %v3456_v4  ;;  %v1118_v42 = vmul.f32 0.044715, %v990_v32  ;;  %v991_v43 = vmul.f32 %v863_v33, %v3473_v24 }
 0x130   :  { %2972 = vtanh.f32 %v1371_v35  ;;  %v993_v45 = vmul.f32 %v865_v36, %v3477_v29  ;;  %v864_v46 = vmul.f32 %v3485_v37, %v3485_v37  ;;  %v3494_v47 = vadd.f32 %v580_v7, %v3415_v61  ;;  %v588_v7 = vpop.f32.mrf.mxu1 }
 0x131   :  { %v2957_v48 = vpop.eup %2956  ;;  %v1373_v49 = vmul.f32 0.7978846, %v1245_v40  ;;  %v1372_v50 = vmul.f32 0.7978846, %v1244_v41  ;;  %v1246_v51 = vadd.f32 %v1118_v42, %v3465_v13  ;;  %v1119_v52 = vmul.f32 0.044715, %v991_v43 }
 0x132   :  { %v2959_v54 = vpop.eup %2958  ;;  %v1619_v55 = vadd.f32 1.0, %v2957_v48  ;;  %v1121_v0 = vmul.f32 0.044715, %v993_v45  ;;  %v992_v58 = vmul.f32 %v864_v46, %v3485_v37  ;;  %v866_v59 = vmul.f32 %v3494_v47, %v3494_v47  ;;  %v590_v33 = vpop.f32.mrf.mxu1 }
 0x133   :  { %v1621_v63 = vadd.f32 1.0, %v2959_v54  ;;  %2974 = vtanh.f32 %v1373_v49  ;;  %v1374_v1 = vmul.f32 0.7978846, %v1246_v51  ;;  %v1247_v2 = vadd.f32 %v1119_v52, %v3473_v24  ;;  %v401_v48 = vpop.f32.mrf.mxu0 }
 0x134   :  { %v3501_v8 = vpop.eup %2960  ;;  %v3504_v9 = vmul.f32 %v1619_v55, %v3419_v5  ;;  %2976 = vtanh.f32 %v1372_v50  ;;  %v1249_v10 = vadd.f32 %v1121_v0, %v3477_v29  ;;  %v1120_v11 = vmul.f32 0.044715, %v992_v58  ;;  %v594_v54 = vpop.f32.mrf.mxu1 }
 0x135   :  { %v3507_v12 = vpop.eup %2962  ;;  %v3510_v14 = vmul.f32 %v1621_v63, %v3421_v6  ;;  %2978 = vtanh.f32 %v1374_v1  ;;  %v1375_v15 = vmul.f32 0.7978846, %v1247_v2  ;;  %v994_v16 = vmul.f32 %v866_v59, %v3494_v47 }
 0x136   :  { %v2965_v18 = vpop.eup %2964  ;;  %v1377_v21 = vmul.f32 0.7978846, %v1249_v10  ;;  %v1248_v22 = vadd.f32 %v1120_v11, %v3485_v37  ;;  %v3515_v5 = vadd.f32 %v391_v17, %v3409_v56  ;;  %v3518_v26 = vadd.f32 %v584_v25, %v3411_v57  ;;  %v403_v11 = vpop.f32.mrf.mxu0 }
 0x137   :  { %v2967_v30 = vpop.eup %2966  ;;  %v1623_v31 = vadd.f32 1.0, %v2965_v18  ;;  %2980 = vtanh.f32 %v1375_v15  ;;  %v1122_v6 = vmul.f32 0.044715, %v994_v16  ;;  %v3521_v32 = vadd.f32 %v393_v39, %v3413_v60 }
 0x138   :  { %4973 = vst [vmem:[#allocation15_spill] sm:$0xff] %v3515_v5  ;;  %4974 = vst [vmem:[#allocation16_spill] sm:$0xff] %v3518_v26  ;;  %v1625_v35 = vadd.f32 1.0, %v2967_v30  ;;  %2982 = vtanh.f32 %v1377_v21  ;;  %v1376_v36 = vmul.f32 0.7978846, %v1248_v22  ;;  %v867_v40 = vmul.f32 %v3515_v5, %v3515_v5  ;;  %v596_v22 = vpop.f32.mrf.mxu1 }
 0x139   :  { %v3525_v17 = vpop.eup %2968  ;;  %v3528_v25 = vmul.f32 %v1623_v31, %v3431_v23  ;;  %v1250_v41 = vadd.f32 %v1122_v6, %v3494_v47  ;;  %v869_v42 = vmul.f32 %v3518_v26, %v3518_v26  ;;  %v868_v39 = vmul.f32 %v3521_v32, %v3521_v32 }
 0x13a   :  { %v3536_v43 = vmul.f32 %v1625_v35, %v3433_v27  ;;  %2984 = vtanh.f32 %v1376_v36  ;;  %v995_v45 = vmul.f32 %v867_v40, %v3515_v5  ;;  %v3540_v46 = vadd.f32 %v586_v44, %v3415_v61 }
 0x13b   :  { %v3542_v23 = vpop.eup %2970  ;;  %v1378_v49 = vmul.f32 0.7978846, %v1250_v41  ;;  %v997_v50 = vmul.f32 %v869_v42, %v3518_v26  ;;  %v996_v51 = vmul.f32 %v868_v39, %v3521_v32  ;;  %v3547_v52 = vadd.f32 %v395_v62, %v3409_v56 }
 0x13c   :  { %v1123_v27 = vmul.f32 0.044715, %v995_v45  ;;  %v870_v55 = vmul.f32 %v3540_v46, %v3540_v46  ;;  %v3552_v0 = vadd.f32 %v588_v7, %v3411_v57  ;;  %v3555_v44 = vadd.f32 %v397_v28, %v3413_v60 }
 0x13d   :  { %4975 = vst [vmem:[#allocation17_spill] sm:$0xff] %v3547_v52  ;;  %v3557_v58 = vpop.eup %2972  ;;  %2986 = vtanh.f32 %v1378_v49  ;;  %v1125_v59 = vmul.f32 0.044715, %v997_v50  ;;  %v1124_v63 = vmul.f32 0.044715, %v996_v51  ;;  %v871_v62 = vmul.f32 %v3547_v52, %v3547_v52  ;;  %v405_v51 = vpop.f32.mrf.mxu0 }
 0x13e   :  { %4976 = vst [vmem:[#allocation18_spill] sm:$0xff] %v3552_v0  ;;  %v1251_v1 = vadd.f32 %v1123_v27, %v3515_v5  ;;  %v998_v2 = vmul.f32 %v870_v55, %v3540_v46  ;;  %v873_v10 = vmul.f32 %v3552_v0, %v3552_v0  ;;  %v872_v7 = vmul.f32 %v3555_v44, %v3555_v44 }
 0x13f   :  { %v1253_v15 = vadd.f32 %v1125_v59, %v3518_v26  ;;  %v1252_v16 = vadd.f32 %v1124_v63, %v3521_v32  ;;  %v999_v18 = vmul.f32 %v871_v62, %v3547_v52  ;;  %v3571_v21 = vadd.f32 %v590_v33, %v3415_v61  ;;  %v598_v63 = vpop.f32.mrf.mxu1 }
 0x140   :  { %v3573_v28 = vpop.eup %2974  ;;  %v1379_v30 = vmul.f32 0.7978846, %v1251_v1  ;;  %v1126_v31 = vmul.f32 0.044715, %v998_v2  ;;  %v1001_v6 = vmul.f32 %v873_v10, %v3552_v0  ;;  %v1000_v35 = vmul.f32 %v872_v7, %v3555_v44 }
 0x141   :  { %4977 = vst [vmem:[#allocation19_spill] sm:$0xff] %v3571_v21  ;;  %v3577_v36 = vpop.eup %2976  ;;  %v1381_v40 = vmul.f32 0.7978846, %v1253_v15  ;;  %v1380_v41 = vmul.f32 0.7978846, %v1252_v16  ;;  %v874_v39 = vmul.f32 %v3571_v21, %v3571_v21  ;;  %v3587_v59 = vadd.f32 %v401_v48, %v3409_v56 }
 0x142   :  { %v1127_v42 = vmul.f32 0.044715, %v999_v18  ;;  %v3581_v45 = vpop.eup %2978  ;;  %2988 = vtanh.f32 %v1379_v30  ;;  %v1254_v33 = vadd.f32 %v1126_v31, %v3540_v46  ;;  %v1129_v49 = vmul.f32 0.044715, %v1001_v6 }
 0x143   :  { %v1128_v50 = vmul.f32 0.044715, %v1000_v35  ;;  %2990 = vtanh.f32 %v1381_v40  ;;  %v1002_v55 = vmul.f32 %v874_v39, %v3571_v21  ;;  %4978 = vst [vmem:[#allocation20_spill] sm:$0xff] %v3587_v59  ;;  %v875_v18 = vmul.f32 %v3587_v59, %v3587_v59  ;;  %v407_v35 = vpop.f32.mrf.mxu0 }
 0x144   :  { %v1255_v27 = vadd.f32 %v1127_v42, %v3547_v52  ;;  %v3589_v62 = vpop.eup %2980  ;;  %2992 = vtanh.f32 %v1380_v41  ;;  %v1382_v1 = vmul.f32 0.7978846, %v1254_v33  ;;  %v1257_v2 = vadd.f32 %v1129_v49, %v3552_v0  ;;  %v600_v33 = vpop.f32.mrf.mxu1 }
 0x145   :  { %v1256_v10 = vadd.f32 %v1128_v50, %v3555_v44  ;;  %v3593_v7 = vpop.eup %2982  ;;  %v1130_v16 = vmul.f32 0.044715, %v1002_v55  ;;  %v3598_v30 = vadd.f32 %v594_v54, %v3411_v57  ;;  %v3601_v6 = vadd.f32 %v403_v11, %v3413_v60 }
 0x146   :  { %v1383_v15 = vmul.f32 0.7978846, %v1255_v27  ;;  %2994 = vtanh.f32 %v1382_v1  ;;  %v1385_v48 = vmul.f32 0.7978846, %v1257_v2  ;;  %v1003_v42 = vmul.f32 %v875_v18, %v3587_v59 }
 0x147   :  { %4979 = vst [vmem:[#allocation21_spill] sm:$0xff] %v3598_v30  ;;  %v1384_v31 = vmul.f32 0.7978846, %v1256_v10  ;;  %4980 = vst [vmem:[#allocation22_spill] sm:$0xff] %v3601_v6  ;;  %v3603_v40 = vpop.eup %2984  ;;  %v1258_v41 = vadd.f32 %v1130_v16, %v3571_v21  ;;  %v877_v39 = vmul.f32 %v3598_v30, %v3598_v30  ;;  %v876_v54 = vmul.f32 %v3601_v6, %v3601_v6 }
 0x148   :  { %2996 = vtanh.f32 %v1383_v15  ;;  %v3612_v49 = vadd.f32 %v596_v22, %v3415_v61  ;;  %v3615_v11 = vadd.f32 %v405_v51, %v3409_v56  ;;  %v1131_v27 = vmul.f32 0.044715, %v1003_v42  ;;  %v411_v51 = vpop.f32.mrf.mxu0 }
 0x149   :  { %2998 = vtanh.f32 %v1385_v48  ;;  %v1386_v50 = vmul.f32 0.7978846, %v1258_v41  ;;  %v1005_v55 = vmul.f32 %v877_v39, %v3598_v30  ;;  %v1004_v2 = vmul.f32 %v876_v54, %v3601_v6 }
 0x14a   :  { %4981 = vst [vmem:[#allocation23_spill] sm:$0xff] %v3612_v49  ;;  %4982 = vst [vmem:[#allocation24_spill] sm:$0xff] %v3615_v11  ;;  %3000 = vtanh.f32 %v1384_v31  ;;  %v3618_v1 = vpop.eup %2986  ;;  %v878_v10 = vmul.f32 %v3612_v49, %v3612_v49  ;;  %v879_v15 = vmul.f32 %v3615_v11, %v3615_v11  ;;  %v3626_v22 = vadd.f32 %v598_v63, %v3411_v57  ;;  %v604_v31 = vpop.f32.mrf.mxu1 }
 0x14b   :  { %3002 = vtanh.f32 %v1386_v50  ;;  %v1259_v16 = vadd.f32 %v1131_v27, %v3587_v59  ;;  %v1133_v18 = vmul.f32 0.044715, %v1005_v55  ;;  %v3630_v48 = vadd.f32 %v407_v35, %v3413_v60  ;;  %v413_v59 = vpop.f32.mrf.mxu0 }
 0x14c   :  { %4983 = vst [vmem:[#allocation25_spill] sm:$0xff] %v3626_v22  ;;  %v1132_v41 = vmul.f32 0.044715, %v1004_v2  ;;  %v1006_v42 = vmul.f32 %v878_v10, %v3612_v49  ;;  %v1007_v39 = vmul.f32 %v879_v15, %v3615_v11  ;;  %v881_v54 = vmul.f32 %v3626_v22, %v3626_v22 }
 0x14d   :  { %4984 = vst [vmem:[#allocation26_spill] sm:$0xff] %v3630_v48  ;;  %v1387_v0 = vmul.f32 0.7978846, %v1259_v16  ;;  %v1261_v63 = vadd.f32 %v1133_v18, %v3598_v30  ;;  %v880_v50 = vmul.f32 %v3630_v48, %v3630_v48  ;;  %v3640_v27 = vadd.f32 %v600_v33, %v3415_v61  ;;  %v606_v30 = vpop.f32.mrf.mxu1 }
 0x14e   :  { %v1260_v35 = vadd.f32 %v1132_v41, %v3601_v6  ;;  %v1134_v55 = vmul.f32 0.044715, %v1006_v42  ;;  %v1135_v2 = vmul.f32 0.044715, %v1007_v39  ;;  %v1009_v10 = vmul.f32 %v881_v54, %v3626_v22 }
 0x14f   :  { %4985 = vst [vmem:[#allocation27_spill] sm:$0xff] %v3640_v27  ;;  %v3644_v15 = vpop.eup %2988  ;;  %3004 = vtanh.f32 %v1387_v0  ;;  %v1389_v26 = vmul.f32 0.7978846, %v1261_v63  ;;  %v1008_v16 = vmul.f32 %v880_v50, %v3630_v48  ;;  %v882_v18 = vmul.f32 %v3640_v27, %v3640_v27 }
 0x150   :  { %4986 = vst [vmem:[#allocation28_spill] sm:$0xff] %v3644_v15  ;;  %v3649_v52 = vpop.eup %2990  ;;  %v1388_v33 = vmul.f32 0.7978846, %v1260_v35  ;;  %v1262_v41 = vadd.f32 %v1134_v55, %v3612_v49  ;;  %v1263_v42 = vadd.f32 %v1135_v2, %v3615_v11  ;;  %v1137_v39 = vmul.f32 0.044715, %v1009_v10  ;;  %v415_v35 = vpop.f32.mrf.mxu0 }
 0x151   :  { %4987 = vst [vmem:[#allocation29_spill] sm:$0xff] %v3649_v52  ;;  %v3653_v54 = vpop.eup %2992  ;;  %3006 = vtanh.f32 %v1389_v26  ;;  %v1136_v6 = vmul.f32 0.044715, %v1008_v16  ;;  %v1010_v0 = vmul.f32 %v882_v18, %v3640_v27  ;;  %v3657_v63 = vadd.f32 %v411_v51, %v3409_v56  ;;  %v608_v16 = vpop.f32.mrf.mxu1 }
 0x152   :  { %3008 = vtanh.f32 %v1388_v33  ;;  %v1390_v50 = vmul.f32 0.7978846, %v1262_v41  ;;  %v1391_v15 = vmul.f32 0.7978846, %v1263_v42  ;;  %v1265_v52 = vadd.f32 %v1137_v39, %v3626_v22 }
 0x153   :  { %4988 = vst [vmem:[#allocation30_spill] sm:$0xff] %v3657_v63  ;;  %v3660_v5 = vpop.eup %2994  ;;  %v1264_v55 = vadd.f32 %v1136_v6, %v3630_v48  ;;  %v1138_v2 = vmul.f32 0.044715, %v1010_v0  ;;  %v883_v26 = vmul.f32 %v3657_v63, %v3657_v63  ;;  %v3666_v10 = vadd.f32 %v604_v31, %v3411_v57 }
 0x154   :  { %4989 = vst [vmem:[#allocation31_spill] sm:$0xff] %v3660_v5  ;;  %3010 = vtanh.f32 %v1390_v50  ;;  %v1393_v18 = vmul.f32 0.7978846, %v1265_v52  ;;  %v3671_v33 = vadd.f32 %v413_v59, %v3413_v60  ;;  %v3674_v41 = vadd.f32 %v606_v30, %v3415_v61  ;;  %v417_v50 = vpop.f32.mrf.mxu0 }
 0x155   :  { %4990 = vst [vmem:[#allocation32_spill] sm:$0xff] %v3666_v10  ;;  %v3668_v51 = vpop.eup %2996  ;;  %3012 = vtanh.f32 %v1391_v15  ;;  %v1392_v6 = vmul.f32 0.7978846, %v1264_v55  ;;  %v1266_v39 = vadd.f32 %v1138_v2, %v3640_v27  ;;  %v1011_v31 = vmul.f32 %v883_v26, %v3657_v63  ;;  %v610_v26 = vpop.f32.mrf.mxu1 }
 0x156   :  { %4991 = vst [vmem:[#allocation33_spill] sm:$0xff] %v3668_v51  ;;  %4992 = vst [vmem:[#allocation34_spill] sm:$0xff] %v3671_v33  ;;  %v3676_v42 = vpop.eup %2998  ;;  %3014 = vtanh.f32 %v1393_v18  ;;  %v885_v52 = vmul.f32 %v3666_v10, %v3666_v10  ;;  %v884_v59 = vmul.f32 %v3671_v33, %v3671_v33  ;;  %v886_v30 = vmul.f32 %v3674_v41, %v3674_v41 }
 0x157   :  { %4993 = vst [vmem:[#allocation35_spill] sm:$0xff] %v3674_v41  ;;  %4994 = vst [vmem:[#allocation36_spill] sm:$0xff] %v3676_v42  ;;  %v3680_v0 = vpop.eup %3000  ;;  %3016 = vtanh.f32 %v1392_v6  ;;  %v1394_v15 = vmul.f32 0.7978846, %v1266_v39  ;;  %v1139_v55 = vmul.f32 0.044715, %v1011_v31  ;;  %v3689_v2 = vadd.f32 %v415_v35, %v3409_v56 }
 0x158   :  { %v3691_v22 = vpop.eup %3002  ;;  %v1013_v18 = vmul.f32 %v885_v52, %v3666_v10  ;;  %v1012_v11 = vmul.f32 %v884_v59, %v3671_v33  ;;  %v1014_v27 = vmul.f32 %v886_v30, %v3674_v41  ;;  %v3697_v49 = vadd.f32 %v608_v16, %v3411_v57 }
 0x159   :  { %4995 = vst [vmem:[#allocation37_spill] sm:$0xff] %v3689_v2  ;;  %4996 = vst [vmem:[#allocation38_spill] sm:$0xff] %v3691_v22  ;;  %3018 = vtanh.f32 %v1394_v15  ;;  %v1267_v6 = vadd.f32 %v1139_v55, %v3657_v63  ;;  %v887_v39 = vmul.f32 %v3689_v2, %v3689_v2  ;;  %v3703_v35 = vadd.f32 %v417_v50, %v3413_v60  ;;  %v421_v55 = vpop.f32.mrf.mxu0  ;;  %v614_v63 = vpop.f32.mrf.mxu1 }
 0x15a   :  { %v1141_v31 = vmul.f32 0.044715, %v1013_v18  ;;  %v1140_v48 = vmul.f32 0.044715, %v1012_v11  ;;  %v1142_v42 = vmul.f32 0.044715, %v1014_v27  ;;  %v889_v52 = vmul.f32 %v3697_v49, %v3697_v49 }
 0x15b   :  { %v1395_v59 = vmul.f32 0.7978846, %v1267_v6  ;;  %v1015_v30 = vmul.f32 %v887_v39, %v3689_v2  ;;  %v888_v16 = vmul.f32 %v3703_v35, %v3703_v35  ;;  %v3711_v15 = vadd.f32 %v610_v26, %v3415_v61 }
 0x15c   :  { %v3713_v51 = vpop.eup %3004  ;;  %v1269_v50 = vadd.f32 %v1141_v31, %v3666_v10  ;;  %v1268_v11 = vadd.f32 %v1140_v48, %v3671_v33  ;;  %v1270_v27 = vadd.f32 %v1142_v42, %v3674_v41  ;;  %v1017_v18 = vmul.f32 %v889_v52, %v3697_v49  ;;  %v616_v10 = vpop.f32.mrf.mxu1 }
 0x15d   :  { %4997 = vst [vmem:[#allocation39_spill] sm:$0xff] %v3713_v51  ;;  %3020 = vtanh.f32 %v1395_v59  ;;  %v1143_v6 = vmul.f32 0.044715, %v1015_v30  ;;  %v1016_v39 = vmul.f32 %v888_v16, %v3703_v35  ;;  %v890_v26 = vmul.f32 %v3711_v15, %v3711_v15  ;;  %v423_v16 = vpop.f32.mrf.mxu0 }
 0x15e   :  { %v3722_v22 = vpop.eup %3006  ;;  %v1397_v5 = vmul.f32 0.7978846, %v1269_v50  ;;  %v1396_v21 = vmul.f32 0.7978846, %v1268_v11  ;;  %v1398_v51 = vmul.f32 0.7978846, %v1270_v27  ;;  %v3725_v31 = vadd.f32 %v421_v55, %v3409_v56 }
 0x15f   :  { %4998 = vst [vmem:[#allocation40_spill] sm:$0xff] %v3722_v22  ;;  %v3727_v48 = vpop.eup %3008  ;;  %v1271_v42 = vadd.f32 %v1143_v6, %v3689_v2  ;;  %v1145_v52 = vmul.f32 0.044715, %v1017_v18  ;;  %v1144_v59 = vmul.f32 0.044715, %v1016_v39  ;;  %v1018_v30 = vmul.f32 %v890_v26, %v3711_v15 }
 0x160   :  { %4999 = vst [vmem:[#allocation41_spill] sm:$0xff] %v3725_v31  ;;  %3022 = vtanh.f32 %v1397_v5  ;;  %v728_v41 = vmul.f32 0.5, %v3436_v34  ;;  %v1620_v50 = vadd.f32 1.0, %v3501_v8  ;;  %v1624_v11 = vadd.f32 1.0, %v3525_v17 }
 0x161   :  { %v3734_v27 = vpop.eup %3010  ;;  %3024 = vtanh.f32 %v1396_v21  ;;  %v1399_v55 = vmul.f32 0.7978846, %v1271_v42  ;;  %v1273_v33 = vadd.f32 %v1145_v52, %v3697_v49  ;;  %v1272_v18 = vadd.f32 %v1144_v59, %v3703_v35  ;;  %v425_v21 = vpop.f32.mrf.mxu0 }
 0x162   :  { %v3738_v6 = vpop.eup %3012  ;;  %3026 = vtanh.f32 %v1398_v51  ;;  %v1146_v39 = vmul.f32 0.044715, %v1018_v30  ;;  %v1748_v5 = vmul.f32 %v1620_v50, %v3427_v19  ;;  %v1752_v26 = vmul.f32 %v1624_v11, %v728_v41  ;;  %v618_v42 = vpop.f32.mrf.mxu1 }
 0x163   :  { %v3741_v34 = vpop.eup %3014  ;;  %3028 = vtanh.f32 %v1399_v55  ;;  %v1401_v8 = vmul.f32 0.7978846, %v1273_v33  ;;  %v1400_v17 = vmul.f32 0.7978846, %v1272_v18  ;;  %v730_v2 = vmul.f32 0.5, %v3439_v38 }
 0x164   :  { %v3744_v22 = vpop.eup %3016  ;;  %v1274_v52 = vadd.f32 %v1146_v39, %v3711_v15  ;;  %v1876_v59 = vpack.c.bf16 %v1752_v26, %v1748_v5  ;;  %v1622_v51 = vadd.f32 1.0, %v3507_v12  ;;  %v1626_v30 = vadd.f32 1.0, %v3542_v23 }
 0x165   :  { %3030 = vtanh.f32 %v1401_v8  ;;  %v891_v19 = vmul.f32 %v3725_v31, %v3725_v31  ;;  %v3752_v33 = vadd.f32 %v614_v63, %v3411_v57  ;;  %v1875_v38 = vpack.c.bf16 %v3528_v25, %v3504_v9  ;;  %v427_v9 = vpop.f32.mrf.mxu0  ;;  %v620_v25 = vpop.f32.mrf.mxu1 }
 0x166   :  { %v3756_v41 = vpop.eup %3018  ;;  %3032 = vtanh.f32 %v1400_v17  ;;  %v1402_v50 = vmul.f32 0.7978846, %v1274_v52  ;;  %2234 = vmatprep.mubr.bf16.mxu0 %v1876_v59  ;;  %v1750_v11 = vmul.f32 %v1622_v51, %v3429_v20  ;;  %v1754_v12 = vmul.f32 %v1626_v30, %v730_v2 }
 0x167   :  { %5000 = vst [vmem:[#allocation42_spill] sm:$0xff] %v3752_v33  ;;  %v1019_v23 = vmul.f32 %v891_v19, %v3725_v31  ;;  %v893_v55 = vmul.f32 %v3752_v33, %v3752_v33  ;;  %2235 = vmatmul.mubr.bf16.vlgmr.msra.gmra.mxu0 %v1875_v38  ;;  %v1877_v63 = vpack.c.bf16 %v3536_v43, %v3510_v14 }
 0x168   :  { %v3765_v18 = vadd.f32 %v423_v16, %v3413_v60  ;;  %3034 = vtanh.f32 %v1402_v50  ;;  %v1878_v39 = vpack.c.bf16 %v1754_v12, %v1750_v11  ;;  %v3768_v5 = vadd.f32 %v616_v10, %v3415_v61 }
 0x169   :  { %v3771_v20 = vadd.f32 %v425_v21, %v3409_v56  ;;  %v1147_v2 = vmul.f32 0.044715, %v1019_v23  ;;  %v1021_v26 = vmul.f32 %v893_v55, %v3752_v33  ;;  %v3777_v14 = vadd.f32 %v618_v42, %v3411_v57 }
 0x16a   :  { %5001 = vst [vmem:[#allocation43_spill] sm:$0xff] %v3765_v18  ;;  %v892_v8 = vmul.f32 %v3765_v18, %v3765_v18  ;;  %v3779_v43 = vpop.eup %3020  ;;  %2395 = vmatprep.mubr.bf16.mxu1 %v1878_v39  ;;  %v894_v16 = vmul.f32 %v3768_v5, %v3768_v5  ;;  %v3786_v17 = vadd.f32 %v427_v9, %v3413_v60 }
 0x16b   :  { %v895_v10 = vmul.f32 %v3771_v20, %v3771_v20  ;;  %v3789_v21 = vadd.f32 %v620_v25, %v3415_v61  ;;  %v1275_v52 = vadd.f32 %v1147_v2, %v3725_v31  ;;  %v1149_v59 = vmul.f32 0.044715, %v1021_v26  ;;  %2396 = vmatmul.mubr.bf16.vlgmr.msra.gmra.mxu1 %v1877_v63 }
 0x16c   :  { %v1020_v42 = vmul.f32 %v892_v8, %v3765_v18  ;;  %v897_v51 = vmul.f32 %v3777_v14, %v3777_v14  ;;  %v1022_v30 = vmul.f32 %v894_v16, %v3768_v5  ;;  %v896_v38 = vmul.f32 %v3786_v17, %v3786_v17 }
 0x16d   :  { %v1023_v19 = vmul.f32 %v895_v10, %v3771_v20  ;;  %v898_v50 = vmul.f32 %v3789_v21, %v3789_v21  ;;  %v3801_v11 = vpop.eup %3022  ;;  %v1403_v12 = vmul.f32 0.7978846, %v1275_v52  ;;  %v1277_v23 = vadd.f32 %v1149_v59, %v3752_v33  ;;  %v431_v33 = vpop.f32.mrf.mxu0 }
 0x16e   :  { %v1148_v55 = vmul.f32 0.044715, %v1020_v42  ;;  %v1025_v63 = vmul.f32 %v897_v51, %v3777_v14  ;;  %v3805_v9 = vpop.eup %3024  ;;  %v1150_v25 = vmul.f32 0.044715, %v1022_v30  ;;  %v1024_v2 = vmul.f32 %v896_v38, %v3786_v17 }
 0x16f   :  { %v1151_v39 = vmul.f32 0.044715, %v1023_v19  ;;  %v1026_v26 = vmul.f32 %v898_v50, %v3789_v21  ;;  %v3809_v8 = vpop.eup %3026  ;;  %3036 = vtanh.f32 %v1403_v12  ;;  %v1405_v16 = vmul.f32 0.7978846, %v1277_v23 }
 0x170   :  { %v1276_v10 = vadd.f32 %v1148_v55, %v3765_v18  ;;  %v1153_v52 = vmul.f32 0.044715, %v1025_v63  ;;  %v3812_v31 = vpop.eup %3028  ;;  %v1278_v59 = vadd.f32 %v1150_v25, %v3768_v5  ;;  %v1152_v51 = vmul.f32 0.044715, %v1024_v2 }
 0x171   :  { %v1279_v42 = vadd.f32 %v1151_v39, %v3771_v20  ;;  %v1154_v30 = vmul.f32 0.044715, %v1026_v26  ;;  %3038 = vtanh.f32 %v1405_v16  ;;  %v732_v50 = vmul.f32 0.5, %v3456_v4  ;;  %v624_v16 = vpop.f32.mrf.mxu1 }
 0x172   :  { %v1404_v19 = vmul.f32 0.7978846, %v1276_v10  ;;  %v1281_v38 = vadd.f32 %v1153_v52, %v3777_v14  ;;  %v3818_v12 = vpop.eup %3030  ;;  %v1406_v23 = vmul.f32 0.7978846, %v1278_v59  ;;  %v1280_v63 = vadd.f32 %v1152_v51, %v3786_v17 }
 0x173   :  { %v1407_v55 = vmul.f32 0.7978846, %v1279_v42  ;;  %v1282_v18 = vadd.f32 %v1154_v30, %v3789_v21  ;;  %v3822_v25 = vpop.eup %3032  ;;  %v736_v2 = vmul.f32 0.5, %v3485_v37  ;;  %v1628_v26 = vadd.f32 1.0, %v3577_v36 }
 0x174   :  { %3040 = vtanh.f32 %v1404_v19  ;;  %v1409_v39 = vmul.f32 0.7978846, %v1281_v38  ;;  %v1408_v4 = vmul.f32 0.7978846, %v1280_v63  ;;  %v1632_v52 = vadd.f32 1.0, %v3603_v40  ;;  %v433_v19 = vpop.f32.mrf.mxu0 }
 0x175   :  { %3042 = vtanh.f32 %v1406_v23  ;;  %v1410_v10 = vmul.f32 0.7978846, %v1282_v18  ;;  %v3827_v59 = vpop.eup %3034  ;;  %v1756_v42 = vmul.f32 %v1628_v26, %v732_v50  ;;  %v734_v51 = vmul.f32 0.5, %v3465_v13  ;;  %v626_v23 = vpop.f32.mrf.mxu1 }
 0x176   :  { %3044 = vtanh.f32 %v1407_v55  ;;  %v738_v30 = vmul.f32 0.5, %v3494_v47  ;;  %v1760_v38 = vmul.f32 %v1632_v52, %v736_v2  ;;  %v1630_v37 = vadd.f32 1.0, %v3581_v45 }
 0x177   :  { %3046 = vtanh.f32 %v1409_v39  ;;  %v1634_v36 = vadd.f32 1.0, %v3618_v1  ;;  %v3834_v18 = vadd.f32 %v431_v33, %v3409_v56  ;;  %v3837_v40 = vadd.f32 %v624_v16, %v3411_v57  ;;  %v435_v39 = vpop.f32.mrf.mxu0 }
 0x178   :  { %3048 = vtanh.f32 %v1408_v4  ;;  %v731_v50 = vmul.f32 0.5, %v3447_v53  ;;  %v1880_v13 = vpack.c.bf16 %v1760_v38, %v1756_v42  ;;  %v1758_v47 = vmul.f32 %v1630_v37, %v734_v51  ;;  %v628_v51 = vpop.f32.mrf.mxu1 }
 0x179   :  { %5002 = vst [vmem:[#allocation44_spill] sm:$0xff] %v3834_v18  ;;  %5003 = vst [vmem:[#allocation45_spill] sm:$0xff] %v3837_v40  ;;  %3050 = vtanh.f32 %v1410_v10  ;;  %v1762_v55 = vmul.f32 %v1634_v36, %v738_v30  ;;  %v899_v63 = vmul.f32 %v3834_v18, %v3834_v18  ;;  %v901_v45 = vmul.f32 %v3837_v40, %v3837_v40 }
 0x17a   :  { %v735_v1 = vmul.f32 0.5, %v3473_v24  ;;  %v1627_v33 = vadd.f32 1.0, %v3557_v58  ;;  %2242 = vmatprep.mubr.bf16.mxu0 %v1880_v13  ;;  %v1631_v53 = vadd.f32 1.0, %v3589_v62  ;;  %v733_v26 = vmul.f32 0.5, %v3453_v3 }
 0x17b   :  { %v1882_v2 = vpack.c.bf16 %v1762_v55, %v1758_v47  ;;  %v737_v16 = vmul.f32 0.5, %v3477_v29  ;;  %v1027_v4 = vmul.f32 %v899_v63, %v3834_v18  ;;  %v1029_v10 = vmul.f32 %v901_v45, %v3837_v40 }
 0x17c   :  { %v1755_v52 = vmul.f32 %v1627_v33, %v731_v50  ;;  %v1629_v42 = vadd.f32 1.0, %v3573_v28  ;;  %v3852_v24 = vpop.eup %3036  ;;  %v1759_v58 = vmul.f32 %v1631_v53, %v735_v1  ;;  %v1633_v30 = vadd.f32 1.0, %v3593_v7  ;;  %v437_v28 = vpop.f32.mrf.mxu0 }
 0x17d   :  { %2403 = vmatprep.mubr.bf16.mxu1 %v1882_v2  ;;  %v3856_v62 = vadd.f32 %v433_v19, %v3413_v60  ;;  %v3859_v3 = vadd.f32 %v626_v23, %v3415_v61  ;;  %v1155_v29 = vmul.f32 0.044715, %v1027_v4  ;;  %v1157_v38 = vmul.f32 0.044715, %v1029_v10  ;;  %v630_v1 = vpop.f32.mrf.mxu1 }
 0x17e   :  { %v1757_v37 = vmul.f32 %v1629_v42, %v733_v26  ;;  %v3862_v36 = vadd.f32 %v435_v39, %v3409_v56  ;;  %v3864_v50 = vpop.eup %3038  ;;  %v1879_v13 = vpack.c.bf16 %v1759_v58, %v1755_v52  ;;  %v1761_v47 = vmul.f32 %v1633_v30, %v737_v16 }
 0x17f   :  { %5004 = vst [vmem:[#allocation46_spill] sm:$0xff] %v3859_v3  ;;  %v900_v7 = vmul.f32 %v3856_v62, %v3856_v62  ;;  %v902_v19 = vmul.f32 %v3859_v3, %v3859_v3  ;;  %v1283_v23 = vadd.f32 %v1155_v29, %v3834_v18  ;;  %v1285_v55 = vadd.f32 %v1157_v38, %v3837_v40  ;;  %v5011_v18 = vld [vmem:[#allocation38_spill] sm:$0xff] }
 0x180   :  { %5005 = vst [vmem:[#allocation47_spill] sm:$0xff] %v3862_v36  ;;  %v903_v63 = vmul.f32 %v3862_v36, %v3862_v36  ;;  %v3875_v45 = vadd.f32 %v628_v51, %v3411_v57  ;;  %2243 = vmatmul.mubr.bf16.gmra.mxu0 %v1879_v13  ;;  %v1881_v39 = vpack.c.bf16 %v1761_v47, %v1757_v37  ;;  %v740_v47 = vmul.f32 0.5, %v3521_v32 }
 0x181   :  { %v3877_v33 = vpop.eup %3040  ;;  %v1028_v2 = vmul.f32 %v900_v7, %v3856_v62  ;;  %v1030_v53 = vmul.f32 %v902_v19, %v3859_v3  ;;  %v3882_v26 = vadd.f32 %v437_v28, %v3413_v60  ;;  %v1411_v4 = vmul.f32 0.7978846, %v1283_v23  ;;  %v441_v7 = vpop.f32.mrf.mxu0 }
 0x182   :  { %5006 = vst [vmem:[#allocation48_spill] sm:$0xff] %v3875_v45  ;;  %v3884_v16 = vpop.eup %3042  ;;  %v1413_v10 = vmul.f32 0.7978846, %v1285_v55  ;;  %v1031_v52 = vmul.f32 %v903_v63, %v3862_v36  ;;  %v905_v42 = vmul.f32 %v3875_v45, %v3875_v45  ;;  %2404 = vmatmul.mubr.bf16.gmra.mxu1 %v1881_v39  ;;  %v3894_v38 = vadd.f32 %v630_v1, %v3415_v61 }
 0x183   :  { %v3889_v51 = vpop.eup %3044  ;;  %v1156_v58 = vmul.f32 0.044715, %v1028_v2  ;;  %v1158_v30 = vmul.f32 0.044715, %v1030_v53  ;;  %v904_v29 = vmul.f32 %v3882_v26, %v3882_v26  ;;  %3052 = vtanh.f32 %v1411_v4 }
 0x184   :  { %5007 = vst [vmem:[#allocation49_spill] sm:$0xff] %v3894_v38  ;;  %v3896_v37 = vpop.eup %3046  ;;  %v1159_v28 = vmul.f32 0.044715, %v1031_v52  ;;  %v1033_v13 = vmul.f32 %v905_v42, %v3875_v45  ;;  %3054 = vtanh.f32 %v1413_v10  ;;  %v906_v53 = vmul.f32 %v3894_v38, %v3894_v38 }
 0x185   :  { %v3900_v19 = vpop.eup %3048  ;;  %v1284_v23 = vadd.f32 %v1156_v58, %v3856_v62  ;;  %v1286_v55 = vadd.f32 %v1158_v30, %v3859_v3  ;;  %v1032_v63 = vmul.f32 %v904_v29, %v3882_v26  ;;  %v744_v32 = vmul.f32 0.5, %v3555_v44 }
 0x186   :  { %v3905_v1 = vpop.eup %3050  ;;  %v1287_v39 = vadd.f32 %v1159_v28, %v3862_v36  ;;  %v1161_v2 = vmul.f32 0.044715, %v1033_v13  ;;  %v3912_v10 = vadd.f32 %v441_v7, %v3409_v56  ;;  %v1034_v29 = vmul.f32 %v906_v53, %v3894_v38  ;;  %v443_v53 = vpop.f32.mrf.mxu0 }
 0x187   :  { %v1412_v4 = vmul.f32 0.7978846, %v1284_v23  ;;  %v1414_v52 = vmul.f32 0.7978846, %v1286_v55  ;;  %v1160_v42 = vmul.f32 0.044715, %v1032_v63  ;;  %v634_v23 = vpop.f32.mrf.mxu1 }
 0x188   :  { %5008 = vst [vmem:[#allocation50_spill] sm:$0xff] %v3912_v10  ;;  %v1415_v58 = vmul.f32 0.7978846, %v1287_v39  ;;  %v1289_v30 = vadd.f32 %v1161_v2, %v3875_v45  ;;  %v1636_v40 = vadd.f32 1.0, %v3653_v54  ;;  %v1640_v13 = vadd.f32 1.0, %v3680_v0  ;;  %v5009_v2 = vld [vmem:[#allocation19_spill] sm:$0xff] }
 0x189   :  { %3056 = vtanh.f32 %v1412_v4  ;;  %v1288_v28 = vadd.f32 %v1160_v42, %v3882_v26  ;;  %v742_v44 = vmul.f32 0.5, %v3540_v46  ;;  %v1162_v63 = vmul.f32 0.044715, %v1034_v29  ;;  %v5010_v4 = vld [vmem:[#allocation31_spill] sm:$0xff] }
 0x18a   :  { %3058 = vtanh.f32 %v1414_v52  ;;  %v1417_v55 = vmul.f32 0.7978846, %v1289_v30  ;;  %v1764_v7 = vmul.f32 %v1636_v40, %v740_v47  ;;  %v1768_v36 = vmul.f32 %v1640_v13, %v744_v32  ;;  %v636_v47 = vpop.f32.mrf.mxu1  ;;  %v5013_v29 = vld [vmem:[#allocation15_spill] sm:$0xff] }
 0x18b   :  { %3060 = vtanh.f32 %v1415_v58  ;;  %v1416_v39 = vmul.f32 0.7978846, %v1288_v28  ;;  %v746_v45 = vmul.f32 0.5, %v5009_v2  ;;  %v1290_v54 = vadd.f32 %v1162_v63, %v3894_v38  ;;  %v5015_v63 = vld [vmem:[#allocation28_spill] sm:$0xff]  ;;  %v5016_v2 = vld [vmem:[#allocation33_spill] sm:$0xff] }
 0x18c   :  { %3062 = vtanh.f32 %v1417_v55  ;;  %v1638_v42 = vadd.f32 1.0, %v5010_v4  ;;  %v1642_v0 = vadd.f32 1.0, %v5011_v18  ;;  %v1884_v46 = vpack.c.bf16 %v1768_v36, %v1764_v7  ;;  %v5014_v55 = vld [vmem:[#allocation17_spill] sm:$0xff]  ;;  %v638_v38 = vpop.f32.mrf.mxu1 }
 0x18d   :  { %3064 = vtanh.f32 %v1416_v39  ;;  %v907_v52 = vmul.f32 %v3912_v10, %v3912_v10  ;;  %v3927_v40 = vadd.f32 %v634_v23, %v3411_v57  ;;  %v1418_v32 = vmul.f32 0.7978846, %v1290_v54  ;;  %v445_v39 = vpop.f32.mrf.mxu0  ;;  %v5017_v54 = vld [vmem:[#allocation16_spill] sm:$0xff] }
 0x18e   :  { %v1766_v58 = vmul.f32 %v1638_v42, %v742_v44  ;;  %v1770_v30 = vmul.f32 %v1642_v0, %v746_v45  ;;  %v739_v28 = vmul.f32 0.5, %v5013_v29  ;;  %2250 = vmatprep.mubr.bf16.mxu0 %v1884_v46  ;;  %v743_v36 = vmul.f32 0.5, %v5014_v55 }
 0x18f   :  { %5012 = vst [vmem:[#allocation19_spill] sm:$0xff] %v3927_v40  ;;  %v1035_v13 = vmul.f32 %v907_v52, %v3912_v10  ;;  %v909_v18 = vmul.f32 %v3927_v40, %v3927_v40  ;;  %v1635_v7 = vadd.f32 1.0, %v5015_v63  ;;  %3066 = vtanh.f32 %v1418_v32  ;;  %v5019_v52 = vld [vmem:[#allocation18_spill] sm:$0xff]  ;;  %v5021_v63 = vld [vmem:[#allocation29_spill] sm:$0xff] }
 0x190   :  { %v1886_v23 = vpack.c.bf16 %v1770_v30, %v1766_v58  ;;  %v1639_v4 = vadd.f32 1.0, %v5016_v2  ;;  %v741_v44 = vmul.f32 0.5, %v5017_v54  ;;  %v3937_v45 = vpop.eup %3052  ;;  %v745_v29 = vmul.f32 0.5, %v5019_v52  ;;  %v5022_v58 = vld [vmem:[#allocation36_spill] sm:$0xff] }
 0x191   :  { %5018 = vst [vmem:[#allocation31_spill] sm:$0xff] %v3937_v45  ;;  %v1163_v42 = vmul.f32 0.044715, %v1035_v13  ;;  %v1037_v0 = vmul.f32 %v909_v18, %v3927_v40  ;;  %v1763_v46 = vmul.f32 %v1635_v7, %v739_v28  ;;  %v3941_v3 = vpop.eup %3054  ;;  %v1637_v32 = vadd.f32 1.0, %v5021_v63  ;;  %v447_v7 = vpop.f32.mrf.mxu0 }
 0x192   :  { %5020 = vst [vmem:[#allocation38_spill] sm:$0xff] %v3941_v3  ;;  %2411 = vmatprep.mubr.bf16.mxu1 %v1886_v23  ;;  %v1767_v55 = vmul.f32 %v1639_v4, %v743_v36  ;;  %v1641_v30 = vadd.f32 1.0, %v5022_v58  ;;  %v3946_v2 = vadd.f32 %v443_v53, %v3413_v60  ;;  %v3950_v18 = vadd.f32 %v636_v47, %v3415_v61 }
 0x193   :  { %v1291_v54 = vadd.f32 %v1163_v42, %v3912_v10  ;;  %v1165_v13 = vmul.f32 0.044715, %v1037_v0  ;;  %v3953_v28 = vadd.f32 %v445_v39, %v3409_v56  ;;  %v1765_v23 = vmul.f32 %v1637_v32, %v741_v44  ;;  %v640_v0 = vpop.f32.mrf.mxu1 }
 0x194   :  { %5023 = vst [vmem:[#allocation15_spill] sm:$0xff] %v3946_v2  ;;  %5024 = vst [vmem:[#allocation17_spill] sm:$0xff] %v3950_v18  ;;  %v1883_v52 = vpack.c.bf16 %v1767_v55, %v1763_v46  ;;  %v1769_v36 = vmul.f32 %v1641_v30, %v745_v29  ;;  %v908_v4 = vmul.f32 %v3946_v2, %v3946_v2 }
 0x195   :  { %5025 = vst [vmem:[#allocation28_spill] sm:$0xff] %v3953_v28  ;;  %v1419_v63 = vmul.f32 0.7978846, %v1291_v54  ;;  %v1293_v53 = vadd.f32 %v1165_v13, %v3927_v40  ;;  %v910_v42 = vmul.f32 %v3950_v18, %v3950_v18  ;;  %v911_v47 = vmul.f32 %v3953_v28, %v3953_v28 }
 0x196   :  { %v3962_v58 = vpop.eup %3056  ;;  %2251 = vmatmul.mubr.bf16.gmra.mxu0 %v1883_v52  ;;  %v1885_v39 = vpack.c.bf16 %v1769_v36, %v1765_v23  ;;  %v1036_v44 = vmul.f32 %v908_v4, %v3946_v2  ;;  %v3966_v46 = vadd.f32 %v638_v38, %v3411_v57  ;;  %v3969_v29 = vadd.f32 %v447_v7, %v3413_v60 }
 0x197   :  { %v3971_v55 = vpop.eup %3058  ;;  %3068 = vtanh.f32 %v1419_v63  ;;  %v1421_v32 = vmul.f32 0.7978846, %v1293_v53  ;;  %v1038_v30 = vmul.f32 %v910_v42, %v3950_v18  ;;  %v1039_v54 = vmul.f32 %v911_v47, %v3953_v28  ;;  %v5030_v53 = vld [vmem:[#allocation22_spill] sm:$0xff] }
 0x198   :  { %5026 = vst [vmem:[#allocation33_spill] sm:$0xff] %v3966_v46  ;;  %5027 = vst [vmem:[#allocation16_spill] sm:$0xff] %v3971_v55  ;;  %v3975_v13 = vpop.eup %3060  ;;  %2412 = vmatmul.mubr.bf16.gmra.mxu1 %v1885_v39  ;;  %v1164_v52 = vmul.f32 0.044715, %v1036_v44  ;;  %v913_v23 = vmul.f32 %v3966_v46, %v3966_v46  ;;  %v912_v38 = vmul.f32 %v3969_v29, %v3969_v29  ;;  %v748_v42 = vmul.f32 0.5, %v5030_v53 }
 0x199   :  { %5028 = vst [vmem:[#allocation18_spill] sm:$0xff] %v3975_v13  ;;  %v3982_v7 = vadd.f32 %v640_v0, %v3415_v61  ;;  %v3984_v36 = vpop.eup %3062  ;;  %3070 = vtanh.f32 %v1421_v32  ;;  %v1166_v4 = vmul.f32 0.044715, %v1038_v30  ;;  %v1167_v63 = vmul.f32 0.044715, %v1039_v54  ;;  %v5032_v32 = vld [vmem:[#allocation26_spill] sm:$0xff] }
 0x19a   :  { %5029 = vst [vmem:[#allocation29_spill] sm:$0xff] %v3984_v36  ;;  %v3987_v47 = vpop.eup %3064  ;;  %v1292_v39 = vadd.f32 %v1164_v52, %v3946_v2  ;;  %v1041_v44 = vmul.f32 %v913_v23, %v3966_v46  ;;  %v1040_v40 = vmul.f32 %v912_v38, %v3969_v29  ;;  %v752_v30 = vmul.f32 0.5, %v5032_v32  ;;  %v451_v2 = vpop.f32.mrf.mxu0 }
 0x19b   :  { %5031 = vst [vmem:[#allocation36_spill] sm:$0xff] %v3987_v47  ;;  %v914_v10 = vmul.f32 %v3982_v7, %v3982_v7  ;;  %v1294_v0 = vadd.f32 %v1166_v4, %v3950_v18  ;;  %v1295_v36 = vadd.f32 %v1167_v63, %v3953_v28  ;;  %v1644_v54 = vadd.f32 1.0, %v3727_v48  ;;  %v644_v48 = vpop.f32.mrf.mxu1 }
 0x19c   :  { %v1420_v53 = vmul.f32 0.7978846, %v1292_v39  ;;  %v1169_v3 = vmul.f32 0.044715, %v1041_v44  ;;  %v1168_v13 = vmul.f32 0.044715, %v1040_v40  ;;  %v3999_v23 = vpop.eup %3066 }
 0x19d   :  { %v1042_v52 = vmul.f32 %v914_v10, %v3982_v7  ;;  %v1422_v38 = vmul.f32 0.7978846, %v1294_v0  ;;  %v1423_v45 = vmul.f32 0.7978846, %v1295_v36  ;;  %v1648_v55 = vadd.f32 1.0, %v3744_v22  ;;  %v5033_v40 = vld [vmem:[#allocation23_spill] sm:$0xff]  ;;  %v453_v22 = vpop.f32.mrf.mxu0 }
 0x19e   :  { %v1772_v47 = vmul.f32 %v1644_v54, %v748_v42  ;;  %3072 = vtanh.f32 %v1420_v53  ;;  %v1297_v4 = vadd.f32 %v1169_v3, %v3966_v46  ;;  %v1296_v63 = vadd.f32 %v1168_v13, %v3969_v29  ;;  %v5034_v10 = vld [vmem:[#allocation27_spill] sm:$0xff]  ;;  %v5037_v53 = vld [vmem:[#allocation20_spill] sm:$0xff] }
 0x19f   :  { %v1170_v32 = vmul.f32 0.044715, %v1042_v52  ;;  %3074 = vtanh.f32 %v1422_v38  ;;  %v1776_v39 = vmul.f32 %v1648_v55, %v752_v30  ;;  %v750_v44 = vmul.f32 0.5, %v5033_v40  ;;  %v646_v52 = vpop.f32.mrf.mxu1 }
 0x1a0   :  { %v754_v28 = vmul.f32 0.5, %v5034_v10  ;;  %3076 = vtanh.f32 %v1423_v45  ;;  %v1425_v18 = vmul.f32 0.7978846, %v1297_v4  ;;  %v1424_v0 = vmul.f32 0.7978846, %v1296_v63  ;;  %v5039_v63 = vld [vmem:[#allocation39_spill] sm:$0xff] }
 0x1a1   :  { %v1298_v36 = vadd.f32 %v1170_v32, %v3982_v7  ;;  %v1888_v42 = vpack.c.bf16 %v1776_v39, %v1772_v47  ;;  %v1646_v54 = vadd.f32 1.0, %v3734_v27  ;;  %v1650_v3 = vadd.f32 1.0, %v3756_v41 }
 0x1a2   :  { %v4010_v13 = vadd.f32 %v451_v2, %v3409_v56  ;;  %3078 = vtanh.f32 %v1425_v18  ;;  %v4013_v30 = vadd.f32 %v644_v48, %v3411_v57  ;;  %v747_v45 = vmul.f32 0.5, %v5037_v53  ;;  %v5038_v2 = vld [vmem:[#allocation24_spill] sm:$0xff]  ;;  %v455_v48 = vpop.f32.mrf.mxu0 }
 0x1a3   :  { %v1426_v55 = vmul.f32 0.7978846, %v1298_v36  ;;  %3080 = vtanh.f32 %v1424_v0  ;;  %2258 = vmatprep.mubr.bf16.mxu0 %v1888_v42  ;;  %v1774_v38 = vmul.f32 %v1646_v54, %v750_v44  ;;  %v1778_v4 = vmul.f32 %v1650_v3, %v754_v28  ;;  %v5040_v28 = vld [vmem:[#allocation21_spill] sm:$0xff] }
 0x1a4   :  { %5035 = vst [vmem:[#allocation22_spill] sm:$0xff] %v4010_v13  ;;  %5036 = vst [vmem:[#allocation26_spill] sm:$0xff] %v4013_v30  ;;  %v915_v27 = vmul.f32 %v4010_v13, %v4010_v13  ;;  %v4018_v47 = vpop.eup %3068  ;;  %v917_v41 = vmul.f32 %v4013_v30, %v4013_v30  ;;  %v751_v18 = vmul.f32 0.5, %v5038_v2  ;;  %v1643_v32 = vadd.f32 1.0, %v5039_v63  ;;  %v5042_v54 = vld [vmem:[#allocation25_spill] sm:$0xff]  ;;  %v648_v2 = vpop.f32.mrf.mxu1 }
 0x1a5   :  { %3082 = vtanh.f32 %v1426_v55  ;;  %v1890_v39 = vpack.c.bf16 %v1778_v4, %v1774_v38  ;;  %v1647_v44 = vadd.f32 1.0, %v3738_v6  ;;  %v749_v10 = vmul.f32 0.5, %v5040_v28  ;;  %v5043_v55 = vld [vmem:[#allocation40_spill] sm:$0xff] }
 0x1a6   :  { %v1043_v40 = vmul.f32 %v915_v27, %v4010_v13  ;;  %v4027_v0 = vpop.eup %3070  ;;  %v1045_v36 = vmul.f32 %v917_v41, %v4013_v30  ;;  %v1771_v42 = vmul.f32 %v1643_v32, %v747_v45  ;;  %v753_v3 = vmul.f32 0.5, %v5042_v54  ;;  %v457_v41 = vpop.f32.mrf.mxu0 }
 0x1a7   :  { %5041 = vst [vmem:[#allocation23_spill] sm:$0xff] %v4027_v0  ;;  %v1645_v53 = vadd.f32 1.0, %v5043_v55  ;;  %2419 = vmatprep.mubr.bf16.mxu1 %v1890_v39  ;;  %v1775_v46 = vmul.f32 %v1647_v44, %v751_v18  ;;  %v1649_v38 = vadd.f32 1.0, %v3741_v34  ;;  %v4034_v4 = vadd.f32 %v453_v22, %v3413_v60 }
 0x1a8   :  { %v1171_v63 = vmul.f32 0.044715, %v1043_v40  ;;  %v1173_v6 = vmul.f32 0.044715, %v1045_v36  ;;  %v4037_v28 = vadd.f32 %v646_v52, %v3415_v61  ;;  %v4040_v45 = vadd.f32 %v455_v48, %v3409_v56  ;;  %v650_v48 = vpop.f32.mrf.mxu1 }
 0x1a9   :  { %5044 = vst [vmem:[#allocation27_spill] sm:$0xff] %v4034_v4  ;;  %v1773_v27 = vmul.f32 %v1645_v53, %v749_v10  ;;  %v1887_v54 = vpack.c.bf16 %v1775_v46, %v1771_v42  ;;  %v1777_v39 = vmul.f32 %v1649_v38, %v753_v3  ;;  %v916_v18 = vmul.f32 %v4034_v4, %v4034_v4 }
 0x1aa   :  { %5045 = vst [vmem:[#allocation20_spill] sm:$0xff] %v4037_v28  ;;  %5046 = vst [vmem:[#allocation24_spill] sm:$0xff] %v4040_v45  ;;  %v1299_v32 = vadd.f32 %v1171_v63, %v4010_v13  ;;  %v1301_v34 = vadd.f32 %v1173_v6, %v4013_v30  ;;  %v918_v22 = vmul.f32 %v4037_v28, %v4037_v28  ;;  %v1652_v13 = vadd.f32 1.0, %v3805_v9 }
 0x1ab   :  { %v919_v52 = vmul.f32 %v4040_v45, %v4040_v45  ;;  %v4051_v40 = vadd.f32 %v648_v2, %v3411_v57  ;;  %v4053_v44 = vpop.eup %3072  ;;  %2259 = vmatmul.mubr.bf16.gmra.mxu0 %v1887_v54  ;;  %v1889_v46 = vpack.c.bf16 %v1777_v39, %v1773_v27  ;;  %v1044_v36 = vmul.f32 %v916_v18, %v4034_v4 }
 0x1ac   :  { %v1427_v10 = vmul.f32 0.7978846, %v1299_v32  ;;  %v4057_v42 = vadd.f32 %v457_v41, %v3413_v60  ;;  %v4059_v3 = vpop.eup %3074  ;;  %v1429_v55 = vmul.f32 0.7978846, %v1301_v34  ;;  %v1046_v53 = vmul.f32 %v918_v22, %v4037_v28 }
 0x1ad   :  { %v1047_v63 = vmul.f32 %v919_v52, %v4040_v45  ;;  %v921_v2 = vmul.f32 %v4051_v40, %v4051_v40  ;;  %v4065_v38 = vpop.eup %3076  ;;  %2420 = vmatmul.mubr.bf16.gmra.mxu1 %v1889_v46  ;;  %v1172_v6 = vmul.f32 0.044715, %v1044_v36  ;;  %v4070_v41 = vadd.f32 %v650_v48, %v3415_v61 }
 0x1ae   :  { %3084 = vtanh.f32 %v1427_v10  ;;  %v920_v27 = vmul.f32 %v4057_v42, %v4057_v42  ;;  %v1174_v32 = vmul.f32 0.044715, %v1046_v53  ;;  %v5048_v10 = vld [vmem:[#allocation34_spill] sm:$0xff] }
 0x1af   :  { %3086 = vtanh.f32 %v1429_v55  ;;  %v1175_v54 = vmul.f32 0.044715, %v1047_v63  ;;  %v1049_v39 = vmul.f32 %v921_v2, %v4051_v40  ;;  %v4073_v18 = vpop.eup %3078  ;;  %v1300_v34 = vadd.f32 %v1172_v6, %v4034_v4  ;;  %v461_v4 = vpop.f32.mrf.mxu0 }
 0x1b0   :  { %5047 = vst [vmem:[#allocation39_spill] sm:$0xff] %v4073_v18  ;;  %v1048_v22 = vmul.f32 %v920_v27, %v4057_v42  ;;  %v922_v52 = vmul.f32 %v4070_v41, %v4070_v41  ;;  %v756_v46 = vmul.f32 0.5, %v5048_v10  ;;  %v4080_v36 = vpop.eup %3080  ;;  %v1302_v48 = vadd.f32 %v1174_v32, %v4037_v28  ;;  %v5049_v28 = vld [vmem:[#allocation35_spill] sm:$0xff] }
 0x1b1   :  { %v1303_v55 = vadd.f32 %v1175_v54, %v4040_v45  ;;  %v1177_v53 = vmul.f32 0.044715, %v1049_v39  ;;  %v760_v63 = vmul.f32 0.5, %v3703_v35  ;;  %v1428_v30 = vmul.f32 0.7978846, %v1300_v34  ;;  %v654_v45 = vpop.f32.mrf.mxu1 }
 0x1b2   :  { %v4085_v2 = vpop.eup %3082  ;;  %v1176_v6 = vmul.f32 0.044715, %v1048_v22  ;;  %v1050_v27 = vmul.f32 %v922_v52, %v4070_v41  ;;  %v1430_v18 = vmul.f32 0.7978846, %v1302_v48  ;;  %v1656_v32 = vadd.f32 1.0, %v3822_v25 }
 0x1b3   :  { %v1431_v10 = vmul.f32 0.7978846, %v1303_v55  ;;  %v1305_v0 = vadd.f32 %v1177_v53, %v4051_v40  ;;  %3088 = vtanh.f32 %v1428_v30  ;;  %v1780_v35 = vmul.f32 %v1652_v13, %v756_v46  ;;  %v463_v53 = vpop.f32.mrf.mxu0 }
 0x1b4   :  { %v1304_v54 = vadd.f32 %v1176_v6, %v4057_v42  ;;  %v1178_v39 = vmul.f32 0.044715, %v1050_v27  ;;  %3090 = vtanh.f32 %v1430_v18  ;;  %v1784_v22 = vmul.f32 %v1656_v32, %v760_v63 }
 0x1b5   :  { %v1433_v34 = vmul.f32 0.7978846, %v1305_v0  ;;  %v758_v52 = vmul.f32 0.5, %v5049_v28  ;;  %3092 = vtanh.f32 %v1431_v10  ;;  %v762_v55 = vmul.f32 0.5, %v3711_v15  ;;  %v656_v28 = vpop.f32.mrf.mxu1  ;;  %v5052_v15 = vld [vmem:[#allocation30_spill] sm:$0xff] }
 0x1b6   :  { %v1432_v9 = vmul.f32 0.7978846, %v1304_v54  ;;  %v1306_v48 = vadd.f32 %v1178_v39, %v4070_v41  ;;  %v1892_v25 = vpack.c.bf16 %v1784_v22, %v1780_v35  ;;  %v1654_v30 = vadd.f32 1.0, %v3809_v8  ;;  %v465_v54 = vpop.f32.mrf.mxu0 }
 0x1b7   :  { %3094 = vtanh.f32 %v1433_v34  ;;  %v1658_v6 = vadd.f32 1.0, %v3827_v59  ;;  %v4098_v13 = vadd.f32 %v461_v4, %v3409_v56  ;;  %v4101_v0 = vadd.f32 %v654_v45, %v3411_v57  ;;  %v5053_v59 = vld [vmem:[#allocation37_spill] sm:$0xff]  ;;  %v5054_v34 = vld [vmem:[#allocation32_spill] sm:$0xff] }
 0x1b8   :  { %3096 = vtanh.f32 %v1432_v9  ;;  %v1434_v18 = vmul.f32 0.7978846, %v1306_v48  ;;  %2266 = vmatprep.mubr.bf16.mxu0 %v1892_v25  ;;  %v1782_v46 = vmul.f32 %v1654_v30, %v758_v52  ;;  %v755_v27 = vmul.f32 0.5, %v5052_v15 }
 0x1b9   :  { %5050 = vst [vmem:[#allocation21_spill] sm:$0xff] %v4098_v13  ;;  %5051 = vst [vmem:[#allocation25_spill] sm:$0xff] %v4101_v0  ;;  %v1786_v63 = vmul.f32 %v1658_v6, %v762_v55  ;;  %v923_v10 = vmul.f32 %v4098_v13, %v4098_v13  ;;  %v925_v8 = vmul.f32 %v4101_v0, %v4101_v0  ;;  %v759_v32 = vmul.f32 0.5, %v5053_v59 }
 0x1ba   :  { %v1651_v4 = vadd.f32 1.0, %v3779_v43  ;;  %v1655_v35 = vadd.f32 1.0, %v3812_v31  ;;  %v757_v22 = vmul.f32 0.5, %v5054_v34  ;;  %v761_v52 = vmul.f32 0.5, %v3697_v49  ;;  %v658_v43 = vpop.f32.mrf.mxu1 }
 0x1bb   :  { %v4110_v45 = vpop.eup %3084  ;;  %v1894_v39 = vpack.c.bf16 %v1786_v63, %v1782_v46  ;;  %v1051_v48 = vmul.f32 %v923_v10, %v4098_v13  ;;  %v1053_v55 = vmul.f32 %v925_v8, %v4101_v0  ;;  %v1653_v30 = vadd.f32 1.0, %v3801_v11 }
 0x1bc   :  { %v4115_v9 = vpop.eup %3086  ;;  %v1779_v25 = vmul.f32 %v1651_v4, %v755_v27  ;;  %v1783_v6 = vmul.f32 %v1655_v35, %v759_v32  ;;  %v1657_v46 = vadd.f32 1.0, %v3818_v12  ;;  %v4122_v31 = vadd.f32 %v463_v53, %v3413_v60  ;;  %v467_v27 = vpop.f32.mrf.mxu0 }
 0x1bd   :  { %2427 = vmatprep.mubr.bf16.mxu1 %v1894_v39  ;;  %v4125_v63 = vadd.f32 %v656_v28, %v3415_v61  ;;  %v1179_v49 = vmul.f32 0.044715, %v1051_v48  ;;  %v1181_v15 = vmul.f32 0.044715, %v1053_v55  ;;  %v1781_v59 = vmul.f32 %v1653_v30, %v757_v22 }
 0x1be   :  { %v4128_v10 = vadd.f32 %v465_v54, %v3409_v56  ;;  %v1891_v8 = vpack.c.bf16 %v1783_v6, %v1779_v25  ;;  %v1785_v11 = vmul.f32 %v1657_v46, %v761_v52  ;;  %v924_v32 = vmul.f32 %v4122_v31, %v4122_v31  ;;  %v660_v54 = vpop.f32.mrf.mxu1 }
 0x1bf   :  { %v926_v12 = vmul.f32 %v4125_v63, %v4125_v63  ;;  %v1307_v53 = vadd.f32 %v1179_v49, %v4098_v13  ;;  %v1309_v28 = vadd.f32 %v1181_v15, %v4101_v0  ;;  %v4139_v39 = vadd.f32 %v658_v43, %v3411_v57 }
 0x1c0   :  { %5055 = vst [vmem:[#allocation40_spill] sm:$0xff] %v4128_v10  ;;  %v927_v4 = vmul.f32 %v4128_v10, %v4128_v10  ;;  %v4141_v35 = vpop.eup %3088  ;;  %2267 = vmatmul.mubr.bf16.gmra.mxu0 %v1891_v8  ;;  %v1893_v34 = vpack.c.bf16 %v1785_v11, %v1781_v59  ;;  %v1052_v22 = vmul.f32 %v924_v32, %v4122_v31  ;;  %3098 = vtanh.f32 %v1434_v18 }
 0x1c1   :  { %v1054_v52 = vmul.f32 %v926_v12, %v4125_v63  ;;  %v4146_v48 = vadd.f32 %v467_v27, %v3413_v60  ;;  %v4148_v55 = vpop.eup %3090  ;;  %v1435_v25 = vmul.f32 0.7978846, %v1307_v53  ;;  %v1437_v30 = vmul.f32 0.7978846, %v1309_v28 }
 0x1c2   :  { %v1055_v6 = vmul.f32 %v927_v4, %v4128_v10  ;;  %v929_v43 = vmul.f32 %v4139_v39, %v4139_v39  ;;  %v4153_v46 = vpop.eup %3092  ;;  %2428 = vmatmul.mubr.bf16.gmra.mxu1 %v1893_v34  ;;  %v1180_v49 = vmul.f32 0.044715, %v1052_v22  ;;  %v4158_v27 = vadd.f32 %v660_v54, %v3415_v61 }
 0x1c3   :  { %v1182_v15 = vmul.f32 0.044715, %v1054_v52  ;;  %v928_v59 = vmul.f32 %v4146_v48, %v4146_v48  ;;  %3100 = vtanh.f32 %v1435_v25  ;;  %v5056_v52 = vld [vmem:[#allocation43_spill] sm:$0xff] }
 0x1c4   :  { %v4160_v8 = vpop.eup %3094  ;;  %v1183_v11 = vmul.f32 0.044715, %v1055_v6  ;;  %v1057_v32 = vmul.f32 %v929_v43, %v4139_v39  ;;  %v1308_v53 = vadd.f32 %v1180_v49, %v4122_v31  ;;  %v930_v54 = vmul.f32 %v4158_v27, %v4158_v27  ;;  %v471_v6 = vpop.f32.mrf.mxu0 }
 0x1c5   :  { %v4163_v12 = vpop.eup %3096  ;;  %v1310_v28 = vadd.f32 %v1182_v15, %v4125_v63  ;;  %v1056_v4 = vmul.f32 %v928_v59, %v4146_v48  ;;  %v764_v18 = vmul.f32 0.5, %v5056_v52  ;;  %3102 = vtanh.f32 %v1437_v30  ;;  %v664_v30 = vpop.f32.mrf.mxu1 }
 0x1c6   :  { %v1311_v34 = vadd.f32 %v1183_v11, %v4128_v10  ;;  %v1185_v22 = vmul.f32 0.044715, %v1057_v32  ;;  %v1436_v43 = vmul.f32 0.7978846, %v1308_v53  ;;  %v1058_v15 = vmul.f32 %v930_v54, %v4158_v27  ;;  %v473_v54 = vpop.f32.mrf.mxu0 }
 0x1c7   :  { %v1438_v0 = vmul.f32 0.7978846, %v1310_v28  ;;  %v1184_v13 = vmul.f32 0.044715, %v1056_v4  ;;  %v1660_v59 = vadd.f32 1.0, %v3877_v33  ;;  %v768_v32 = vmul.f32 0.5, %v3786_v17 }
 0x1c8   :  { %v1439_v25 = vmul.f32 0.7978846, %v1311_v34  ;;  %v1313_v49 = vadd.f32 %v1185_v22, %v4139_v39  ;;  %v1664_v10 = vadd.f32 1.0, %v3900_v19  ;;  %v4179_v52 = vadd.f32 %v471_v6, %v3409_v56 }
 0x1c9   :  { %v1312_v11 = vadd.f32 %v1184_v13, %v4146_v48  ;;  %3104 = vtanh.f32 %v1436_v43  ;;  %v1186_v28 = vmul.f32 0.044715, %v1058_v15  ;;  %v1788_v4 = vmul.f32 %v1660_v59, %v764_v18  ;;  %v475_v59 = vpop.f32.mrf.mxu0 }
 0x1ca   :  { %5057 = vst [vmem:[#allocation34_spill] sm:$0xff] %v4179_v52  ;;  %v1441_v53 = vmul.f32 0.7978846, %v1313_v49  ;;  %3106 = vtanh.f32 %v1438_v0  ;;  %v1792_v34 = vmul.f32 %v1664_v10, %v768_v32  ;;  %v766_v22 = vmul.f32 0.5, %v3768_v5  ;;  %v666_v0 = vpop.f32.mrf.mxu1 }
 0x1cb   :  { %3108 = vtanh.f32 %v1439_v25  ;;  %v770_v33 = vmul.f32 0.5, %v3789_v21  ;;  %v1662_v17 = vadd.f32 1.0, %v3884_v16  ;;  %v1666_v19 = vadd.f32 1.0, %v3905_v1  ;;  %v5059_v1 = vld [vmem:[#allocation41_spill] sm:$0xff] }
 0x1cc   :  { %v1440_v13 = vmul.f32 0.7978846, %v1312_v11  ;;  %v1896_v6 = vpack.c.bf16 %v1792_v34, %v1788_v4  ;;  %v931_v43 = vmul.f32 %v4179_v52, %v4179_v52  ;;  %v4188_v49 = vadd.f32 %v664_v30, %v3411_v57 }
 0x1cd   :  { %3110 = vtanh.f32 %v1441_v53  ;;  %v1314_v5 = vadd.f32 %v1186_v28, %v4158_v27  ;;  %v1790_v10 = vmul.f32 %v1662_v17, %v766_v22  ;;  %v1794_v18 = vmul.f32 %v1666_v19, %v770_v33  ;;  %v5060_v53 = vld [vmem:[#allocation42_spill] sm:$0xff]  ;;  %v4199_v4 = vpop.eup %3098  ;;  %v668_v19 = vpop.f32.mrf.mxu1 }
 0x1ce   :  { %5058 = vst [vmem:[#allocation35_spill] sm:$0xff] %v4188_v49  ;;  %2274 = vmatprep.mubr.bf16.mxu0 %v1896_v6  ;;  %v1059_v21 = vmul.f32 %v931_v43, %v4179_v52  ;;  %v933_v16 = vmul.f32 %v4188_v49, %v4188_v49  ;;  %v763_v25 = vmul.f32 0.5, %v5059_v1  ;;  %v1659_v15 = vadd.f32 1.0, %v3852_v24 }
 0x1cf   :  { %v1898_v11 = vpack.c.bf16 %v1794_v18, %v1790_v10  ;;  %v767_v32 = vmul.f32 0.5, %v3771_v20  ;;  %v1663_v30 = vadd.f32 1.0, %v3889_v51  ;;  %v765_v28 = vmul.f32 0.5, %v5060_v53 }
 0x1d0   :  { %v1187_v34 = vmul.f32 0.044715, %v1059_v21  ;;  %v1061_v22 = vmul.f32 %v933_v16, %v4188_v49  ;;  %v1787_v33 = vmul.f32 %v1659_v15, %v763_v25  ;;  %v769_v17 = vmul.f32 0.5, %v3777_v14  ;;  %v4203_v6 = vpop.eup %3100  ;;  %v477_v16 = vpop.f32.mrf.mxu0 }
 0x1d1   :  { %2435 = vmatprep.mubr.bf16.mxu1 %v1898_v11  ;;  %v1791_v24 = vmul.f32 %v1663_v30, %v767_v32  ;;  %v1661_v43 = vadd.f32 1.0, %v3864_v50  ;;  %v1665_v20 = vadd.f32 1.0, %v3896_v37  ;;  %v4208_v51 = vadd.f32 %v473_v54, %v3413_v60 }
 0x1d2   :  { %v1315_v10 = vadd.f32 %v1187_v34, %v4179_v52  ;;  %v1189_v18 = vmul.f32 0.044715, %v1061_v22  ;;  %v4212_v21 = vadd.f32 %v666_v0, %v3415_v61  ;;  %v4215_v14 = vadd.f32 %v475_v59, %v3409_v56  ;;  %v4217_v1 = vpop.eup %3102  ;;  %v670_v59 = vpop.f32.mrf.mxu1  ;;  %v5069_v52 = vld [vmem:[#allocation36_spill] sm:$0xff] }
 0x1d3   :  { %5061 = vst [vmem:[#allocation30_spill] sm:$0xff] %v4208_v51  ;;  %5064 = vst [vmem:[#allocation43_spill] sm:$0xff] %v4217_v1  ;;  %v1895_v25 = vpack.c.bf16 %v1791_v24, %v1787_v33  ;;  %v1789_v15 = vmul.f32 %v1661_v43, %v765_v28  ;;  %v1793_v50 = vmul.f32 %v1665_v20, %v769_v17  ;;  %v1442_v54 = vmul.f32 0.7978846, %v1314_v5 }
 0x1d4   :  { %5062 = vst [vmem:[#allocation37_spill] sm:$0xff] %v4212_v21  ;;  %5063 = vst [vmem:[#allocation32_spill] sm:$0xff] %v4215_v14  ;;  %v932_v37 = vmul.f32 %v4208_v51, %v4208_v51  ;;  %v1317_v11 = vadd.f32 %v1189_v18, %v4188_v49  ;;  %v934_v32 = vmul.f32 %v4212_v21, %v4212_v21  ;;  %3112 = vtanh.f32 %v1440_v13 }
 0x1d5   :  { %v935_v0 = vmul.f32 %v4215_v14, %v4215_v14  ;;  %2275 = vmatmul.mubr.bf16.gmra.mxu0 %v1895_v25  ;;  %v1897_v30 = vpack.c.bf16 %v1793_v50, %v1789_v15  ;;  %v4228_v28 = vadd.f32 %v668_v19, %v3411_v57  ;;  %v4231_v34 = vadd.f32 %v477_v16, %v3413_v60 }
 0x1d6   :  { %v1060_v53 = vmul.f32 %v932_v37, %v4208_v51  ;;  %v4233_v5 = vpop.eup %3104  ;;  %v1443_v22 = vmul.f32 0.7978846, %v1315_v10  ;;  %v1062_v33 = vmul.f32 %v934_v32, %v4212_v21  ;;  %v4244_v18 = vadd.f32 %v670_v59, %v3415_v61 }
 0x1d7   :  { %5065 = vst [vmem:[#allocation41_spill] sm:$0xff] %v4228_v28  ;;  %5066 = vst [vmem:[#allocation42_spill] sm:$0xff] %v4231_v34  ;;  %v1063_v17 = vmul.f32 %v935_v0, %v4215_v14  ;;  %v4237_v24 = vpop.eup %3106  ;;  %2436 = vmatmul.mubr.bf16.gmra.mxu1 %v1897_v30  ;;  %v937_v20 = vmul.f32 %v4228_v28, %v4228_v28  ;;  %v936_v19 = vmul.f32 %v4231_v34, %v4231_v34 }
 0x1d8   :  { %v1188_v43 = vmul.f32 0.044715, %v1060_v53  ;;  %5067 = vst [vmem:[#allocation51_spill] sm:$0xff] %v4244_v18  ;;  %v4246_v16 = vpop.eup %3108  ;;  %3114 = vtanh.f32 %v1442_v54  ;;  %v1445_v13 = vmul.f32 0.7978846, %v1317_v11  ;;  %v938_v32 = vmul.f32 %v4244_v18, %v4244_v18 }
 0x1d9   :  { %v1190_v10 = vmul.f32 0.044715, %v1062_v33  ;;  %v1191_v25 = vmul.f32 0.044715, %v1063_v17  ;;  %v1065_v50 = vmul.f32 %v937_v20, %v4228_v28  ;;  %v1064_v37 = vmul.f32 %v936_v19, %v4231_v34 }
 0x1da   :  { %v1316_v15 = vadd.f32 %v1188_v43, %v4208_v51  ;;  %v4253_v0 = vpop.eup %3110  ;;  %3116 = vtanh.f32 %v1443_v22  ;;  %v1668_v54 = vadd.f32 1.0, %v3962_v58  ;;  %v1066_v17 = vmul.f32 %v938_v32, %v4244_v18  ;;  %v481_v43 = vpop.f32.mrf.mxu0  ;;  %v5070_v32 = vld [vmem:[#allocation46_spill] sm:$0xff] }
 0x1db   :  { %5068 = vst [vmem:[#allocation52_spill] sm:$0xff] %v4253_v0  ;;  %v1318_v59 = vadd.f32 %v1190_v10, %v4212_v21  ;;  %v1319_v30 = vadd.f32 %v1191_v25, %v4215_v14  ;;  %v1193_v53 = vmul.f32 0.044715, %v1065_v50  ;;  %v1192_v33 = vmul.f32 0.044715, %v1064_v37  ;;  %v674_v58 = vpop.f32.mrf.mxu1  ;;  %v5071_v14 = vld [vmem:[#allocation49_spill] sm:$0xff] }
 0x1dc   :  { %v1444_v11 = vmul.f32 0.7978846, %v1316_v15  ;;  %v772_v19 = vmul.f32 0.5, %v3856_v62  ;;  %v776_v49 = vmul.f32 0.5, %v3882_v26  ;;  %v1672_v51 = vadd.f32 1.0, %v5069_v52  ;;  %v483_v21 = vpop.f32.mrf.mxu0  ;;  %v5072_v0 = vld [vmem:[#allocation16_spill] sm:$0xff] }
 0x1dd   :  { %v1446_v20 = vmul.f32 0.7978846, %v1318_v59  ;;  %3118 = vtanh.f32 %v1445_v13  ;;  %v1447_v22 = vmul.f32 0.7978846, %v1319_v30  ;;  %v1321_v10 = vadd.f32 %v1193_v53, %v4228_v28  ;;  %v5080_v28 = vld [vmem:[#allocation48_spill] sm:$0xff] }
 0x1de   :  { %v1320_v25 = vadd.f32 %v1192_v33, %v4231_v34  ;;  %3120 = vtanh.f32 %v1444_v11  ;;  %v1194_v15 = vmul.f32 0.044715, %v1066_v17  ;;  %v1796_v50 = vmul.f32 %v1668_v54, %v772_v19  ;;  %v5076_v19 = vld [vmem:[#allocation47_spill] sm:$0xff] }
 0x1df   :  { %v1800_v37 = vmul.f32 %v1672_v51, %v776_v49  ;;  %3122 = vtanh.f32 %v1446_v20  ;;  %v774_v59 = vmul.f32 0.5, %v5070_v32  ;;  %v778_v62 = vmul.f32 0.5, %v5071_v14  ;;  %v676_v49 = vpop.f32.mrf.mxu1 }
 0x1e0   :  { %v1670_v52 = vadd.f32 1.0, %v5072_v0  ;;  %v1674_v13 = vadd.f32 1.0, %v3999_v23  ;;  %v4269_v30 = vadd.f32 %v481_v43, %v3409_v56  ;;  %3124 = vtanh.f32 %v1447_v22  ;;  %v5075_v43 = vld [vmem:[#allocation44_spill] sm:$0xff] }
 0x1e1   :  { %v1900_v26 = vpack.c.bf16 %v1800_v37, %v1796_v50  ;;  %v1449_v53 = vmul.f32 0.7978846, %v1321_v10  ;;  %v1448_v11 = vmul.f32 0.7978846, %v1320_v25  ;;  %v4272_v54 = vadd.f32 %v674_v58, %v3411_v57  ;;  %v4277_v17 = vpop.eup %3112  ;;  %v5077_v10 = vld [vmem:[#allocation31_spill] sm:$0xff]  ;;  %v485_v58 = vpop.f32.mrf.mxu0  ;;  %v5078_v37 = vld [vmem:[#allocation18_spill] sm:$0xff] }
 0x1e2   :  { %5073 = vst [vmem:[#allocation36_spill] sm:$0xff] %v4269_v30  ;;  %v1322_v51 = vadd.f32 %v1194_v15, %v4244_v18  ;;  %v1798_v14 = vmul.f32 %v1670_v52, %v774_v59  ;;  %v1802_v33 = vmul.f32 %v1674_v13, %v778_v62  ;;  %v939_v0 = vmul.f32 %v4269_v30, %v4269_v30  ;;  %v5079_v59 = vld [vmem:[#allocation45_spill] sm:$0xff] }
 0x1e3   :  { %5074 = vst [vmem:[#allocation46_spill] sm:$0xff] %v4272_v54  ;;  %2282 = vmatprep.mubr.bf16.mxu0 %v1900_v26  ;;  %v941_v23 = vmul.f32 %v4272_v54, %v4272_v54  ;;  %v771_v20 = vmul.f32 0.5, %v5075_v43  ;;  %v775_v22 = vmul.f32 0.5, %v5076_v19  ;;  %v1667_v25 = vadd.f32 1.0, %v5077_v10  ;;  %v5081_v43 = vld [vmem:[#allocation38_spill] sm:$0xff]  ;;  %v678_v19 = vpop.f32.mrf.mxu1 }
 0x1e4   :  { %v1902_v50 = vpack.c.bf16 %v1802_v33, %v1798_v14  ;;  %v1067_v15 = vmul.f32 %v939_v0, %v4269_v30  ;;  %v1671_v32 = vadd.f32 1.0, %v5078_v37  ;;  %v773_v62 = vmul.f32 0.5, %v5079_v59  ;;  %v5082_v14 = vld [vmem:[#allocation29_spill] sm:$0xff] }
 0x1e5   :  { %v4287_v26 = vpop.eup %3114  ;;  %v1069_v52 = vmul.f32 %v941_v23, %v4272_v54  ;;  %v1795_v13 = vmul.f32 %v1667_v25, %v771_v20  ;;  %v777_v18 = vmul.f32 0.5, %v5080_v28  ;;  %v1669_v34 = vadd.f32 1.0, %v5081_v43  ;;  %v487_v20 = vpop.f32.mrf.mxu0 }
 0x1e6   :  { %2443 = vmatprep.mubr.bf16.mxu1 %v1902_v50  ;;  %v1195_v10 = vmul.f32 0.044715, %v1067_v15  ;;  %v1799_v1 = vmul.f32 %v1671_v32, %v775_v22  ;;  %v1673_v33 = vadd.f32 1.0, %v5082_v14  ;;  %v4294_v0 = vadd.f32 %v483_v21, %v3413_v60 }
 0x1e7   :  { %v4296_v37 = vpop.eup %3116  ;;  %3126 = vtanh.f32 %v1449_v53  ;;  %v1197_v59 = vmul.f32 0.044715, %v1069_v52  ;;  %v4299_v23 = vadd.f32 %v676_v49, %v3415_v61  ;;  %v4302_v28 = vadd.f32 %v485_v58, %v3409_v56  ;;  %v680_v58 = vpop.f32.mrf.mxu1 }
 0x1e8   :  { %5083 = vst [vmem:[#allocation49_spill] sm:$0xff] %v4294_v0  ;;  %v1899_v25 = vpack.c.bf16 %v1799_v1, %v1795_v13  ;;  %v1797_v50 = vmul.f32 %v1669_v34, %v773_v62  ;;  %v1801_v15 = vmul.f32 %v1673_v33, %v777_v18  ;;  %v940_v22 = vmul.f32 %v4294_v0, %v4294_v0 }
 0x1e9   :  { %5084 = vst [vmem:[#allocation16_spill] sm:$0xff] %v4299_v23  ;;  %5085 = vst [vmem:[#allocation44_spill] sm:$0xff] %v4302_v28  ;;  %v1323_v21 = vadd.f32 %v1195_v10, %v4269_v30  ;;  %v942_v32 = vmul.f32 %v4299_v23, %v4299_v23  ;;  %v943_v53 = vmul.f32 %v4302_v28, %v4302_v28  ;;  %v1450_v43 = vmul.f32 0.7978846, %v1322_v51 }
 0x1ea   :  { %v4312_v49 = vadd.f32 %v678_v19, %v3411_v57  ;;  %v4314_v52 = vpop.eup %3118  ;;  %v1325_v1 = vadd.f32 %v1197_v59, %v4272_v54  ;;  %2283 = vmatmul.mubr.bf16.gmra.mxu0 %v1899_v25  ;;  %v1901_v34 = vpack.c.bf16 %v1801_v15, %v1797_v50  ;;  %v1068_v18 = vmul.f32 %v940_v22, %v4294_v0 }
 0x1eb   :  { %v4319_v62 = vadd.f32 %v487_v20, %v3413_v60  ;;  %v4321_v13 = vpop.eup %3120  ;;  %v1070_v10 = vmul.f32 %v942_v32, %v4299_v23  ;;  %v1071_v19 = vmul.f32 %v943_v53, %v4302_v28  ;;  %3128 = vtanh.f32 %v1448_v11 }
 0x1ec   :  { %5086 = vst [vmem:[#allocation47_spill] sm:$0xff] %v4312_v49  ;;  %v945_v14 = vmul.f32 %v4312_v49, %v4312_v49  ;;  %v4327_v33 = vpop.eup %3122  ;;  %2444 = vmatmul.mubr.bf16.gmra.mxu1 %v1901_v34  ;;  %v1196_v59 = vmul.f32 0.044715, %v1068_v18  ;;  %v4332_v20 = vadd.f32 %v680_v58, %v3415_v61  ;;  %v1451_v50 = vmul.f32 0.7978846, %v1323_v21 }
 0x1ed   :  { %5087 = vst [vmem:[#allocation31_spill] sm:$0xff] %v4319_v62  ;;  %v944_v25 = vmul.f32 %v4319_v62, %v4319_v62  ;;  %v1198_v51 = vmul.f32 0.044715, %v1070_v10  ;;  %v1199_v15 = vmul.f32 0.044715, %v1071_v19  ;;  %v4335_v32 = vpop.eup %3124  ;;  %3130 = vtanh.f32 %v1450_v43 }
 0x1ee   :  { %5088 = vst [vmem:[#allocation18_spill] sm:$0xff] %v4332_v20  ;;  %v1073_v22 = vmul.f32 %v945_v14, %v4312_v49  ;;  %v1453_v53 = vmul.f32 0.7978846, %v1325_v1  ;;  %v1324_v54 = vadd.f32 %v1196_v59, %v4294_v0  ;;  %v946_v34 = vmul.f32 %v4332_v20, %v4332_v20  ;;  %v5089_v1 = vld [vmem:[#allocation15_spill] sm:$0xff] }
 0x1ef   :  { %v1072_v11 = vmul.f32 %v944_v25, %v4319_v62  ;;  %v1326_v18 = vadd.f32 %v1198_v51, %v4299_v23  ;;  %v1327_v58 = vadd.f32 %v1199_v15, %v4302_v28  ;;  %v1676_v30 = vadd.f32 1.0, %v4053_v44  ;;  %v491_v15 = vpop.f32.mrf.mxu0  ;;  %v684_v28 = vpop.f32.mrf.mxu1 }
 0x1f0   :  { %v1201_v21 = vmul.f32 0.044715, %v1073_v22  ;;  %v1452_v10 = vmul.f32 0.7978846, %v1324_v54  ;;  %v1074_v14 = vmul.f32 %v946_v34, %v4332_v20  ;;  %3132 = vtanh.f32 %v1451_v50 }
 0x1f1   :  { %v1200_v19 = vmul.f32 0.044715, %v1072_v11  ;;  %v780_v59 = vmul.f32 0.5, %v5089_v1  ;;  %v784_v25 = vmul.f32 0.5, %v3969_v29  ;;  %v1680_v0 = vadd.f32 1.0, %v4080_v36  ;;  %v5090_v29 = vld [vmem:[#allocation17_spill] sm:$0xff] }
 0x1f2   :  { %3134 = vtanh.f32 %v1453_v53  ;;  %v1454_v43 = vmul.f32 0.7978846, %v1326_v18  ;;  %v1329_v51 = vadd.f32 %v1201_v21, %v4312_v49  ;;  %v1202_v23 = vmul.f32 0.044715, %v1074_v14 }
 0x1f3   :  { %v1455_v22 = vmul.f32 0.7978846, %v1327_v58  ;;  %v1328_v54 = vadd.f32 %v1200_v19, %v4319_v62  ;;  %v1804_v11 = vmul.f32 %v1676_v30, %v780_v59  ;;  %v1808_v34 = vmul.f32 %v1680_v0, %v784_v25  ;;  %v493_v19 = vpop.f32.mrf.mxu0  ;;  %v686_v59 = vpop.f32.mrf.mxu1 }
 0x1f4   :  { %v4350_v44 = vpop.eup %3126  ;;  %3136 = vtanh.f32 %v1452_v10  ;;  %v1330_v50 = vadd.f32 %v1202_v23, %v4332_v20  ;;  %v782_v1 = vmul.f32 0.5, %v5090_v29  ;;  %v786_v53 = vmul.f32 0.5, %v3982_v7  ;;  %v5093_v29 = vld [vmem:[#allocation19_spill] sm:$0xff] }
 0x1f5   :  { %v1904_v36 = vpack.c.bf16 %v1808_v34, %v1804_v11  ;;  %v1678_v18 = vadd.f32 1.0, %v4059_v3  ;;  %v1682_v21 = vadd.f32 1.0, %v4085_v2  ;;  %3138 = vtanh.f32 %v1454_v43  ;;  %v5091_v11 = vld [vmem:[#allocation50_spill] sm:$0xff]  ;;  %v5092_v34 = vld [vmem:[#allocation28_spill] sm:$0xff]  ;;  %v688_v20 = vpop.f32.mrf.mxu1 }
 0x1f6   :  { %v1457_v58 = vmul.f32 0.7978846, %v1329_v51  ;;  %v492_v30 = vadd.f32 %v491_v15, %v3409_v56  ;;  %v4359_v0 = vadd.f32 %v684_v28, %v3411_v57  ;;  %3140 = vtanh.f32 %v1455_v22 }
 0x1f7   :  { %v1456_v10 = vmul.f32 0.7978846, %v1328_v54  ;;  %2290 = vmatprep.mubr.bf16.mxu0 %v1904_v36  ;;  %v1806_v23 = vmul.f32 %v1678_v18, %v782_v1  ;;  %v1810_v14 = vmul.f32 %v1682_v21, %v786_v53  ;;  %v1458_v25 = vmul.f32 0.7978846, %v1330_v50  ;;  %v5094_v36 = vld [vmem:[#allocation33_spill] sm:$0xff]  ;;  %v5095_v53 = vld [vmem:[#allocation23_spill] sm:$0xff]  ;;  %v495_v21 = vpop.f32.mrf.mxu0 }
 0x1f8   :  { %v947_v7 = vmul.f32 %v492_v30, %v492_v30  ;;  %v779_v3 = vmul.f32 0.5, %v5091_v11  ;;  %v783_v2 = vmul.f32 0.5, %v5092_v34  ;;  %v4363_v43 = vpop.eup %3128  ;;  %v949_v28 = vmul.f32 %v4359_v0, %v4359_v0 }
 0x1f9   :  { %v1906_v51 = vpack.c.bf16 %v1810_v14, %v1806_v23  ;;  %v1675_v15 = vadd.f32 1.0, %v4018_v47  ;;  %v1679_v22 = vadd.f32 1.0, %v4065_v38  ;;  %v781_v1 = vmul.f32 0.5, %v5093_v29  ;;  %v5096_v14 = vld [vmem:[#allocation39_spill] sm:$0xff] }
 0x1fa   :  { %v1075_v54 = vmul.f32 %v947_v7, %v492_v30  ;;  %v785_v50 = vmul.f32 0.5, %v5094_v36  ;;  %v1677_v18 = vadd.f32 1.0, %v5095_v53  ;;  %v1077_v11 = vmul.f32 %v949_v28, %v4359_v0  ;;  %v4374_v62 = vpop.eup %3130 }
 0x1fb   :  { %2451 = vmatprep.mubr.bf16.mxu1 %v1906_v51  ;;  %v1803_v34 = vmul.f32 %v1675_v15, %v779_v3  ;;  %v1807_v23 = vmul.f32 %v1679_v22, %v783_v2  ;;  %v1681_v49 = vadd.f32 1.0, %v5096_v14  ;;  %v4377_v7 = vadd.f32 %v493_v19, %v3413_v60 }
 0x1fc   :  { %v1203_v47 = vmul.f32 0.044715, %v1075_v54  ;;  %v1805_v38 = vmul.f32 %v1677_v18, %v781_v1  ;;  %v4380_v29 = vadd.f32 %v686_v59, %v3415_v61  ;;  %v1205_v36 = vmul.f32 0.044715, %v1077_v11  ;;  %v497_v59 = vpop.f32.mrf.mxu0  ;;  %v690_v18 = vpop.f32.mrf.mxu1 }
 0x1fd   :  { %5097 = vst [vmem:[#allocation45_spill] sm:$0xff] %v4377_v7  ;;  %v1903_v53 = vpack.c.bf16 %v1807_v23, %v1803_v34  ;;  %v1809_v51 = vmul.f32 %v1681_v49, %v785_v50  ;;  %v4383_v28 = vadd.f32 %v495_v21, %v3409_v56  ;;  %v4385_v3 = vpop.eup %3132  ;;  %v948_v15 = vmul.f32 %v4377_v7, %v4377_v7 }
 0x1fe   :  { %5098 = vst [vmem:[#allocation48_spill] sm:$0xff] %v4380_v29  ;;  %v1331_v2 = vadd.f32 %v1203_v47, %v492_v30  ;;  %v950_v22 = vmul.f32 %v4380_v29, %v4380_v29  ;;  %v4392_v19 = vadd.f32 %v688_v20, %v3411_v57  ;;  %3142 = vtanh.f32 %v1457_v58 }
 0x1ff   :  { %v4394_v54 = vpop.eup %3134  ;;  %v1333_v49 = vadd.f32 %v1205_v36, %v4359_v0  ;;  %2291 = vmatmul.mubr.bf16.gmra.mxu0 %v1903_v53  ;;  %v1905_v1 = vpack.c.bf16 %v1809_v51, %v1805_v38  ;;  %v951_v50 = vmul.f32 %v4383_v28, %v4383_v28  ;;  %3144 = vtanh.f32 %v1456_v10 }
 0x200   :  { %5099 = vst [vmem:[#allocation38_spill] sm:$0xff] %v4394_v54  ;;  %v1459_v21 = vmul.f32 0.7978846, %v1331_v2  ;;  %v1076_v11 = vmul.f32 %v948_v15, %v4377_v7  ;;  %v1078_v34 = vmul.f32 %v950_v22, %v4380_v29  ;;  %3146 = vtanh.f32 %v1458_v25 }
 0x201   :  { %v4401_v20 = vpop.eup %3136  ;;  %2452 = vmatmul.mubr.bf16.gmra.mxu1 %v1905_v1  ;;  %v1079_v58 = vmul.f32 %v951_v50, %v4383_v28  ;;  %v953_v23 = vmul.f32 %v4392_v19, %v4392_v19  ;;  %v4407_v14 = vadd.f32 %v497_v59, %v3413_v60  ;;  %v4409_v47 = vmul.f32 0.5, %v492_v30 }
 0x202   :  { %v1204_v10 = vmul.f32 0.044715, %v1076_v11  ;;  %v1206_v38 = vmul.f32 0.044715, %v1078_v34  ;;  %v4412_v36 = vadd.f32 %v690_v18, %v3415_v61  ;;  %v4414_v53 = vpop.eup %3138  ;;  %v1461_v51 = vmul.f32 0.7978846, %v1333_v49 }
 0x203   :  { %5100 = vst [vmem:[#allocation29_spill] sm:$0xff] %v4409_v47  ;;  %v1207_v25 = vmul.f32 0.044715, %v1079_v58  ;;  %v1081_v2 = vmul.f32 %v953_v23, %v4392_v19  ;;  %v952_v15 = vmul.f32 %v4407_v14, %v4407_v14  ;;  %v4419_v22 = vpop.eup %3140  ;;  %3148 = vtanh.f32 %v1459_v21  ;;  %v5102_v11 = vld [vmem:[#allocation27_spill] sm:$0xff] }
 0x204   :  { %5101 = vst [vmem:[#allocation15_spill] sm:$0xff] %v4419_v22  ;;  %v1332_v30 = vadd.f32 %v1204_v10, %v4377_v7  ;;  %v1334_v59 = vadd.f32 %v1206_v38, %v4380_v29  ;;  %v954_v1 = vmul.f32 %v4412_v36, %v4412_v36  ;;  %v788_v34 = vmul.f32 0.5, %v5102_v11  ;;  %v501_v11 = vpop.f32.mrf.mxu0  ;;  %v694_v22 = vpop.f32.mrf.mxu1 }
 0x205   :  { %v1335_v50 = vadd.f32 %v1207_v25, %v4383_v28  ;;  %v1209_v18 = vmul.f32 0.044715, %v1081_v2  ;;  %v1080_v49 = vmul.f32 %v952_v15, %v4407_v14  ;;  %v792_v47 = vmul.f32 0.5, %v4057_v42 }
 0x206   :  { %v1460_v58 = vmul.f32 0.7978846, %v1332_v30  ;;  %v1082_v23 = vmul.f32 %v954_v1, %v4412_v36  ;;  %v1684_v21 = vadd.f32 1.0, %v4141_v35  ;;  %v1462_v10 = vmul.f32 0.7978846, %v1334_v59  ;;  %v5104_v59 = vld [vmem:[#allocation20_spill] sm:$0xff] }
 0x207   :  { %v1337_v38 = vadd.f32 %v1209_v18, %v4392_v19  ;;  %v1208_v29 = vmul.f32 0.044715, %v1080_v49  ;;  %v1688_v7 = vadd.f32 1.0, %v4163_v12  ;;  %v4434_v25 = vmul.f32 0.5, %v4359_v0 }
 0x208   :  { %3150 = vtanh.f32 %v1461_v51  ;;  %v1463_v2 = vmul.f32 0.7978846, %v1335_v50  ;;  %v1210_v15 = vmul.f32 0.044715, %v1082_v23  ;;  %v1812_v54 = vmul.f32 %v1684_v21, %v788_v34  ;;  %v503_v34 = vpop.f32.mrf.mxu0 }
 0x209   :  { %5103 = vst [vmem:[#allocation17_spill] sm:$0xff] %v4434_v25  ;;  %v1465_v30 = vmul.f32 0.7978846, %v1337_v38  ;;  %v1336_v1 = vadd.f32 %v1208_v29, %v4407_v14  ;;  %v1816_v42 = vmul.f32 %v1688_v7, %v792_v47  ;;  %3152 = vtanh.f32 %v1460_v58 }
 0x20a   :  { %v1338_v35 = vadd.f32 %v1210_v15, %v4412_v36  ;;  %v790_v18 = vmul.f32 0.5, %v5104_v59  ;;  %v1686_v12 = vadd.f32 1.0, %v4148_v55  ;;  %3154 = vtanh.f32 %v1462_v10  ;;  %v5106_v10 = vld [vmem:[#allocation22_spill] sm:$0xff] }
 0x20b   :  { %v1908_v0 = vpack.c.bf16 %v1816_v42, %v1812_v54  ;;  %v794_v51 = vmul.f32 0.5, %v4070_v41  ;;  %v1690_v50 = vadd.f32 1.0, %v4199_v4  ;;  %v4442_v49 = vpop.eup %3142  ;;  %v4445_v29 = vmul.f32 0.5, %v4383_v28  ;;  %v696_v4 = vpop.f32.mrf.mxu1  ;;  %v5108_v59 = vld [vmem:[#allocation26_spill] sm:$0xff] }
 0x20c   :  { %3156 = vtanh.f32 %v1463_v2  ;;  %v502_v7 = vadd.f32 %v501_v11, %v3409_v56  ;;  %v4449_v47 = vadd.f32 %v694_v22, %v3411_v57  ;;  %v4451_v58 = vpop.eup %3144  ;;  %v1464_v55 = vmul.f32 0.7978846, %v1336_v1  ;;  %v5107_v2 = vld [vmem:[#allocation24_spill] sm:$0xff] }
 0x20d   :  { %5105 = vst [vmem:[#allocation50_spill] sm:$0xff] %v4445_v29  ;;  %3158 = vtanh.f32 %v1465_v30  ;;  %2298 = vmatprep.mubr.bf16.mxu0 %v1908_v0  ;;  %v1814_v41 = vmul.f32 %v1686_v12, %v790_v18  ;;  %v1818_v54 = vmul.f32 %v1690_v50, %v794_v51  ;;  %v4453_v23 = vpop.eup %3146  ;;  %v1466_v21 = vmul.f32 0.7978846, %v1338_v35  ;;  %v505_v0 = vpop.f32.mrf.mxu0 }
 0x20e   :  { %v955_v28 = vmul.f32 %v502_v7, %v502_v7  ;;  %v787_v38 = vmul.f32 0.5, %v5106_v10  ;;  %v791_v15 = vmul.f32 0.5, %v5107_v2  ;;  %v957_v22 = vmul.f32 %v4449_v47, %v4449_v47 }
 0x20f   :  { %v1910_v11 = vpack.c.bf16 %v1818_v54, %v1814_v41  ;;  %v1683_v42 = vadd.f32 1.0, %v4110_v45  ;;  %v1687_v30 = vadd.f32 1.0, %v4153_v46  ;;  %v789_v18 = vmul.f32 0.5, %v5108_v59  ;;  %v698_v45 = vpop.f32.mrf.mxu1 }
 0x210   :  { %v1083_v1 = vmul.f32 %v955_v28, %v502_v7  ;;  %v793_v12 = vmul.f32 0.5, %v4051_v40  ;;  %v1685_v35 = vadd.f32 1.0, %v4115_v9  ;;  %v4464_v51 = vpop.eup %3148  ;;  %v1085_v50 = vmul.f32 %v957_v22, %v4449_v47  ;;  %v507_v22 = vpop.f32.mrf.mxu0 }
 0x211   :  { %2459 = vmatprep.mubr.bf16.mxu1 %v1910_v11  ;;  %v1811_v41 = vmul.f32 %v1683_v42, %v787_v38  ;;  %v1815_v54 = vmul.f32 %v1687_v30, %v791_v15  ;;  %v1689_v10 = vadd.f32 1.0, %v4160_v8  ;;  %v4469_v28 = vadd.f32 %v503_v34, %v3413_v60 }
 0x212   :  { %v1211_v2 = vmul.f32 0.044715, %v1083_v1  ;;  %v1813_v46 = vmul.f32 %v1685_v35, %v789_v18  ;;  %v4472_v40 = vadd.f32 %v696_v4, %v3415_v61  ;;  %v1213_v9 = vmul.f32 0.044715, %v1085_v50  ;;  %v700_v1 = vpop.f32.mrf.mxu1 }
 0x213   :  { %v1907_v59 = vpack.c.bf16 %v1815_v54, %v1811_v41  ;;  %v1817_v25 = vmul.f32 %v1689_v10, %v793_v12  ;;  %v506_v11 = vadd.f32 %v505_v0, %v3409_v56  ;;  %v956_v38 = vmul.f32 %v4469_v28, %v4469_v28 }
 0x214   :  { %v1339_v29 = vadd.f32 %v1211_v2, %v502_v7  ;;  %v958_v8 = vmul.f32 %v4472_v40, %v4472_v40  ;;  %v699_v15 = vadd.f32 %v698_v45, %v3411_v57  ;;  %v4483_v4 = vmul.f32 0.5, %v4392_v19 }
 0x215   :  { %v4480_v34 = vpop.eup %3150  ;;  %3160 = vtanh.f32 %v1464_v55  ;;  %2299 = vmatmul.mubr.bf16.gmra.mxu0 %v1907_v59  ;;  %v1909_v42 = vpack.c.bf16 %v1817_v25, %v1813_v46  ;;  %v959_v30 = vmul.f32 %v506_v11, %v506_v11  ;;  %v1341_v18 = vadd.f32 %v1213_v9, %v4449_v47 }
 0x216   :  { %3162 = vtanh.f32 %v1466_v21  ;;  %v1084_v12 = vmul.f32 %v956_v38, %v4469_v28  ;;  %v1086_v35 = vmul.f32 %v958_v8, %v4472_v40  ;;  %v4488_v0 = vpop.eup %3152  ;;  %v4490_v50 = vmul.f32 0.5, %v502_v7 }
 0x217   :  { %2460 = vmatmul.mubr.bf16.gmra.mxu1 %v1909_v42  ;;  %v1087_v41 = vmul.f32 %v959_v30, %v506_v11  ;;  %v961_v19 = vmul.f32 %v699_v15, %v699_v15  ;;  %v4493_v55 = vadd.f32 %v507_v22, %v3413_v60  ;;  %v4495_v25 = vpop.eup %3154  ;;  %v1467_v54 = vmul.f32 0.7978846, %v1339_v29 }
 0x218   :  { %5109 = vst [vmem:[#allocation28_spill] sm:$0xff] %v4490_v50  ;;  %v1212_v21 = vmul.f32 0.044715, %v1084_v12  ;;  %v1214_v10 = vmul.f32 0.044715, %v1086_v35  ;;  %v4498_v45 = vadd.f32 %v700_v1, %v3415_v61  ;;  %v4503_v46 = vmul.f32 0.5, %v4449_v47  ;;  %v511_v50 = vpop.f32.mrf.mxu0 }
 0x219   :  { %v4500_v2 = vpop.eup %3156  ;;  %v1215_v7 = vmul.f32 0.044715, %v1087_v41  ;;  %v1089_v9 = vmul.f32 %v961_v19, %v699_v15  ;;  %v960_v59 = vmul.f32 %v4493_v55, %v4493_v55  ;;  %v1469_v8 = vmul.f32 0.7978846, %v1341_v18 }
 0x21a   :  { %5110 = vst [vmem:[#allocation19_spill] sm:$0xff] %v4498_v45  ;;  %5111 = vst [vmem:[#allocation33_spill] sm:$0xff] %v4503_v46  ;;  %v4507_v38 = vpop.eup %3158  ;;  %v1340_v29 = vadd.f32 %v1212_v21, %v4469_v28  ;;  %v1342_v22 = vadd.f32 %v1214_v10, %v4472_v40  ;;  %v962_v42 = vmul.f32 %v4498_v45, %v4498_v45  ;;  %v4513_v30 = vmul.f32 0.5, %v506_v11 }
 0x21b   :  { %v1343_v1 = vadd.f32 %v1215_v7, %v506_v11  ;;  %v1217_v47 = vmul.f32 0.044715, %v1089_v9  ;;  %v1088_v12 = vmul.f32 %v960_v59, %v4493_v55  ;;  %3164 = vtanh.f32 %v1467_v54 }
 0x21c   :  { %5112 = vst [vmem:[#allocation23_spill] sm:$0xff] %v4513_v30  ;;  %v1468_v35 = vmul.f32 0.7978846, %v1340_v29  ;;  %v1090_v41 = vmul.f32 %v962_v42, %v4498_v45  ;;  %v1692_v19 = vadd.f32 1.0, %v4233_v5  ;;  %v796_v21 = vmul.f32 0.5, %v4122_v31  ;;  %v704_v42 = vpop.f32.mrf.mxu1 }
 0x21d   :  { %v1216_v18 = vmul.f32 0.044715, %v1088_v12  ;;  %v800_v10 = vmul.f32 0.5, %v4146_v48  ;;  %v1696_v46 = vadd.f32 1.0, %v4277_v17  ;;  %3166 = vtanh.f32 %v1469_v8 }
 0x21e   :  { %v1470_v30 = vmul.f32 0.7978846, %v1342_v22  ;;  %v1345_v11 = vadd.f32 %v1217_v47, %v699_v15  ;;  %v1218_v7 = vmul.f32 0.044715, %v1090_v41  ;;  %v1471_v9 = vmul.f32 0.7978846, %v1343_v1  ;;  %v513_v1 = vpop.f32.mrf.mxu0 }
 0x21f   :  { %v1344_v54 = vadd.f32 %v1216_v18, %v4493_v55  ;;  %v1820_v59 = vmul.f32 %v1692_v19, %v796_v21  ;;  %v1824_v29 = vmul.f32 %v1696_v46, %v800_v10  ;;  %3168 = vtanh.f32 %v1468_v35  ;;  %v5114_v21 = vld [vmem:[#allocation21_spill] sm:$0xff] }
 0x220   :  { %v4522_v5 = vmul.f32 0.5, %v699_v15  ;;  %v1346_v31 = vadd.f32 %v1218_v7, %v4498_v45  ;;  %v1694_v48 = vadd.f32 1.0, %v4237_v24  ;;  %v798_v17 = vmul.f32 0.5, %v4125_v63  ;;  %v5115_v7 = vld [vmem:[#allocation40_spill] sm:$0xff] }
 0x221   :  { %v1912_v12 = vpack.c.bf16 %v1824_v29, %v1820_v59  ;;  %v802_v8 = vmul.f32 0.5, %v4158_v27  ;;  %v1698_v22 = vadd.f32 1.0, %v4287_v26  ;;  %3170 = vtanh.f32 %v1470_v30  ;;  %v706_v27 = vpop.f32.mrf.mxu1 }
 0x222   :  { %5113 = vst [vmem:[#allocation39_spill] sm:$0xff] %v4522_v5  ;;  %v4529_v47 = vpop.eup %3160  ;;  %v1473_v46 = vmul.f32 0.7978846, %v1345_v11  ;;  %v512_v35 = vadd.f32 %v511_v50, %v3409_v56  ;;  %v4533_v15 = vadd.f32 %v704_v42, %v3411_v57  ;;  %3172 = vtanh.f32 %v1471_v9  ;;  %v515_v9 = vpop.f32.mrf.mxu0  ;;  %v5116_v42 = vld [vmem:[#allocation25_spill] sm:$0xff] }
 0x223   :  { %v4535_v41 = vpop.eup %3162  ;;  %v1472_v24 = vmul.f32 0.7978846, %v1344_v54  ;;  %2306 = vmatprep.mubr.bf16.mxu0 %v1912_v12  ;;  %v1822_v63 = vmul.f32 %v1694_v48, %v798_v17  ;;  %v1826_v19 = vmul.f32 %v1698_v22, %v802_v8  ;;  %v1474_v18 = vmul.f32 0.7978846, %v1346_v31  ;;  %v5117_v31 = vld [vmem:[#allocation43_spill] sm:$0xff] }
 0x224   :  { %v963_v26 = vmul.f32 %v512_v35, %v512_v35  ;;  %v795_v10 = vmul.f32 0.5, %v5114_v21  ;;  %v799_v30 = vmul.f32 0.5, %v5115_v7  ;;  %v965_v50 = vmul.f32 %v4533_v15, %v4533_v15  ;;  %v708_v7 = vpop.f32.mrf.mxu1 }
 0x225   :  { %v1914_v11 = vpack.c.bf16 %v1826_v19, %v1822_v63  ;;  %v1691_v59 = vadd.f32 1.0, %v4203_v6  ;;  %v1695_v29 = vadd.f32 1.0, %v4246_v16  ;;  %v797_v48 = vmul.f32 0.5, %v5116_v42  ;;  %v5118_v19 = vld [vmem:[#allocation52_spill] sm:$0xff] }
 0x226   :  { %v1091_v54 = vmul.f32 %v963_v26, %v512_v35  ;;  %v801_v12 = vmul.f32 0.5, %v4139_v39  ;;  %v1693_v17 = vadd.f32 1.0, %v5117_v31  ;;  %v1093_v8 = vmul.f32 %v965_v50, %v4533_v15 }
 0x227   :  { %2467 = vmatprep.mubr.bf16.mxu1 %v1914_v11  ;;  %v1819_v22 = vmul.f32 %v1691_v59, %v795_v10  ;;  %v1823_v63 = vmul.f32 %v1695_v29, %v799_v30  ;;  %v1697_v21 = vadd.f32 1.0, %v5118_v19  ;;  %v4549_v16 = vadd.f32 %v513_v1, %v3413_v60  ;;  %v517_v10 = vpop.f32.mrf.mxu0 }
 0x228   :  { %v1219_v5 = vmul.f32 0.044715, %v1091_v54  ;;  %v1821_v6 = vmul.f32 %v1693_v17, %v797_v48  ;;  %v4552_v26 = vadd.f32 %v706_v27, %v3415_v61  ;;  %v4554_v42 = vpop.eup %3164  ;;  %v1221_v39 = vmul.f32 0.044715, %v1093_v8 }
 0x229   :  { %5119 = vst [vmem:[#allocation27_spill] sm:$0xff] %v4549_v16  ;;  %5121 = vst [vmem:[#allocation22_spill] sm:$0xff] %v4554_v42  ;;  %v1911_v31 = vpack.c.bf16 %v1823_v63, %v1819_v22  ;;  %v1825_v11 = vmul.f32 %v1697_v21, %v801_v12  ;;  %v4557_v50 = vadd.f32 %v515_v9, %v3409_v56  ;;  %3174 = vtanh.f32 %v1473_v46  ;;  %v521_v21 = vpop.f32.mrf.mxu0 }
 0x22a   :  { %5120 = vst [vmem:[#allocation20_spill] sm:$0xff] %v4552_v26  ;;  %v1347_v30 = vadd.f32 %v1219_v5, %v512_v35  ;;  %v964_v59 = vmul.f32 %v4549_v16, %v4549_v16  ;;  %v966_v1 = vmul.f32 %v4552_v26, %v4552_v26  ;;  %v4564_v29 = vadd.f32 %v708_v7, %v3411_v57  ;;  %v4566_v27 = vpop.eup %3166  ;;  %v710_v5 = vpop.f32.mrf.mxu1 }
 0x22b   :  { %5122 = vst [vmem:[#allocation24_spill] sm:$0xff] %v4566_v27  ;;  %v1349_v54 = vadd.f32 %v1221_v39, %v4533_v15  ;;  %2307 = vmatmul.mubr.bf16.gmra.mxu0 %v1911_v31  ;;  %v1913_v48 = vpack.c.bf16 %v1825_v11, %v1821_v6  ;;  %v967_v9 = vmul.f32 %v4557_v50, %v4557_v50  ;;  %3176 = vtanh.f32 %v1472_v24 }
 0x22c   :  { %v1475_v12 = vmul.f32 0.7978846, %v1347_v30  ;;  %v1092_v17 = vmul.f32 %v964_v59, %v4549_v16  ;;  %v1094_v8 = vmul.f32 %v966_v1, %v4552_v26  ;;  %v4573_v22 = vpop.eup %3168  ;;  %3178 = vtanh.f32 %v1474_v18  ;;  %v714_v1 = vpop.f32.mrf.mxu1 }
 0x22d   :  { %2468 = vmatmul.mubr.bf16.gmra.mxu1 %v1913_v48  ;;  %v1095_v46 = vmul.f32 %v967_v9, %v4557_v50  ;;  %v969_v63 = vmul.f32 %v4564_v29, %v4564_v29  ;;  %v4579_v19 = vadd.f32 %v517_v10, %v3413_v60  ;;  %v4581_v7 = vmul.f32 0.5, %v512_v35 }
 0x22e   :  { %v1220_v24 = vmul.f32 0.044715, %v1092_v17  ;;  %v1222_v6 = vmul.f32 0.044715, %v1094_v8  ;;  %v4584_v39 = vadd.f32 %v710_v5, %v3415_v61  ;;  %v4586_v31 = vpop.eup %3170  ;;  %v1477_v18 = vmul.f32 0.7978846, %v1349_v54 }
 0x22f   :  { %5123 = vst [vmem:[#allocation26_spill] sm:$0xff] %v4581_v7  ;;  %5124 = vst [vmem:[#allocation21_spill] sm:$0xff] %v4586_v31  ;;  %v1223_v11 = vmul.f32 0.044715, %v1095_v46  ;;  %v1097_v30 = vmul.f32 %v969_v63, %v4564_v29  ;;  %v968_v59 = vmul.f32 %v4579_v19, %v4579_v19  ;;  %v4591_v10 = vpop.eup %3172  ;;  %3180 = vtanh.f32 %v1475_v12  ;;  %v5126_v8 = vld [vmem:[#allocation30_spill] sm:$0xff]  ;;  %v4600_v63 = vpop.f32.mrf.mxu0 }
 0x230   :  { %5125 = vst [vmem:[#allocation40_spill] sm:$0xff] %v4591_v10  ;;  %v1348_v35 = vadd.f32 %v1220_v24, %v4549_v16  ;;  %v1350_v48 = vadd.f32 %v1222_v6, %v4552_v26  ;;  %v970_v9 = vmul.f32 %v4584_v39, %v4584_v39  ;;  %v804_v46 = vmul.f32 0.5, %v5126_v8  ;;  %v5127_v12 = vld [vmem:[#allocation42_spill] sm:$0xff] }
 0x231   :  { %v1351_v5 = vadd.f32 %v1223_v11, %v4557_v50  ;;  %v1225_v54 = vmul.f32 0.044715, %v1097_v30  ;;  %v1096_v17 = vmul.f32 %v968_v59, %v4579_v19  ;;  %v808_v10 = vmul.f32 0.5, %v5127_v12  ;;  %v716_v30 = vpop.f32.mrf.mxu1  ;;  %v525_v45 = vpop.f32.mrf.mxu0 }
 0x232   :  { %v1476_v7 = vmul.f32 0.7978846, %v1348_v35  ;;  %v1098_v27 = vmul.f32 %v970_v9, %v4584_v39  ;;  %v1700_v24 = vadd.f32 1.0, %v4321_v13  ;;  %v1478_v6 = vmul.f32 0.7978846, %v1350_v48  ;;  %v5129_v48 = vld [vmem:[#allocation37_spill] sm:$0xff] }
 0x233   :  { %v1353_v26 = vadd.f32 %v1225_v54, %v4564_v29  ;;  %v1224_v16 = vmul.f32 0.044715, %v1096_v17  ;;  %v1704_v11 = vadd.f32 1.0, %v4363_v43  ;;  %v4608_v59 = vmul.f32 0.5, %v4533_v15  ;;  %v5130_v15 = vld [vmem:[#allocation51_spill] sm:$0xff] }
 0x234   :  { %3182 = vtanh.f32 %v1477_v18  ;;  %v1479_v8 = vmul.f32 0.7978846, %v1351_v5  ;;  %v1226_v42 = vmul.f32 0.044715, %v1098_v27  ;;  %v1828_v31 = vmul.f32 %v1700_v24, %v804_v46  ;;  %v718_v27 = vpop.f32.mrf.mxu1  ;;  %v527_v5 = vpop.f32.mrf.mxu0 }
 0x235   :  { %5128 = vst [vmem:[#allocation25_spill] sm:$0xff] %v4608_v59  ;;  %v1481_v35 = vmul.f32 0.7978846, %v1353_v26  ;;  %v1352_v9 = vadd.f32 %v1224_v16, %v4579_v19  ;;  %v1832_v12 = vmul.f32 %v1704_v11, %v808_v10  ;;  %3184 = vtanh.f32 %v1476_v7  ;;  %v5133_v11 = vld [vmem:[#allocation32_spill] sm:$0xff] }
 0x236   :  { %v1354_v13 = vadd.f32 %v1226_v42, %v4584_v39  ;;  %v806_v54 = vmul.f32 0.5, %v5129_v48  ;;  %v1702_v43 = vadd.f32 1.0, %v4327_v33  ;;  %3186 = vtanh.f32 %v1478_v6  ;;  %v4616_v26 = vpop.eup %3174  ;;  %v5132_v6 = vld [vmem:[#allocation34_spill] sm:$0xff]  ;;  %v4639_v48 = vpop.f32.mrf.mxu0 }
 0x237   :  { %v1916_v17 = vpack.c.bf16 %v1832_v12, %v1828_v31  ;;  %v810_v59 = vmul.f32 0.5, %v5130_v15  ;;  %v1706_v18 = vadd.f32 1.0, %v4374_v62  ;;  %v4619_v16 = vmul.f32 0.5, %v4557_v50  ;;  %5134 = vst [vmem:[#allocation52_spill] sm:$0xff] %v4639_v48 }
 0x238   :  { %3188 = vtanh.f32 %v1479_v8  ;;  %v4622_v7 = vadd.f32 %v521_v21, %v3409_v56  ;;  %v4625_v42 = vadd.f32 %v714_v1, %v3411_v57  ;;  %v4627_v33 = vpop.eup %3176  ;;  %v1480_v31 = vmul.f32 0.7978846, %v1352_v9 }
 0x239   :  { %5131 = vst [vmem:[#allocation43_spill] sm:$0xff] %v4619_v16  ;;  %3190 = vtanh.f32 %v1481_v35  ;;  %2314 = vmatprep.mubr.bf16.mxu0 %v1916_v17  ;;  %v1830_v10 = vmul.f32 %v1702_v43, %v806_v54  ;;  %v1834_v62 = vmul.f32 %v1706_v18, %v810_v59  ;;  %v4629_v46 = vpop.eup %3178  ;;  %v1482_v24 = vmul.f32 0.7978846, %v1354_v13  ;;  %v720_v59 = vpop.f32.mrf.mxu1  ;;  %v5135_v54 = vld [vmem:[#allocation35_spill] sm:$0xff]  ;;  %v5136_v17 = vld [vmem:[#allocation41_spill] sm:$0xff] }
 0x23a   :  { %v971_v50 = vmul.f32 %v4622_v7, %v4622_v7  ;;  %v803_v21 = vmul.f32 0.5, %v5132_v6  ;;  %v807_v8 = vmul.f32 0.5, %v5133_v11  ;;  %v973_v12 = vmul.f32 %v4625_v42, %v4625_v42 }
 0x23b   :  { %v1918_v1 = vpack.c.bf16 %v1834_v62, %v1830_v10  ;;  %v1699_v35 = vadd.f32 1.0, %v4296_v37  ;;  %v1703_v9 = vadd.f32 1.0, %v4335_v32  ;;  %v805_v43 = vmul.f32 0.5, %v5135_v54  ;;  %v4649_v11 = vpop.f32.mrf.mxu1 }
 0x23c   :  { %v1099_v13 = vmul.f32 %v971_v50, %v4622_v7  ;;  %v809_v15 = vmul.f32 0.5, %v5136_v17  ;;  %v1701_v18 = vadd.f32 1.0, %v4314_v52  ;;  %v4645_v6 = vpop.eup %3180  ;;  %v1101_v10 = vmul.f32 %v973_v12, %v4625_v42 }
 0x23d   :  { %2475 = vmatprep.mubr.bf16.mxu1 %v1918_v1  ;;  %v1827_v62 = vmul.f32 %v1699_v35, %v803_v21  ;;  %v1831_v37 = vmul.f32 %v1703_v9, %v807_v8  ;;  %v1705_v32 = vadd.f32 1.0, %v4350_v44  ;;  %v4653_v50 = vadd.f32 %v4600_v63, %v3413_v60  ;;  %v4661_v21 = vpop.f32.mrf.mxu0 }
 0x23e   :  { %v1227_v48 = vmul.f32 0.044715, %v1099_v13  ;;  %v1829_v16 = vmul.f32 %v1701_v18, %v805_v43  ;;  %v4656_v54 = vadd.f32 %v716_v30, %v3415_v61  ;;  %v1229_v52 = vmul.f32 0.044715, %v1101_v10 }
 0x23f   :  { %v1915_v17 = vpack.c.bf16 %v1831_v37, %v1827_v62  ;;  %v1833_v1 = vmul.f32 %v1705_v32, %v809_v15  ;;  %v4659_v12 = vadd.f32 %v525_v45, %v3409_v56  ;;  %v972_v8 = vmul.f32 %v4653_v50, %v4653_v50  ;;  %v4688_v10 = vpop.f32.mrf.mxu0 }
 0x240   :  { %v1355_v44 = vadd.f32 %v1227_v48, %v4622_v7  ;;  %v974_v63 = vmul.f32 %v4656_v54, %v4656_v54  ;;  %v4669_v35 = vadd.f32 %v718_v27, %v3411_v57  ;;  %3192 = vtanh.f32 %v1480_v31  ;;  %v4676_v48 = vpop.f32.mrf.mxu1  ;;  %5138 = vst [vmem:[#allocation42_spill] sm:$0xff] %v4688_v10 }
 0x241   :  { %v4671_v30 = vpop.eup %3182  ;;  %v1357_v9 = vadd.f32 %v1229_v52, %v4625_v42  ;;  %2315 = vmatmul.mubr.bf16.gmra.mxu0 %v1915_v17  ;;  %v1917_v56 = vpack.c.bf16 %v1833_v1, %v1829_v16  ;;  %v975_v45 = vmul.f32 %v4659_v12, %v4659_v12  ;;  %5137 = vst [vmem:[#allocation30_spill] sm:$0xff] %v4676_v48  ;;  %3194 = vtanh.f32 %v1482_v24 }
 0x242   :  { %v1483_v13 = vmul.f32 0.7978846, %v1355_v44  ;;  %v1100_v43 = vmul.f32 %v972_v8, %v4653_v50  ;;  %v1102_v15 = vmul.f32 %v974_v63, %v4656_v54  ;;  %v4680_v57 = vpop.eup %3184  ;;  %v977_v16 = vmul.f32 %v4669_v35, %v4669_v35 }
 0x243   :  { %v1485_v27 = vmul.f32 0.7978846, %v1357_v9  ;;  %2476 = vmatmul.mubr.bf16.gmra.mxu1 %v1917_v56  ;;  %v1103_v31 = vmul.f32 %v975_v45, %v4659_v12  ;;  %v4686_v18 = vadd.f32 %v527_v5, %v3413_v60  ;;  %v4690_v24 = vpop.eup %3186  ;;  %v4693_v32 = vadd.f32 %v720_v59, %v3415_v61  ;;  %v4700_v5 = vpop.f32.mrf.mxu1  ;;  %v5140_v59 = vld [vmem:[#allocation49_spill] sm:$0xff] }
 0x244   :  { %3196 = vtanh.f32 %v1483_v13  ;;  %v1228_v62 = vmul.f32 0.044715, %v1100_v43  ;;  %v1230_v37 = vmul.f32 0.044715, %v1102_v15  ;;  %v1105_v1 = vmul.f32 %v977_v16, %v4669_v35  ;;  %5139 = vst [vmem:[#allocation37_spill] sm:$0xff] %v4700_v5  ;;  %v5141_v43 = vld [vmem:[#allocation31_spill] sm:$0xff] }
 0x245   :  { %v4695_v52 = vpop.eup %3188  ;;  %3198 = vtanh.f32 %v1485_v27  ;;  %v1231_v17 = vmul.f32 0.044715, %v1103_v31  ;;  %v976_v60 = vmul.f32 %v4686_v18, %v4686_v18  ;;  %v978_v61 = vmul.f32 %v4693_v32, %v4693_v32  ;;  %v4712_v27 = vpop.f32.mrf.mxu0 }
 0x246   :  { %v4702_v44 = vpop.eup %3190  ;;  %v1356_v8 = vadd.f32 %v1228_v62, %v4653_v50  ;;  %v1358_v63 = vadd.f32 %v1230_v37, %v4656_v54  ;;  %v812_v9 = vmul.f32 0.5, %v5140_v59  ;;  %v1233_v45 = vmul.f32 0.044715, %v1105_v1  ;;  %5142 = vst [vmem:[#allocation51_spill] sm:$0xff] %v4712_v27  ;;  %v5146_v27 = vld [vmem:[#allocation18_spill] sm:$0xff] }
 0x247   :  { %v1359_v56 = vadd.f32 %v1231_v17, %v4659_v12  ;;  %v1104_v13 = vmul.f32 %v976_v60, %v4686_v18  ;;  %v816_v15 = vmul.f32 0.5, %v5141_v43  ;;  %v1106_v62 = vmul.f32 %v978_v61, %v4693_v32  ;;  %v4718_v17 = vpop.f32.mrf.mxu1  ;;  %v5144_v61 = vld [vmem:[#allocation16_spill] sm:$0xff] }
 0x248   :  { %v1484_v31 = vmul.f32 0.7978846, %v1356_v8  ;;  %v1486_v16 = vmul.f32 0.7978846, %v1358_v63  ;;  %v1708_v37 = vadd.f32 1.0, %v4401_v20  ;;  %v1361_v10 = vadd.f32 %v1233_v45, %v4669_v35  ;;  %5143 = vst [vmem:[#allocation34_spill] sm:$0xff] %v4718_v17 }
 0x249   :  { %v1487_v5 = vmul.f32 0.7978846, %v1359_v56  ;;  %v1232_v48 = vmul.f32 0.044715, %v1104_v13  ;;  %v1712_v59 = vadd.f32 1.0, %v4451_v58  ;;  %v4721_v1 = vmul.f32 0.5, %v4564_v29  ;;  %v4725_v56 = vpop.f32.mrf.mxu0 }
 0x24a   :  { %3200 = vtanh.f32 %v1484_v31  ;;  %v1234_v60 = vmul.f32 0.044715, %v1106_v62  ;;  %v1836_v43 = vmul.f32 %v1708_v37, %v812_v9  ;;  %v814_v20 = vmul.f32 0.5, %v5144_v61  ;;  %5145 = vst [vmem:[#allocation32_spill] sm:$0xff] %v4725_v56  ;;  %v5148_v37 = vld [vmem:[#allocation36_spill] sm:$0xff] }
 0x24b   :  { %3202 = vtanh.f32 %v1486_v16  ;;  %v1360_v8 = vadd.f32 %v1232_v48, %v4686_v18  ;;  %v1840_v63 = vmul.f32 %v1712_v59, %v816_v15  ;;  %v1489_v45 = vmul.f32 0.7978846, %v1361_v10  ;;  %v4731_v16 = vpop.f32.mrf.mxu1 }
 0x24c   :  { %3204 = vtanh.f32 %v1487_v5  ;;  %v1362_v58 = vadd.f32 %v1234_v60, %v4693_v32  ;;  %v1710_v13 = vadd.f32 1.0, %v4414_v53  ;;  %v818_v31 = vmul.f32 0.5, %v5146_v27  ;;  %5147 = vst [vmem:[#allocation35_spill] sm:$0xff] %v4731_v16  ;;  %v5149_v5 = vld [vmem:[#allocation44_spill] sm:$0xff]  ;;  %v5150_v27 = vld [vmem:[#allocation15_spill] sm:$0xff] }
 0x24d   :  { %v1488_v17 = vmul.f32 0.7978846, %v1360_v8  ;;  %v1920_v29 = vpack.c.bf16 %v1840_v63, %v1836_v43  ;;  %v1714_v9 = vadd.f32 1.0, %v4453_v23  ;;  %v4733_v48 = vpop.eup %3192  ;;  %v811_v59 = vmul.f32 0.5, %v5148_v37  ;;  %v4741_v23 = vpop.f32.mrf.mxu0  ;;  %v5152_v8 = vld [vmem:[#allocation46_spill] sm:$0xff] }
 0x24e   :  { %v1490_v15 = vmul.f32 0.7978846, %v1362_v58  ;;  %v1838_v62 = vmul.f32 %v1710_v13, %v814_v20  ;;  %v815_v10 = vmul.f32 0.5, %v5149_v5  ;;  %v4737_v61 = vpop.eup %3194  ;;  %v1707_v60 = vadd.f32 1.0, %v4385_v3  ;;  %5151 = vst [vmem:[#allocation41_spill] sm:$0xff] %v4741_v23  ;;  %v5153_v58 = vld [vmem:[#allocation47_spill] sm:$0xff] }
 0x24f   :  { %3206 = vtanh.f32 %v1488_v17  ;;  %2322 = vmatprep.mubr.bf16.mxu0 %v1920_v29  ;;  %v1842_v53 = vmul.f32 %v1714_v9, %v818_v31  ;;  %v1711_v43 = vadd.f32 1.0, %v5150_v27  ;;  %v813_v63 = vmul.f32 0.5, %v5152_v8  ;;  %v5154_v13 = vld [vmem:[#allocation38_spill] sm:$0xff]  ;;  %v4749_v31 = vpop.f32.mrf.mxu1  ;;  %v5155_v27 = vld [vmem:[#allocation45_spill] sm:$0xff] }
 0x250   :  { %3208 = vtanh.f32 %v1490_v15  ;;  %v817_v20 = vmul.f32 0.5, %v5153_v58  ;;  %v1709_v37 = vadd.f32 1.0, %v5154_v13  ;;  %v1835_v56 = vmul.f32 %v1707_v60, %v811_v59  ;;  %v5156_v59 = vld [vmem:[#allocation48_spill] sm:$0xff] }
 0x251   :  { %v4746_v16 = vpop.eup %3196  ;;  %v1922_v5 = vpack.c.bf16 %v1842_v53, %v1838_v62  ;;  %v1839_v17 = vmul.f32 %v1711_v43, %v815_v10  ;;  %v1713_v29 = vadd.f32 1.0, %v4442_v49  ;;  %v820_v15 = vmul.f32 0.5, %v5155_v27  ;;  %v4758_v53 = vpop.f32.mrf.mxu0 }
 0x252   :  { %v4751_v3 = vpop.eup %3198  ;;  %v1837_v9 = vmul.f32 %v1709_v37, %v813_v63  ;;  %v824_v8 = vmul.f32 0.5, %v4407_v14  ;;  %v1716_v58 = vadd.f32 1.0, %v4488_v0  ;;  %v1720_v62 = vadd.f32 1.0, %v4529_v47 }
 0x253   :  { %2483 = vmatprep.mubr.bf16.mxu1 %v1922_v5  ;;  %v1919_v13 = vpack.c.bf16 %v1839_v17, %v1835_v56  ;;  %v1841_v23 = vmul.f32 %v1713_v29, %v817_v20  ;;  %v822_v10 = vmul.f32 0.5, %v5156_v59  ;;  %v826_v60 = vmul.f32 0.5, %v4412_v36  ;;  %v4765_v20 = vpop.f32.mrf.mxu1 }
 0x254   :  { %v1844_v49 = vmul.f32 %v1716_v58, %v820_v15  ;;  %v1718_v43 = vadd.f32 1.0, %v4495_v25  ;;  %v1722_v63 = vadd.f32 1.0, %v4535_v41  ;;  %v1848_v37 = vmul.f32 %v1720_v62, %v824_v8  ;;  %v5157_v41 = vld [vmem:[#allocation29_spill] sm:$0xff] }
 0x255   :  { %2323 = vmatmul.mubr.bf16.gmra.mxu0 %v1919_v13  ;;  %v1921_v14 = vpack.c.bf16 %v1841_v23, %v1837_v9  ;;  %v1715_v0 = vadd.f32 1.0, %v4464_v51  ;;  %v1719_v56 = vadd.f32 1.0, %v4500_v2  ;;  %v1717_v17 = vadd.f32 1.0, %v4480_v34  ;;  %v5158_v9 = vld [vmem:[#allocation50_spill] sm:$0xff]  ;;  %v4773_v51 = vpop.f32.mrf.mxu0  ;;  %v5159_v8 = vld [vmem:[#allocation17_spill] sm:$0xff] }
 0x256   :  { %v1846_v47 = vmul.f32 %v1718_v43, %v822_v10  ;;  %v1850_v5 = vmul.f32 %v1722_v63, %v826_v60  ;;  %v1721_v29 = vadd.f32 1.0, %v4507_v38  ;;  %3210 = vtanh.f32 %v1489_v45  ;;  %v5160_v43 = vld [vmem:[#allocation19_spill] sm:$0xff] }
 0x257   :  { %v4769_v36 = vpop.eup %3200  ;;  %2484 = vmatmul.mubr.bf16.gmra.mxu1 %v1921_v14  ;;  %v1924_v25 = vpack.c.bf16 %v1848_v37, %v1844_v49  ;;  %v1843_v23 = vmul.f32 %v1715_v0, %v5157_v41  ;;  %v1847_v27 = vmul.f32 %v1719_v56, %v5158_v9  ;;  %v1845_v58 = vmul.f32 %v1717_v17, %v5159_v8  ;;  %v4785_v49 = vpop.f32.mrf.mxu1  ;;  %v5162_v56 = vld [vmem:[#allocation22_spill] sm:$0xff] }
 0x258   :  { %v4775_v2 = vpop.eup %3202  ;;  %v1926_v15 = vpack.c.bf16 %v1850_v5, %v1846_v47  ;;  %v1849_v34 = vmul.f32 %v1721_v29, %v4483_v4  ;;  %v828_v38 = vmul.f32 0.5, %v4469_v28  ;;  %v832_v62 = vmul.f32 0.5, %v4493_v55  ;;  %v5161_v4 = vld [vmem:[#allocation21_spill] sm:$0xff]  ;;  %v5163_v55 = vld [vmem:[#allocation40_spill] sm:$0xff] }
 0x259   :  { %v4780_v13 = vpop.eup %3204  ;;  %2330 = vmatprep.mubr.bf16.mxu0 %v1924_v25  ;;  %v1923_v45 = vpack.c.bf16 %v1847_v27, %v1843_v23  ;;  %v1724_v59 = vadd.f32 1.0, %v4573_v22  ;;  %v1728_v10 = vadd.f32 1.0, %v4627_v33  ;;  %v830_v60 = vmul.f32 0.5, %v4472_v40  ;;  %v4793_v22 = vpop.f32.mrf.mxu0  ;;  %v5164_v25 = vld [vmem:[#allocation24_spill] sm:$0xff] }
 0x25a   :  { %2491 = vmatprep.mubr.bf16.mxu1 %v1926_v15  ;;  %v834_v63 = vmul.f32 0.5, %v5160_v43  ;;  %v1726_v14 = vadd.f32 1.0, %v5161_v4  ;;  %v1730_v28 = vadd.f32 1.0, %v4629_v46  ;;  %v1723_v47 = vadd.f32 1.0, %v5162_v56  ;;  %v5165_v15 = vld [vmem:[#allocation28_spill] sm:$0xff] }
 0x25b   :  { %v1852_v37 = vmul.f32 %v1724_v59, %v828_v38  ;;  %v1856_v0 = vmul.f32 %v1728_v10, %v832_v62  ;;  %v1727_v5 = vadd.f32 1.0, %v5163_v55  ;;  %v1725_v41 = vadd.f32 1.0, %v5164_v25  ;;  %v4801_v38 = vpop.f32.mrf.mxu1  ;;  %v5166_v59 = vld [vmem:[#allocation23_spill] sm:$0xff] }
 0x25c   :  { %v3207_v33 = vpop.eup %3206  ;;  %v1854_v17 = vmul.f32 %v1726_v14, %v830_v60  ;;  %v1858_v29 = vmul.f32 %v1730_v28, %v834_v63  ;;  %v1729_v40 = vadd.f32 1.0, %v4616_v26  ;;  %v4798_v9 = vmul.f32 0.5, %v4622_v7  ;;  %v5167_v60 = vld [vmem:[#allocation33_spill] sm:$0xff]  ;;  %v5168_v63 = vld [vmem:[#allocation27_spill] sm:$0xff]  ;;  %v5170_v28 = vld [vmem:[#allocation20_spill] sm:$0xff] }
 0x25d   :  { %v3209_v23 = vpop.eup %3208  ;;  %2331 = vmatmul.mubr.bf16.gmra.mxu0 %v1923_v45  ;;  %v1925_v46 = vpack.c.bf16 %v1849_v34, %v1845_v58  ;;  %v1928_v27 = vpack.c.bf16 %v1856_v0, %v1852_v37  ;;  %v1851_v8 = vmul.f32 %v1723_v47, %v5165_v15  ;;  %v1855_v10 = vmul.f32 %v1727_v5, %v5166_v59  ;;  %v5169_v26 = vld [vmem:[#allocation39_spill] sm:$0xff]  ;;  %v4810_v45 = vpop.f32.mrf.mxu0 }
 0x25e   :  { %v1930_v62 = vpack.c.bf16 %v1858_v29, %v1854_v17  ;;  %v1853_v43 = vmul.f32 %v1725_v41, %v5167_v60  ;;  %v836_v4 = vmul.f32 0.5, %v5168_v63  ;;  %v1857_v14 = vmul.f32 %v1729_v40, %v5169_v26 }
 0x25f   :  { %2492 = vmatmul.mubr.bf16.gmra.mxu1 %v1925_v46  ;;  %2338 = vmatprep.mubr.bf16.mxu0 %v1928_v27  ;;  %v840_v7 = vmul.f32 0.5, %v4579_v19  ;;  %v1732_v58 = vadd.f32 1.0, %v4680_v57  ;;  %v1736_v34 = vadd.f32 1.0, %v4733_v48  ;;  %v838_v37 = vmul.f32 0.5, %v5170_v28  ;;  %v4818_v57 = vpop.f32.mrf.mxu1  ;;  %v2671_v46 = vpop.f32.mrf.mxu0 }
 0x260   :  { %2499 = vmatprep.mubr.bf16.mxu1 %v1930_v62  ;;  %v842_v0 = vmul.f32 0.5, %v4584_v39  ;;  %v1734_v56 = vadd.f32 1.0, %v4690_v24  ;;  %v1738_v47 = vadd.f32 1.0, %v4737_v61  ;;  %v1731_v17 = vadd.f32 1.0, %v4645_v6  ;;  %v5171_v6 = vld [vmem:[#allocation26_spill] sm:$0xff] }
 0x261   :  { %v1860_v55 = vmul.f32 %v1732_v58, %v836_v4  ;;  %v1864_v5 = vmul.f32 %v1736_v34, %v840_v7  ;;  %v1735_v19 = vadd.f32 1.0, %v4695_v52  ;;  %v1733_v25 = vadd.f32 1.0, %v4671_v30  ;;  %v5172_v52 = vld [vmem:[#allocation43_spill] sm:$0xff]  ;;  %v2672_v58 = vpop.f32.mrf.mxu0 }
 0x262   :  { %v1862_v48 = vmul.f32 %v1734_v56, %v838_v37  ;;  %v1866_v29 = vmul.f32 %v1738_v47, %v842_v0  ;;  %v1737_v41 = vadd.f32 1.0, %v4702_v44  ;;  %v4823_v39 = vmul.f32 0.5, %v4625_v42  ;;  %v5174_v37 = vld [vmem:[#allocation52_spill] sm:$0xff] }
 0x263   :  { %v1927_v24 = vpack.c.bf16 %v1855_v10, %v1851_v8  ;;  %v1929_v40 = vpack.c.bf16 %v1857_v14, %v1853_v43  ;;  %v1932_v61 = vpack.c.bf16 %v1864_v5, %v1860_v55  ;;  %v3211_v27 = vpop.eup %3210  ;;  %v1859_v62 = vmul.f32 %v1731_v17, %v5171_v6  ;;  %v2783_v8 = vpop.f32.mrf.mxu1  ;;  %v5173_v10 = vld [vmem:[#allocation25_spill] sm:$0xff]  ;;  %v5175_v5 = vld [vmem:[#allocation30_spill] sm:$0xff] }
 0x264   :  { %v1934_v15 = vpack.c.bf16 %v1866_v29, %v1862_v48  ;;  %v1863_v59 = vmul.f32 %v1735_v19, %v5172_v52  ;;  %v844_v60 = vmul.f32 0.5, %v4653_v50  ;;  %v1865_v30 = vmul.f32 %v1737_v41, %v4721_v1  ;;  %v5176_v19 = vld [vmem:[#allocation42_spill] sm:$0xff]  ;;  %v5177_v48 = vld [vmem:[#allocation51_spill] sm:$0xff] }
 0x265   :  { %2339 = vmatmul.mubr.bf16.gmra.mxu0 %v1927_v24  ;;  %v848_v44 = vmul.f32 0.5, %v4686_v18  ;;  %v1740_v42 = vadd.f32 1.0, %v4769_v36  ;;  %v1744_v63 = vadd.f32 1.0, %v3207_v33  ;;  %v1861_v43 = vmul.f32 %v1733_v25, %v5173_v10  ;;  %v5178_v24 = vld [vmem:[#allocation37_spill] sm:$0xff] }
 0x266   :  { %2346 = vmatprep.mubr.bf16.mxu0 %v1932_v61  ;;  %v850_v4 = vmul.f32 0.5, %v4693_v32  ;;  %v1742_v26 = vadd.f32 1.0, %v4775_v2  ;;  %v1746_v14 = vadd.f32 1.0, %v3209_v23  ;;  %v846_v50 = vmul.f32 0.5, %v4656_v54  ;;  %v4842_v32 = vld [vmem:[%s4909_s4] ss:$0 sm:$0xff] }
 0x267   :  { %2500 = vmatmul.mubr.bf16.gmra.mxu1 %v1929_v40  ;;  %v1872_v7 = vmul.f32 %v1744_v63, %v848_v44  ;;  %v1739_v1 = vadd.f32 1.0, %v4746_v16  ;;  %v1743_v18 = vadd.f32 1.0, %v4780_v13  ;;  %v847_v36 = vmul.f32 0.5, %v4659_v12  ;;  %v2784_v13 = vpop.f32.mrf.mxu1  ;;  %v5180_v61 = vld [vmem:[#allocation32_spill] sm:$0xff]  ;;  %s3331_s4 = smov [#allocation10]  }
 0x268   :  { %v849_v33 = vmul.f32 0.5, %v4669_v35  ;;  %2507 = vmatprep.mubr.bf16.mxu1 %v1934_v15  ;;  %v1868_v34 = vmul.f32 %v1740_v42, %v844_v60  ;;  %v1874_v28 = vmul.f32 %v1746_v14, %v850_v4  ;;  %v1931_v2 = vpack.c.bf16 %v1863_v59, %v1859_v62  ;;  %v5181_v15 = vld [vmem:[#allocation41_spill] sm:$0xff]  ;;  %v5182_v62 = vld [vmem:[#allocation35_spill] sm:$0xff]  ;;  %s2561_s17 = sshll.u32 %s3331_s4, 4  ;;  %s2562_s17 = int_to_ptr.vmem [resolvable:$true] %s2561_s17 }
 0x269   :  { %v1933_v23 = vpack.c.bf16 %v1865_v30, %v1861_v43  ;;  %v1870_v54 = vmul.f32 %v1742_v26, %v846_v50  ;;  %v2658_v16 = vadd.f32 %v4661_v21, %v5174_v37  ;;  %v1867_v12 = vmul.f32 %v1739_v1, %v4798_v9  ;;  %v5179_v21 = vld [vmem:[#allocation34_spill] sm:$0xff]  ;;  %s3292_s18 = scalar_lea.vmem %s2562_s17, 4096  ;;  %p3297_p7 = scmp.lt.s32.totalorder %s2562_s17, %s2562_s17 }
 0x26a   :  { %v1936_v0 = vpack.c.bf16 %v1872_v7, %v1868_v34  ;;  %v1741_v35 = vadd.f32 1.0, %v4751_v3  ;;  %v1745_v56 = vadd.f32 1.0, %v3211_v27  ;;  %v1871_v47 = vmul.f32 %v1743_v18, %v847_v36  ;;  %p3293_p6 = scmp.ne.s32.totalorder %s2562_s17, %s3292_s18  ;;  %p3298_p8 = scmp.lt.s32.totalorder %s3292_s18, %s3292_s18 }
 0x26b   :  { %v2237_v55 = vadd.f32 %v2658_v16, %v4842_v32  ;;  %v2770_v17 = vadd.f32 %v5175_v5, %v4649_v11  ;;  %v2661_v29 = vadd.f32 %v5177_v48, %v5176_v19  ;;  %v2674_v25 = vpop.f32.mrf.mxu0  ;;  %v1938_v41 = vpack.c.bf16 %v1874_v28, %v1870_v54 }
 0x26c   :  { %v2773_v40 = vadd.f32 %v5179_v21, %v5178_v24  ;;  %v2664_v9 = vadd.f32 %v5181_v15, %v5180_v61  ;;  %v2667_v3 = vadd.f32 %v4773_v51, %v4758_v53  ;;  %v2776_v11 = vadd.f32 %v4749_v31, %v5182_v62  ;;  %p3299_p9 = por %p3298_p8, %p3297_p7 }
 0x26d   :  { %2347 = vmatmul.mubr.bf16.gmra.mxu0 %v1931_v2  ;;  %v2398_v27 = vadd.f32 %v2770_v17, %v2237_v55  ;;  %v2240_v6 = vadd.f32 %v2661_v29, %v4842_v32  ;;  %v2670_v52 = vadd.f32 %v4810_v45, %v4793_v22  ;;  %v2786_v59 = vpop.f32.mrf.mxu1  ;;  %v2675_v60 = vpop.f32.mrf.mxu0  ;;  %v2779_v53 = vadd.f32 %v4785_v49, %v4765_v20 }
 0x26e   :  { %2354 = vmatprep.mubr.bf16.mxu0 %v1936_v0  ;;  %v2245_v30 = vadd.f32 %v2664_v9, %v4842_v32  ;;  %v2248_v44 = vadd.f32 %v2667_v3, %v4842_v32  ;;  %v2673_v51 = vadd.f32 %v2672_v58, %v2671_v46  ;;  %v2782_v31 = vadd.f32 %v4818_v57, %v4801_v38  ;;  %p3300_p10 = pnand %p3299_p9, %p3293_p6 }
 0x26f   :  { %2508 = vmatmul.mubr.bf16.gmra.mxu1 %v1933_v23  ;;  %2524 = vst [vmem:[#allocation10] sm:$0xff] %v2398_v27  ;;  %v2401_v42 = vadd.f32 %v2773_v40, %v2240_v6  ;;  %v2253_v63 = vadd.f32 %v2670_v52, %v4842_v32  ;;  %v2676_v22 = vadd.f32 %v2675_v60, %v2674_v25  ;;  %v2787_v45 = vpop.f32.mrf.mxu1  ;;  %v2677_v10 = vpop.f32.mrf.mxu0 }
 0x270   :  { %2515 = vmatprep.mubr.bf16.mxu1 %v1938_v41  ;;  %v2406_v43 = vadd.f32 %v2776_v11, %v2245_v30  ;;  %v2409_v4 = vadd.f32 %v2779_v53, %v2248_v44  ;;  %v2256_v26 = vadd.f32 %v2673_v51, %v4842_v32  ;;  %v2785_v14 = vadd.f32 %v2784_v13, %v2783_v8 }
 0x271   :  { %v1873_v7 = vmul.f32 %v1745_v56, %v849_v33  ;;  %2525 = vst [vmem:[#allocation10 + $0x8] sm:$0xff] %v2401_v42  ;;  %v2414_v20 = vadd.f32 %v2782_v31, %v2253_v63  ;;  %v2261_v49 = vadd.f32 %v2676_v22, %v4842_v32  ;;  %v2788_v46 = vadd.f32 %v2787_v45, %v2786_v59  ;;  %v2789_v50 = vpop.f32.mrf.mxu1  ;;  %v2678_v1 = vpop.f32.mrf.mxu0 }
 0x272   :  { %2526 = vst [vmem:[#allocation10 + $0x10] sm:$0xff] %v2406_v43  ;;  %2527 = vst [vmem:[#allocation10 + $0x18] sm:$0xff] %v2409_v4  ;;  %v2417_v38 = vadd.f32 %v2785_v14, %v2256_v26  ;;  %v2679_v57 = vadd.f32 %v2678_v1, %v2677_v10  ;;  %v1935_v18 = vpack.c.bf16 %v1871_v47, %v1867_v12 }
 0x273   :  { %v1869_v58 = vmul.f32 %v1741_v35, %v4823_v39  ;;  %2528 = vst [vmem:[#allocation10 + $0x20] sm:$0xff] %v2414_v20  ;;  %v2422_v36 = vadd.f32 %v2788_v46, %v2261_v49  ;;  %v2790_v34 = vpop.f32.mrf.mxu1 }
 0x274   :  { %2529 = vst [vmem:[#allocation10 + $0x28] sm:$0xff] %v2417_v38  ;;  %v2264_v8 = vadd.f32 %v2679_v57, %v4842_v32  ;;  %v2791_v33 = vadd.f32 %v2790_v34, %v2789_v50 }
 0x275   :  { %2355 = vmatmul.mubr.bf16.gmra.mxu0 %v1935_v18  ;;  %v1937_v28 = vpack.c.bf16 %v1873_v7, %v1869_v58  ;;  %2530 = vst [vmem:[#allocation10 + $0x30] sm:$0xff] %v2422_v36 }
 0x276   :  { %v2425_v2 = vadd.f32 %v2791_v33, %v2264_v8 }
 0x277   :  { %2516 = vmatmul.mubr.bf16.gmra.mxu1 %v1937_v28 }
 0x278   :  { %2531 = vst [vmem:[#allocation10 + $0x38] sm:$0xff] %v2425_v2 }
 0x280   :  { %v2680_v23 = vpop.f32.mrf.mxu0 }
 0x282   :  { %v2792_v54 = vpop.f32.mrf.mxu1  ;;  %v2681_v37 = vpop.f32.mrf.mxu0 }
 0x283   :  { %v2682_v16 = vadd.f32 %v2681_v37, %v2680_v23 }
 0x284   :  { %v2793_v13 = vpop.f32.mrf.mxu1  ;;  %v2683_v0 = vpop.f32.mrf.mxu0 }
 0x285   :  { %v2269_v39 = vadd.f32 %v2682_v16, %v4842_v32  ;;  %v2794_v12 = vadd.f32 %v2793_v13, %v2792_v54 }
 0x286   :  { %v2795_v35 = vpop.f32.mrf.mxu1  ;;  %v2684_v56 = vpop.f32.mrf.mxu0 }
 0x287   :  { %v2430_v47 = vadd.f32 %v2794_v12, %v2269_v39  ;;  %v2685_v55 = vadd.f32 %v2684_v56, %v2683_v0 }
 0x288   :  { %v2796_v5 = vpop.f32.mrf.mxu1 }
 0x289   :  { %2532 = vst [vmem:[#allocation10 + $0x40] sm:$0xff] %v2430_v47  ;;  %v2272_v17 = vadd.f32 %v2685_v55, %v4842_v32  ;;  %v2797_v19 = vadd.f32 %v2796_v5, %v2795_v35 }
 0x28b   :  { %v2433_v48 = vadd.f32 %v2797_v19, %v2272_v17 }
 0x28d   :  { %2533 = vst [vmem:[#allocation10 + $0x48] sm:$0xff] %v2433_v48 }
 0x295   :  { %v2686_v29 = vpop.f32.mrf.mxu0 }
 0x297   :  { %v2798_v25 = vpop.f32.mrf.mxu1  ;;  %v2687_v41 = vpop.f32.mrf.mxu0 }
 0x298   :  { %v2688_v24 = vadd.f32 %v2687_v41, %v2686_v29 }
 0x299   :  { %v2799_v21 = vpop.f32.mrf.mxu1  ;;  %v2689_v40 = vpop.f32.mrf.mxu0 }
 0x29a   :  { %v2277_v61 = vadd.f32 %v2688_v24, %v4842_v32  ;;  %v2800_v15 = vadd.f32 %v2799_v21, %v2798_v25 }
 0x29b   :  { %v2801_v9 = vpop.f32.mrf.mxu1  ;;  %v2690_v3 = vpop.f32.mrf.mxu0 }
 0x29c   :  { %v2438_v27 = vadd.f32 %v2800_v15, %v2277_v61  ;;  %v2691_v6 = vadd.f32 %v2690_v3, %v2689_v40 }
 0x29d   :  { %v2802_v62 = vpop.f32.mrf.mxu1 }
 0x29e   :  { %2534 = vst [vmem:[#allocation10 + $0x50] sm:$0xff] %v2438_v27  ;;  %v2280_v11 = vadd.f32 %v2691_v6, %v4842_v32  ;;  %v2803_v52 = vadd.f32 %v2802_v62, %v2801_v9 }
 0x2a0   :  { %v2441_v59 = vadd.f32 %v2803_v52, %v2280_v11 }
 0x2a2   :  { %2535 = vst [vmem:[#allocation10 + $0x58] sm:$0xff] %v2441_v59 }
 0x2aa   :  { %v2692_v60 = vpop.f32.mrf.mxu0 }
 0x2ac   :  { %v2804_v30 = vpop.f32.mrf.mxu1  ;;  %v2693_v44 = vpop.f32.mrf.mxu0 }
 0x2ad   :  { %v2694_v53 = vadd.f32 %v2693_v44, %v2692_v60 }
 0x2ae   :  { %v2805_v51 = vpop.f32.mrf.mxu1  ;;  %v2695_v42 = vpop.f32.mrf.mxu0 }
 0x2af   :  { %v2285_v63 = vadd.f32 %v2694_v53, %v4842_v32  ;;  %v2806_v31 = vadd.f32 %v2805_v51, %v2804_v30 }
 0x2b0   :  { %v2807_v22 = vpop.f32.mrf.mxu1  ;;  %v2696_v45 = vpop.f32.mrf.mxu0 }
 0x2b1   :  { %v2446_v10 = vadd.f32 %v2806_v31, %v2285_v63  ;;  %v2697_v43 = vadd.f32 %v2696_v45, %v2695_v42 }
 0x2b2   :  { %v2808_v4 = vpop.f32.mrf.mxu1 }
 0x2b3   :  { %2536 = vst [vmem:[#allocation10 + $0x60] sm:$0xff] %v2446_v10  ;;  %v2288_v26 = vadd.f32 %v2697_v43, %v4842_v32  ;;  %v2809_v14 = vadd.f32 %v2808_v4, %v2807_v22 }
 0x2b5   :  { %v2449_v7 = vadd.f32 %v2809_v14, %v2288_v26 }
 0x2b7   :  { %2537 = vst [vmem:[#allocation10 + $0x68] sm:$0xff] %v2449_v7 }
 0x2bf   :  { %v2698_v20 = vpop.f32.mrf.mxu0 }
 0x2c1   :  { %v2810_v49 = vpop.f32.mrf.mxu1  ;;  %v2699_v46 = vpop.f32.mrf.mxu0 }
 0x2c2   :  { %v2700_v50 = vadd.f32 %v2699_v46, %v2698_v20 }
 0x2c3   :  { %v2811_v1 = vpop.f32.mrf.mxu1  ;;  %v2701_v38 = vpop.f32.mrf.mxu0 }
 0x2c4   :  { %v2293_v57 = vadd.f32 %v2700_v50, %v4842_v32  ;;  %v2812_v18 = vadd.f32 %v2811_v1, %v2810_v49 }
 0x2c5   :  { %v2813_v58 = vpop.f32.mrf.mxu1  ;;  %v2702_v36 = vpop.f32.mrf.mxu0 }
 0x2c6   :  { %v2454_v34 = vadd.f32 %v2812_v18, %v2293_v57  ;;  %v2703_v8 = vadd.f32 %v2702_v36, %v2701_v38 }
 0x2c7   :  { %v2814_v33 = vpop.f32.mrf.mxu1 }
 0x2c8   :  { %2538 = vst [vmem:[#allocation10 + $0x70] sm:$0xff] %v2454_v34  ;;  %v2296_v28 = vadd.f32 %v2703_v8, %v4842_v32  ;;  %v2815_v2 = vadd.f32 %v2814_v33, %v2813_v58 }
 0x2ca   :  { %v2457_v23 = vadd.f32 %v2815_v2, %v2296_v28 }
 0x2cc   :  { %2539 = vst [vmem:[#allocation10 + $0x78] sm:$0xff] %v2457_v23 }
 0x2d5   :  { %v2704_v54 = vpop.f32.mrf.mxu0 }
 0x2d7   :  { %v2816_v37 = vpop.f32.mrf.mxu1  ;;  %v2705_v16 = vpop.f32.mrf.mxu0 }
 0x2d8   :  { %v2706_v13 = vadd.f32 %v2705_v16, %v2704_v54 }
 0x2d9   :  { %v2817_v0 = vpop.f32.mrf.mxu1  ;;  %v2707_v39 = vpop.f32.mrf.mxu0 }
 0x2da   :  { %v2301_v12 = vadd.f32 %v2706_v13, %v4842_v32  ;;  %v2818_v35 = vadd.f32 %v2817_v0, %v2816_v37 }
 0x2db   :  { %v2819_v56 = vpop.f32.mrf.mxu1  ;;  %v2708_v47 = vpop.f32.mrf.mxu0 }
 0x2dc   :  { %v2462_v55 = vadd.f32 %v2818_v35, %v2301_v12  ;;  %v2709_v5 = vadd.f32 %v2708_v47, %v2707_v39 }
 0x2dd   :  { %v2820_v17 = vpop.f32.mrf.mxu1 }
 0x2de   :  { %2540 = vst [vmem:[#allocation10 + $0x80] sm:$0xff] %v2462_v55  ;;  %v2304_v19 = vadd.f32 %v2709_v5, %v4842_v32  ;;  %v2821_v48 = vadd.f32 %v2820_v17, %v2819_v56 }
 0x2e0   :  { %v2465_v29 = vadd.f32 %v2821_v48, %v2304_v19 }
 0x2e2   :  { %2541 = vst [vmem:[#allocation10 + $0x88] sm:$0xff] %v2465_v29 }
 0x2eb   :  { %v2710_v25 = vpop.f32.mrf.mxu0 }
 0x2ed   :  { %v2822_v41 = vpop.f32.mrf.mxu1  ;;  %v2711_v24 = vpop.f32.mrf.mxu0 }
 0x2ee   :  { %v2712_v21 = vadd.f32 %v2711_v24, %v2710_v25 }
 0x2ef   :  { %v2823_v40 = vpop.f32.mrf.mxu1  ;;  %v2713_v61 = vpop.f32.mrf.mxu0 }
 0x2f0   :  { %v2309_v15 = vadd.f32 %v2712_v21, %v4842_v32  ;;  %v2824_v9 = vadd.f32 %v2823_v40, %v2822_v41 }
 0x2f1   :  { %v2825_v3 = vpop.f32.mrf.mxu1  ;;  %v2714_v27 = vpop.f32.mrf.mxu0 }
 0x2f2   :  { %v2470_v6 = vadd.f32 %v2824_v9, %v2309_v15  ;;  %v2715_v62 = vadd.f32 %v2714_v27, %v2713_v61 }
 0x2f3   :  { %v2826_v11 = vpop.f32.mrf.mxu1 }
 0x2f4   :  { %2542 = vst [vmem:[#allocation10 + $0x90] sm:$0xff] %v2470_v6  ;;  %v2312_v52 = vadd.f32 %v2715_v62, %v4842_v32  ;;  %v2827_v59 = vadd.f32 %v2826_v11, %v2825_v3 }
 0x2f6   :  { %v2473_v60 = vadd.f32 %v2827_v59, %v2312_v52 }
 0x2f8   :  { %2543 = vst [vmem:[#allocation10 + $0x98] sm:$0xff] %v2473_v60 }
 0x301   :  { %v2716_v30 = vpop.f32.mrf.mxu0 }
 0x303   :  { %v2828_v44 = vpop.f32.mrf.mxu1  ;;  %v2717_v53 = vpop.f32.mrf.mxu0 }
 0x304   :  { %v2718_v51 = vadd.f32 %v2717_v53, %v2716_v30 }
 0x305   :  { %v2829_v42 = vpop.f32.mrf.mxu1  ;;  %v2719_v63 = vpop.f32.mrf.mxu0 }
 0x306   :  { %v2317_v31 = vadd.f32 %v2718_v51, %v4842_v32  ;;  %v2830_v22 = vadd.f32 %v2829_v42, %v2828_v44 }
 0x307   :  { %v2831_v45 = vpop.f32.mrf.mxu1  ;;  %v2720_v10 = vpop.f32.mrf.mxu0 }
 0x308   :  { %v2478_v43 = vadd.f32 %v2830_v22, %v2317_v31  ;;  %v2721_v4 = vadd.f32 %v2720_v10, %v2719_v63 }
 0x309   :  { %v2832_v26 = vpop.f32.mrf.mxu1 }
 0x30a   :  { %2544 = vst [vmem:[#allocation10 + $0xa0] sm:$0xff] %v2478_v43  ;;  %v2320_v14 = vadd.f32 %v2721_v4, %v4842_v32  ;;  %v2833_v7 = vadd.f32 %v2832_v26, %v2831_v45 }
 0x30c   :  { %v2481_v20 = vadd.f32 %v2833_v7, %v2320_v14 }
 0x30e   :  { %2545 = vst [vmem:[#allocation10 + $0xa8] sm:$0xff] %v2481_v20 }
 0x315   :  { %v2722_v49 = vpop.f32.mrf.mxu0 }
 0x317   :  { %v2834_v46 = vpop.f32.mrf.mxu1  ;;  %v2723_v50 = vpop.f32.mrf.mxu0 }
 0x318   :  { %v2724_v1 = vadd.f32 %v2723_v50, %v2722_v49 }
 0x319   :  { %v2835_v38 = vpop.f32.mrf.mxu1  ;;  %v2725_v57 = vpop.f32.mrf.mxu0 }
 0x31a   :  { %v2325_v18 = vadd.f32 %v2724_v1, %v4842_v32  ;;  %v2836_v58 = vadd.f32 %v2835_v38, %v2834_v46 }
 0x31b   :  { %v2837_v36 = vpop.f32.mrf.mxu1  ;;  %v2726_v34 = vpop.f32.mrf.mxu0 }
 0x31c   :  { %v2486_v8 = vadd.f32 %v2836_v58, %v2325_v18  ;;  %v2727_v33 = vadd.f32 %v2726_v34, %v2725_v57 }
 0x31d   :  { %v2838_v28 = vpop.f32.mrf.mxu1  ;;  %v2728_v2 = vpop.f32.mrf.mxu0 }
 0x31e   :  { %2546 = vst [vmem:[#allocation10 + $0xb0] sm:$0xff] %v2486_v8  ;;  %v2328_v23 = vadd.f32 %v2727_v33, %v4842_v32  ;;  %v2839_v54 = vadd.f32 %v2838_v28, %v2837_v36 }
 0x31f   :  { %v2840_v37 = vpop.f32.mrf.mxu1  ;;  %v2729_v16 = vpop.f32.mrf.mxu0 }
 0x320   :  { %v2489_v13 = vadd.f32 %v2839_v54, %v2328_v23  ;;  %v2730_v0 = vadd.f32 %v2729_v16, %v2728_v2 }
 0x321   :  { %v2841_v39 = vpop.f32.mrf.mxu1  ;;  %v2731_v12 = vpop.f32.mrf.mxu0 }
 0x322   :  { %2547 = vst [vmem:[#allocation10 + $0xb8] sm:$0xff] %v2489_v13  ;;  %v2333_v35 = vadd.f32 %v2730_v0, %v4842_v32  ;;  %v2842_v56 = vadd.f32 %v2841_v39, %v2840_v37 }
 0x323   :  { %v2843_v47 = vpop.f32.mrf.mxu1  ;;  %v2732_v55 = vpop.f32.mrf.mxu0 }
 0x324   :  { %v2494_v5 = vadd.f32 %v2842_v56, %v2333_v35  ;;  %v2733_v17 = vadd.f32 %v2732_v55, %v2731_v12 }
 0x325   :  { %v2844_v19 = vpop.f32.mrf.mxu1  ;;  %v2734_v48 = vpop.f32.mrf.mxu0 }
 0x326   :  { %2548 = vst [vmem:[#allocation10 + $0xc0] sm:$0xff] %v2494_v5  ;;  %v2336_v29 = vadd.f32 %v2733_v17, %v4842_v32  ;;  %v2845_v25 = vadd.f32 %v2844_v19, %v2843_v47 }
 0x327   :  { %v2846_v41 = vpop.f32.mrf.mxu1  ;;  %v2735_v24 = vpop.f32.mrf.mxu0 }
 0x328   :  { %v2497_v21 = vadd.f32 %v2845_v25, %v2336_v29  ;;  %v2736_v40 = vadd.f32 %v2735_v24, %v2734_v48 }
 0x329   :  { %v2847_v61 = vpop.f32.mrf.mxu1  ;;  %v2737_v15 = vpop.f32.mrf.mxu0 }
 0x32a   :  { %2549 = vst [vmem:[#allocation10 + $0xc8] sm:$0xff] %v2497_v21  ;;  %v2341_v9 = vadd.f32 %v2736_v40, %v4842_v32  ;;  %v2848_v3 = vadd.f32 %v2847_v61, %v2846_v41 }
 0x32b   :  { %v2849_v27 = vpop.f32.mrf.mxu1  ;;  %v2738_v6 = vpop.f32.mrf.mxu0 }
 0x32c   :  { %v2502_v62 = vadd.f32 %v2848_v3, %v2341_v9  ;;  %v2739_v11 = vadd.f32 %v2738_v6, %v2737_v15 }
 0x32d   :  { %v2850_v52 = vpop.f32.mrf.mxu1  ;;  %v2740_v59 = vpop.f32.mrf.mxu0 }
 0x32e   :  { %2550 = vst [vmem:[#allocation10 + $0xd0] sm:$0xff] %v2502_v62  ;;  %v2344_v60 = vadd.f32 %v2739_v11, %v4842_v32  ;;  %v2851_v30 = vadd.f32 %v2850_v52, %v2849_v27 }
 0x32f   :  { %v2852_v44 = vpop.f32.mrf.mxu1  ;;  %v2741_v53 = vpop.f32.mrf.mxu0 }
 0x330   :  { %v2505_v51 = vadd.f32 %v2851_v30, %v2344_v60  ;;  %v2742_v42 = vadd.f32 %v2741_v53, %v2740_v59 }
 0x331   :  { %v2853_v63 = vpop.f32.mrf.mxu1  ;;  %v2743_v31 = vpop.f32.mrf.mxu0 }
 0x332   :  { %2551 = vst [vmem:[#allocation10 + $0xd8] sm:$0xff] %v2505_v51  ;;  %v2349_v22 = vadd.f32 %v2742_v42, %v4842_v32  ;;  %v2854_v45 = vadd.f32 %v2853_v63, %v2852_v44 }
 0x333   :  { %v2855_v10 = vpop.f32.mrf.mxu1  ;;  %v2744_v43 = vpop.f32.mrf.mxu0 }
 0x334   :  { %v2510_v4 = vadd.f32 %v2854_v45, %v2349_v22  ;;  %v2745_v26 = vadd.f32 %v2744_v43, %v2743_v31 }
 0x335   :  { %v2856_v14 = vpop.f32.mrf.mxu1  ;;  %v2746_v7 = vpop.f32.mrf.mxu0 }
 0x336   :  { %2552 = vst [vmem:[#allocation10 + $0xe0] sm:$0xff] %v2510_v4  ;;  %v2352_v20 = vadd.f32 %v2745_v26, %v4842_v32  ;;  %v2857_v49 = vadd.f32 %v2856_v14, %v2855_v10 }
 0x337   :  { %v2858_v46 = vpop.f32.mrf.mxu1  ;;  %v2747_v50 = vpop.f32.mrf.mxu0 }
 0x338   :  { %v2513_v1 = vadd.f32 %v2857_v49, %v2352_v20  ;;  %v2748_v38 = vadd.f32 %v2747_v50, %v2746_v7 }
 0x339   :  { %v2859_v57 = vpop.f32.mrf.mxu1  ;;  %v2749_v18 = vpop.f32.mrf.mxu0 }
 0x33a   :  { %2553 = vst [vmem:[#allocation10 + $0xe8] sm:$0xff] %v2513_v1  ;;  %v2357_v58 = vadd.f32 %v2748_v38, %v4842_v32  ;;  %v2860_v36 = vadd.f32 %v2859_v57, %v2858_v46 }
 0x33b   :  { %v2861_v34 = vpop.f32.mrf.mxu1  ;;  %v2750_v8 = vpop.f32.mrf.mxu0 }
 0x33c   :  { %v2518_v33 = vadd.f32 %v2860_v36, %v2357_v58  ;;  %v2751_v28 = vadd.f32 %v2750_v8, %v2749_v18 }
 0x33d   :  { %v2862_v2 = vpop.f32.mrf.mxu1 }
 0x33e   :  { %2554 = vst [vmem:[#allocation10 + $0xf0] sm:$0xff] %v2518_v33  ;;  %v2360_v23 = vadd.f32 %v2751_v28, %v4842_v32  ;;  %v2863_v54 = vadd.f32 %v2862_v2, %v2861_v34 }
 0x340   :  { %v2521_v37 = vadd.f32 %v2863_v54, %v2360_v23 }
 0x342   :  { %2555 = vst [vmem:[#allocation10 + $0xf8] sm:$0xff] %v2521_v37 }
 0x343   :  { %3303 = shalt.err (!%p3300_p10)
}
 0x344   :  { %2567 = dma.vmem_to_hbm [thread:$0]  %s2562_s17, 4096, %s4910_s5, [#allocation4], %s3324_s28, %s3324_s28, %s3325_s29  }
 0x345   :  { %3318 = dma.done.wait [#allocation4], 4096  }
 0x346   :  { %3319 = vsyncadd [#allocation4], 4294963200 }
 0x347   :  { %2571 = vsyncpa [#allocation3], 1 }
 0x348   :  { %2572 = vsyncpa [#allocation6], 1 }
 0x349   :  { %2573 = vsyncpa [#allocation9], 1 }
 0x34a   :  { %2574 = vsyncpa [#allocation4], 1 }

</bundles_post_ra>
